<compile_context>
chip_gen: v7x
topology: tpu7x:2x2x1
jax: 0.10.0
libtpu: 0.0.40
codegen_flags: <defaults>
</compile_context>

<pallas_src>
import numpy as np
import jax
import jax.numpy as jnp
from jax import lax
from jax.experimental import pallas as pl
from jax.experimental.pallas import tpu as pltpu

NEG_SLOPE = 0.1   # LeakyReLU(0.1)
MARGIN = 0.1      # triplet margin


def _leaky(x):
    return jnp.where(x > 0, x, NEG_SLOPE * x)


def _pnp_kernel(xr_ref, w1_ref, b1_ref, w2_ref, b2_ref, w3_ref, b3_ref,
                pp_ref, pn_ref, wfc1_ref, bfc1_ref, wfc2_ref, bfc2_ref,
                wqt_ref, bqt_ref, out_ref):
    f32 = jnp.float32
    T = xr_ref.shape[1]
    num_pts = T // 9

    def leaky(v):
        # LeakyReLU(0.1) == max(v, 0.1*v) for slope < 1
        return jnp.maximum(v, NEG_SLOPE * v)

    # ---------------- conv stack (per-batch (T, C) matmuls) ----------------
    xb = xr_ref[0]                                                         # (T, 2*nIn)
    h = leaky(jnp.dot(xb, w1_ref[...], preferred_element_type=f32) + b1_ref[...])
    h = leaky(jnp.dot(h, w2_ref[...], preferred_element_type=f32) + b2_ref[...])
    h = jnp.dot(h, w3_ref[...], preferred_element_type=f32) + b3_ref[...]  # (T, 128) f32

    # ---------------- triplet-loss branch ----------------
    # inverse norms as (T,1) rsqrt's; no (T,128) broadcast-divides.
    inv = lax.rsqrt(jnp.sum(h * h, axis=-1, keepdims=True))               # (T, 1)
    # one-hot row gathers: bf16 0/1 matrix promoted to f32 -> exact row copies.
    hp = jnp.dot(pp_ref[...].astype(f32), h, preferred_element_type=f32)  # (T, 128)
    hn = jnp.dot(pn_ref[...].astype(f32), h, preferred_element_type=f32)  # (T, 128)
    # rows of hp/hn are exact copies of rows of h, so these equal the gathered inv norms.
    invp = lax.rsqrt(jnp.sum(hp * hp, axis=-1, keepdims=True))
    invn = lax.rsqrt(jnp.sum(hn * hn, axis=-1, keepdims=True))
    s_pos = jnp.sum(h * hp, axis=-1, keepdims=True) * inv * invp          # (T, 1)
    s_neg = jnp.sum(h * hn, axis=-1, keepdims=True) * inv * invn          # (T, 1)
    elem = jnp.maximum(MARGIN - s_pos + s_neg, 0.0)
    loss_b = jnp.sum(elem, axis=0, keepdims=True) * (1.0 / T)             # (1, 1)

    # ---------------- pose head ----------------
    # group means via 8-row aligned slices + sublane reduction, lane-concatenated into
    # a (1, 1152) flat feature -> fc1 is a single K=1152 matmul.
    scale = 1.0 / num_pts
    pieces = [jnp.sum(h[g * num_pts:(g + 1) * num_pts, :], axis=0, keepdims=True) * scale
              for g in range(9)]
    feat = jnp.concatenate(pieces, axis=1)                                 # (1, 1152)
    f1 = leaky(jnp.dot(feat, wfc1_ref[...], preferred_element_type=f32) + bfc1_ref[...])
    f2 = leaky(jnp.dot(f1, wfc2_ref[...], preferred_element_type=f32) + bfc2_ref[...])
    # fc_qt zero-padded to 128 output lanes -> lane-dense store; col 7 is exactly 0.
    qrow = jnp.dot(f2, wqt_ref[...], preferred_element_type=f32) + bqt_ref[...]   # (1, 128)

    col = lax.broadcasted_iota(jnp.int32, (1, 128), 1)
    orow = qrow + (col == 7).astype(f32) * loss_b                          # pack loss at col 7
    out_ref[0] = jnp.broadcast_to(orow, (8, 128))


def make_simple_pnp_forward(params, pos_idx, neg_idx, batch_size, nIn, L):
    """One-time setup: repack weights / build gather matrices, return a jitted forward."""
    T = L // 2
    assert T % 9 == 0
    f32 = jnp.float32
    C2 = 2 * nIn

    # -------- one-time weight repacking (hoisted out of the per-call path) --------
    w1 = params['conv1_w'].reshape(128, C2).T.astype(f32)        # (2*nIn, 128)
    b1 = params['conv1_b'].reshape(1, 128).astype(f32)
    w2 = params['conv2_w'].T.astype(f32)                         # (128, 128)
    b2 = params['conv2_b'].reshape(1, 128).astype(f32)
    w3 = params['conv3_w'].T.astype(f32)                         # (128, 128)
    b3 = params['conv3_b'].reshape(1, 128).astype(f32)
    wfc1 = params['fc1_w'].T.astype(f32)                         # (1152, 512)
    bfc1 = params['fc1_b'].reshape(1, 512).astype(f32)
    wfc2 = params['fc2_w'].T.astype(f32)                         # (512, 256)
    bfc2 = params['fc2_b'].reshape(1, 256).astype(f32)
    # lane-dense fc_qt: pad 7 -> 128 output lanes (col 7..127 of the weights are zero).
    wqt = jnp.zeros((256, 128), f32).at[:, :7].set(params['fc_qt_w'].T.astype(f32))
    bqt = jnp.zeros((1, 128), f32).at[0, :7].set(params['fc_qt_b'].astype(f32))

    # per-batch (T,T) one-hot gather matrices (identical for every batch element), bf16.
    pp_np = np.zeros((T, T), np.float32)
    pp_np[np.arange(T), np.asarray(pos_idx)] = 1.0
    pn_np = np.zeros((T, T), np.float32)
    pn_np[np.arange(T), np.asarray(neg_idx)] = 1.0
    pp = jnp.asarray(pp_np, jnp.bfloat16)
    pn = jnp.asarray(pn_np, jnp.bfloat16)

    consts = (w1, b1, w2, b2, w3, b3, pp, pn, wfc1, bfc1, wfc2, bfc2, wqt, bqt)

    def _const_spec(arr):
        zeros = (0,) * arr.ndim
        return pl.BlockSpec(arr.shape, lambda b, _z=zeros: _z)

    in_specs = [pl.BlockSpec((1, T, C2), lambda b: (b, 0, 0))] + [_const_spec(c) for c in consts]
    out_specs = pl.BlockSpec((1, 8, 128), lambda b: (b, 0, 0))

    kernel_call = pl.pallas_call(
        _pnp_kernel,
        grid=(batch_size,),
        in_specs=in_specs,
        out_specs=out_specs,
        out_shape=jax.ShapeDtypeStruct((batch_size, 8, 128), f32),
        compiler_params=pltpu.CompilerParams(
            dimension_semantics=("parallel",)),   # shard batch across TCs on v7x
    )

    @jax.jit
    def forward(x):
        # conv1(k=2, s=2) input: xr[b, t, c*2+k] = x[b, c, 2t+k]
        xr = (x.astype(f32)
               .reshape(batch_size, nIn, T, 2)
               .transpose(0, 2, 1, 3)
               .reshape(batch_size, T, C2))
        out = kernel_call(xr, *consts)
        qt = out[:, 0, :7]
        loss = out[:, 0, 7]
        return qt, loss

    return forward


def reference_forward(x, params, pos_idx, neg_idx):
    """Pure-JAX reference mirroring the PyTorch module (for correctness check)."""
    B, nIn, L = x.shape
    T = L // 2
    num_pts = T // 9
    hi = 'highest'
    xr = x.reshape(B, nIn, T, 2)
    h = jnp.einsum('bctk,ock->bot', xr, params['conv1_w'], precision=hi) + params['conv1_b'][None, :, None]
    h = _leaky(h)
    h = jnp.einsum('bct,oc->bot', h, params['conv2_w'], precision=hi) + params['conv2_b'][None, :, None]
    h = _leaky(h)
    h = jnp.einsum('bct,oc->bot', h, params['conv3_w'], precision=hi) + params['conv3_b'][None, :, None]

    def nrm(v):
        return v / jnp.linalg.norm(v, axis=1, keepdims=True)

    anchors = nrm(h)
    pos = nrm(h[:, :, pos_idx])
    neg = nrm(h[:, :, neg_idx])
    s_pos = jnp.sum(anchors * pos, axis=1)
    s_neg = jnp.sum(anchors * neg, axis=1)
    loss = jnp.maximum(0.1 - s_pos + s_neg, 0.0).mean(axis=1)
    feat = h.transpose(0, 2, 1).reshape(B, 9, num_pts, 128).mean(axis=2).reshape(B, 9 * 128)
    f1 = _leaky(jnp.einsum('bi,oi->bo', feat, params['fc1_w'], precision=hi) + params['fc1_b'])
    f2 = _leaky(jnp.einsum('bi,oi->bo', f1, params['fc2_w'], precision=hi) + params['fc2_b'])
    qt = jnp.einsum('bi,oi->bo', f2, params['fc_qt_w'], precision=hi) + params['fc_qt_b']
    return qt, loss


if __name__ == "__main__":
    nIn = 4
    num_pts = 8
    T = 9 * num_pts           # data_size = 72 (conv1 output length)
    L = 2 * T                 # Conv1d(k=2, s=2) input length = 144
    B = 2

    key = jax.random.PRNGKey(0)
    keys = jax.random.split(key, 13)
    s = 0.1
    params = {
        'conv1_w': jax.random.normal(keys[0], (128, nIn, 2), jnp.float32) * s,
        'conv1_b': jax.random.normal(keys[1], (128,), jnp.float32) * s,
        'conv2_w': jax.random.normal(keys[2], (128, 128), jnp.float32) * s,
        'conv2_b': jax.random.normal(keys[3], (128,), jnp.float32) * s,
        'conv3_w': jax.random.normal(keys[4], (128, 128), jnp.float32) * s,
        'conv3_b': jax.random.normal(keys[5], (128,), jnp.float32) * s,
        'fc1_w': jax.random.normal(keys[6], (512, 1152), jnp.float32) * s,
        'fc1_b': jax.random.normal(keys[7], (512,), jnp.float32) * s,
        'fc2_w': jax.random.normal(keys[8], (256, 512), jnp.float32) * s,
        'fc2_b': jax.random.normal(keys[9], (256,), jnp.float32) * s,
        'fc_qt_w': jax.random.normal(keys[10], (7, 256), jnp.float32) * s,
        'fc_qt_b': jax.random.normal(keys[11], (7,), jnp.float32) * s,
    }
    x = jax.random.normal(keys[12], (B, nIn, L), dtype=jnp.float32)

    # Replicate the module's host-side np.random index construction (deterministic seed).
    np.random.seed(0)
    pos_idx = []
    for i in range(9):
        tmp = np.arange(num_pts)
        np.random.shuffle(tmp)
        pos_idx.append(num_pts * i + tmp)
    pos_idx = np.concatenate(pos_idx).astype(np.int64)
    neg_idx = []
    for i in range(9):
        cand = np.array(sorted(set(range(num_pts * 9)) - set(range(num_pts * i, num_pts * (i + 1)))))
        neg_idx.append(np.random.choice(cand, num_pts))
    neg_idx = np.concatenate(neg_idx).astype(np.int64)

    forward = make_simple_pnp_forward(params, pos_idx, neg_idx, B, nIn, L)
    qt, loss = forward(x)
    jax.block_until_ready((qt, loss))

    qt_ref, loss_ref = reference_forward(x, params, pos_idx, neg_idx)
    assert qt.shape == (B, 7) and loss.shape == (B,)
    np.testing.assert_allclose(np.asarray(qt), np.asarray(qt_ref), rtol=2e-3, atol=2e-3)
    np.testing.assert_allclose(np.asarray(loss), np.asarray(loss_ref), rtol=2e-3, atol=2e-3)
    print("KERNEL_OK")
</pallas_src>

<mosaic_0001>
module attributes {stable_mosaic.version = 11 : i64} {
  func.func @_pnp_kernel(%arg0: i32, %arg1: memref<1x72x8xf32, #tpu.memory_space<vmem>>, %arg2: memref<8x128xf32, #tpu.memory_space<vmem>>, %arg3: memref<1x128xf32, #tpu.memory_space<vmem>>, %arg4: memref<128x128xf32, #tpu.memory_space<vmem>>, %arg5: memref<1x128xf32, #tpu.memory_space<vmem>>, %arg6: memref<128x128xf32, #tpu.memory_space<vmem>>, %arg7: memref<1x128xf32, #tpu.memory_space<vmem>>, %arg8: memref<72x72xbf16, #tpu.memory_space<vmem>>, %arg9: memref<72x72xbf16, #tpu.memory_space<vmem>>, %arg10: memref<1152x512xf32, #tpu.memory_space<vmem>>, %arg11: memref<1x512xf32, #tpu.memory_space<vmem>>, %arg12: memref<512x256xf32, #tpu.memory_space<vmem>>, %arg13: memref<1x256xf32, #tpu.memory_space<vmem>>, %arg14: memref<256x128xf32, #tpu.memory_space<vmem>>, %arg15: memref<1x128xf32, #tpu.memory_space<vmem>>, %arg16: memref<1x8x128xf32, #tpu.memory_space<vmem>>) attributes {dimension_semantics = [#tpu.dimension_semantics<parallel>], iteration_bounds = array<i64: 2>, scalar_prefetch = 0 : i64, scratch_operands = 0 : i64, tpu.core_type = #tpu.core_type<tc>, window_params = [{transform_indices = @transform_0, window_bounds = array<i64: 1, 72, 8>}, {pipeline_mode = #tpu.pipeline_mode<synchronous>, transform_indices = @transform_1, window_bounds = array<i64: 8, 128>}, {pipeline_mode = #tpu.pipeline_mode<synchronous>, transform_indices = @transform_2, window_bounds = array<i64: 1, 128>}, {pipeline_mode = #tpu.pipeline_mode<synchronous>, transform_indices = @transform_3, window_bounds = array<i64: 128, 128>}, {pipeline_mode = #tpu.pipeline_mode<synchronous>, transform_indices = @transform_4, window_bounds = array<i64: 1, 128>}, {pipeline_mode = #tpu.pipeline_mode<synchronous>, transform_indices = @transform_5, window_bounds = array<i64: 128, 128>}, {pipeline_mode = #tpu.pipeline_mode<synchronous>, transform_indices = @transform_6, window_bounds = array<i64: 1, 128>}, {pipeline_mode = #tpu.pipeline_mode<synchronous>, transform_indices = @transform_7, window_bounds = array<i64: 72, 72>}, {pipeline_mode = #tpu.pipeline_mode<synchronous>, transform_indices = @transform_8, window_bounds = array<i64: 72, 72>}, {pipeline_mode = #tpu.pipeline_mode<synchronous>, transform_indices = @transform_9, window_bounds = array<i64: 1152, 512>}, {pipeline_mode = #tpu.pipeline_mode<synchronous>, transform_indices = @transform_10, window_bounds = array<i64: 1, 512>}, {pipeline_mode = #tpu.pipeline_mode<synchronous>, transform_indices = @transform_11, window_bounds = array<i64: 512, 256>}, {pipeline_mode = #tpu.pipeline_mode<synchronous>, transform_indices = @transform_12, window_bounds = array<i64: 1, 256>}, {pipeline_mode = #tpu.pipeline_mode<synchronous>, transform_indices = @transform_13, window_bounds = array<i64: 256, 128>}, {pipeline_mode = #tpu.pipeline_mode<synchronous>, transform_indices = @transform_14, window_bounds = array<i64: 1, 128>}, {transform_indices = @transform_15, window_bounds = array<i64: 1, 8, 128>}]} {
    %c0 = arith.constant 0 : index
    %c0_0 = arith.constant 0 : index
    %c0_1 = arith.constant 0 : index
    %0 = vector.load %arg1[%c0, %c0_0, %c0_1] : memref<1x72x8xf32, #tpu.memory_space<vmem>>, vector<1x72x8xf32>
    %1 = vector.shape_cast %0 : vector<1x72x8xf32> to vector<72x8xf32>
    %c0_2 = arith.constant 0 : index
    %c0_3 = arith.constant 0 : index
    %2 = vector.load %arg2[%c0_2, %c0_3] : memref<8x128xf32, #tpu.memory_space<vmem>>, vector<8x128xf32>
    %cst = arith.constant dense<0.000000e+00> : vector<72x128xf32>
    %3 = tpu.matmul %1, %2, %cst {dimension_numbers = #tpu.dot_dimension_numbers<[1], [0], [0], [1], [0, 0, 1, 1], [], []>} : vector<72x8xf32>, vector<8x128xf32>, vector<72x128xf32> -> vector<72x128xf32>
    %c0_4 = arith.constant 0 : index
    %c0_5 = arith.constant 0 : index
    %4 = vector.load %arg3[%c0_4, %c0_5] : memref<1x128xf32, #tpu.memory_space<vmem>>, vector<1x128xf32>
    %5 = vector.broadcast %4 : vector<1x128xf32> to vector<72x128xf32>
    %6 = arith.addf %3, %5 : vector<72x128xf32>
    %cst_6 = arith.constant 1.000000e-01 : f32
    %7 = vector.broadcast %cst_6 : f32 to vector<72x128xf32>
    %8 = arith.mulf %7, %6 : vector<72x128xf32>
    %9 = arith.maximumf %6, %8 : vector<72x128xf32>
    %c0_7 = arith.constant 0 : index
    %c0_8 = arith.constant 0 : index
    %10 = vector.load %arg4[%c0_7, %c0_8] : memref<128x128xf32, #tpu.memory_space<vmem>>, vector<128x128xf32>
    %cst_9 = arith.constant dense<0.000000e+00> : vector<72x128xf32>
    %11 = tpu.matmul %9, %10, %cst_9 {dimension_numbers = #tpu.dot_dimension_numbers<[1], [0], [0], [1], [0, 0, 1, 1], [], []>} : vector<72x128xf32>, vector<128x128xf32>, vector<72x128xf32> -> vector<72x128xf32>
    %c0_10 = arith.constant 0 : index
    %c0_11 = arith.constant 0 : index
    %12 = vector.load %arg5[%c0_10, %c0_11] : memref<1x128xf32, #tpu.memory_space<vmem>>, vector<1x128xf32>
    %13 = vector.broadcast %12 : vector<1x128xf32> to vector<72x128xf32>
    %14 = arith.addf %11, %13 : vector<72x128xf32>
    %cst_12 = arith.constant 1.000000e-01 : f32
    %15 = vector.broadcast %cst_12 : f32 to vector<72x128xf32>
    %16 = arith.mulf %15, %14 : vector<72x128xf32>
    %17 = arith.maximumf %14, %16 : vector<72x128xf32>
    %c0_13 = arith.constant 0 : index
    %c0_14 = arith.constant 0 : index
    %18 = vector.load %arg6[%c0_13, %c0_14] : memref<128x128xf32, #tpu.memory_space<vmem>>, vector<128x128xf32>
    %cst_15 = arith.constant dense<0.000000e+00> : vector<72x128xf32>
    %19 = tpu.matmul %17, %18, %cst_15 {dimension_numbers = #tpu.dot_dimension_numbers<[1], [0], [0], [1], [0, 0, 1, 1], [], []>} : vector<72x128xf32>, vector<128x128xf32>, vector<72x128xf32> -> vector<72x128xf32>
    %c0_16 = arith.constant 0 : index
    %c0_17 = arith.constant 0 : index
    %20 = vector.load %arg7[%c0_16, %c0_17] : memref<1x128xf32, #tpu.memory_space<vmem>>, vector<1x128xf32>
    %21 = vector.broadcast %20 : vector<1x128xf32> to vector<72x128xf32>
    %22 = arith.addf %19, %21 : vector<72x128xf32>
    %23 = arith.mulf %22, %22 : vector<72x128xf32>
    %cst_18 = arith.constant dense<0.000000e+00> : vector<72xf32>
    %24 = vector.multi_reduction <add>, %23, %cst_18 [1] : vector<72x128xf32> to vector<72xf32>
    %25 = vector.shape_cast %24 : vector<72xf32> to vector<72x1xf32>
    %26 = math.rsqrt %25 : vector<72x1xf32>
    %c0_19 = arith.constant 0 : index
    %c0_20 = arith.constant 0 : index
    %27 = vector.load %arg8[%c0_19, %c0_20] : memref<72x72xbf16, #tpu.memory_space<vmem>>, vector<72x72xbf16>
    %28 = arith.extf %27 : vector<72x72xbf16> to vector<72x72xf32>
    %cst_21 = arith.constant dense<0.000000e+00> : vector<72x128xf32>
    %29 = tpu.matmul %28, %22, %cst_21 {dimension_numbers = #tpu.dot_dimension_numbers<[1], [0], [0], [1], [0, 0, 1, 1], [], []>} : vector<72x72xf32>, vector<72x128xf32>, vector<72x128xf32> -> vector<72x128xf32>
    %c0_22 = arith.constant 0 : index
    %c0_23 = arith.constant 0 : index
    %30 = vector.load %arg9[%c0_22, %c0_23] : memref<72x72xbf16, #tpu.memory_space<vmem>>, vector<72x72xbf16>
    %31 = arith.extf %30 : vector<72x72xbf16> to vector<72x72xf32>
    %cst_24 = arith.constant dense<0.000000e+00> : vector<72x128xf32>
    %32 = tpu.matmul %31, %22, %cst_24 {dimension_numbers = #tpu.dot_dimension_numbers<[1], [0], [0], [1], [0, 0, 1, 1], [], []>} : vector<72x72xf32>, vector<72x128xf32>, vector<72x128xf32> -> vector<72x128xf32>
    %33 = arith.mulf %29, %29 : vector<72x128xf32>
    %cst_25 = arith.constant dense<0.000000e+00> : vector<72xf32>
    %34 = vector.multi_reduction <add>, %33, %cst_25 [1] : vector<72x128xf32> to vector<72xf32>
    %35 = vector.shape_cast %34 : vector<72xf32> to vector<72x1xf32>
    %36 = math.rsqrt %35 : vector<72x1xf32>
    %37 = arith.mulf %32, %32 : vector<72x128xf32>
    %cst_26 = arith.constant dense<0.000000e+00> : vector<72xf32>
    %38 = vector.multi_reduction <add>, %37, %cst_26 [1] : vector<72x128xf32> to vector<72xf32>
    %39 = vector.shape_cast %38 : vector<72xf32> to vector<72x1xf32>
    %40 = math.rsqrt %39 : vector<72x1xf32>
    %41 = arith.mulf %22, %29 : vector<72x128xf32>
    %cst_27 = arith.constant dense<0.000000e+00> : vector<72xf32>
    %42 = vector.multi_reduction <add>, %41, %cst_27 [1] : vector<72x128xf32> to vector<72xf32>
    %43 = vector.shape_cast %42 : vector<72xf32> to vector<72x1xf32>
    %44 = arith.mulf %43, %26 : vector<72x1xf32>
    %45 = arith.mulf %44, %36 : vector<72x1xf32>
    %46 = arith.mulf %22, %32 : vector<72x128xf32>
    %cst_28 = arith.constant dense<0.000000e+00> : vector<72xf32>
    %47 = vector.multi_reduction <add>, %46, %cst_28 [1] : vector<72x128xf32> to vector<72xf32>
    %48 = vector.shape_cast %47 : vector<72xf32> to vector<72x1xf32>
    %49 = arith.mulf %48, %26 : vector<72x1xf32>
    %50 = arith.mulf %49, %40 : vector<72x1xf32>
    %cst_29 = arith.constant 1.000000e-01 : f32
    %51 = vector.broadcast %cst_29 : f32 to vector<72x1xf32>
    %52 = arith.subf %51, %45 : vector<72x1xf32>
    %53 = arith.addf %52, %50 : vector<72x1xf32>
    %cst_30 = arith.constant 0.000000e+00 : f32
    %54 = vector.broadcast %cst_30 : f32 to vector<72x1xf32>
    %55 = arith.maximumf %53, %54 : vector<72x1xf32>
    %cst_31 = arith.constant dense<0.000000e+00> : vector<1xf32>
    %56 = vector.multi_reduction <add>, %55, %cst_31 [0] : vector<72x1xf32> to vector<1xf32>
    %57 = vector.shape_cast %56 : vector<1xf32> to vector<1x1xf32>
    %cst_32 = arith.constant 0.013888889 : f32
    %58 = vector.broadcast %cst_32 : f32 to vector<1x1xf32>
    %59 = arith.mulf %57, %58 : vector<1x1xf32>
    %60 = vector.extract_strided_slice %22 {offsets = [0, 0], sizes = [8, 128], strides = [1, 1]} : vector<72x128xf32> to vector<8x128xf32>
    %cst_33 = arith.constant dense<0.000000e+00> : vector<128xf32>
    %61 = vector.multi_reduction <add>, %60, %cst_33 [0] : vector<8x128xf32> to vector<128xf32>
    %62 = vector.shape_cast %61 : vector<128xf32> to vector<1x128xf32>
    %cst_34 = arith.constant 1.250000e-01 : f32
    %63 = vector.broadcast %cst_34 : f32 to vector<1x128xf32>
    %64 = arith.mulf %62, %63 : vector<1x128xf32>
    %65 = vector.extract_strided_slice %22 {offsets = [8, 0], sizes = [8, 128], strides = [1, 1]} : vector<72x128xf32> to vector<8x128xf32>
    %cst_35 = arith.constant dense<0.000000e+00> : vector<128xf32>
    %66 = vector.multi_reduction <add>, %65, %cst_35 [0] : vector<8x128xf32> to vector<128xf32>
    %67 = vector.shape_cast %66 : vector<128xf32> to vector<1x128xf32>
    %cst_36 = arith.constant 1.250000e-01 : f32
    %68 = vector.broadcast %cst_36 : f32 to vector<1x128xf32>
    %69 = arith.mulf %67, %68 : vector<1x128xf32>
    %70 = vector.extract_strided_slice %22 {offsets = [16, 0], sizes = [8, 128], strides = [1, 1]} : vector<72x128xf32> to vector<8x128xf32>
    %cst_37 = arith.constant dense<0.000000e+00> : vector<128xf32>
    %71 = vector.multi_reduction <add>, %70, %cst_37 [0] : vector<8x128xf32> to vector<128xf32>
    %72 = vector.shape_cast %71 : vector<128xf32> to vector<1x128xf32>
    %cst_38 = arith.constant 1.250000e-01 : f32
    %73 = vector.broadcast %cst_38 : f32 to vector<1x128xf32>
    %74 = arith.mulf %72, %73 : vector<1x128xf32>
    %75 = vector.extract_strided_slice %22 {offsets = [24, 0], sizes = [8, 128], strides = [1, 1]} : vector<72x128xf32> to vector<8x128xf32>
    %cst_39 = arith.constant dense<0.000000e+00> : vector<128xf32>
    %76 = vector.multi_reduction <add>, %75, %cst_39 [0] : vector<8x128xf32> to vector<128xf32>
    %77 = vector.shape_cast %76 : vector<128xf32> to vector<1x128xf32>
    %cst_40 = arith.constant 1.250000e-01 : f32
    %78 = vector.broadcast %cst_40 : f32 to vector<1x128xf32>
    %79 = arith.mulf %77, %78 : vector<1x128xf32>
    %80 = vector.extract_strided_slice %22 {offsets = [32, 0], sizes = [8, 128], strides = [1, 1]} : vector<72x128xf32> to vector<8x128xf32>
    %cst_41 = arith.constant dense<0.000000e+00> : vector<128xf32>
    %81 = vector.multi_reduction <add>, %80, %cst_41 [0] : vector<8x128xf32> to vector<128xf32>
    %82 = vector.shape_cast %81 : vector<128xf32> to vector<1x128xf32>
    %cst_42 = arith.constant 1.250000e-01 : f32
    %83 = vector.broadcast %cst_42 : f32 to vector<1x128xf32>
    %84 = arith.mulf %82, %83 : vector<1x128xf32>
    %85 = vector.extract_strided_slice %22 {offsets = [40, 0], sizes = [8, 128], strides = [1, 1]} : vector<72x128xf32> to vector<8x128xf32>
    %cst_43 = arith.constant dense<0.000000e+00> : vector<128xf32>
    %86 = vector.multi_reduction <add>, %85, %cst_43 [0] : vector<8x128xf32> to vector<128xf32>
    %87 = vector.shape_cast %86 : vector<128xf32> to vector<1x128xf32>
    %cst_44 = arith.constant 1.250000e-01 : f32
    %88 = vector.broadcast %cst_44 : f32 to vector<1x128xf32>
    %89 = arith.mulf %87, %88 : vector<1x128xf32>
    %90 = vector.extract_strided_slice %22 {offsets = [48, 0], sizes = [8, 128], strides = [1, 1]} : vector<72x128xf32> to vector<8x128xf32>
    %cst_45 = arith.constant dense<0.000000e+00> : vector<128xf32>
    %91 = vector.multi_reduction <add>, %90, %cst_45 [0] : vector<8x128xf32> to vector<128xf32>
    %92 = vector.shape_cast %91 : vector<128xf32> to vector<1x128xf32>
    %cst_46 = arith.constant 1.250000e-01 : f32
    %93 = vector.broadcast %cst_46 : f32 to vector<1x128xf32>
    %94 = arith.mulf %92, %93 : vector<1x128xf32>
    %95 = vector.extract_strided_slice %22 {offsets = [56, 0], sizes = [8, 128], strides = [1, 1]} : vector<72x128xf32> to vector<8x128xf32>
    %cst_47 = arith.constant dense<0.000000e+00> : vector<128xf32>
    %96 = vector.multi_reduction <add>, %95, %cst_47 [0] : vector<8x128xf32> to vector<128xf32>
    %97 = vector.shape_cast %96 : vector<128xf32> to vector<1x128xf32>
    %cst_48 = arith.constant 1.250000e-01 : f32
    %98 = vector.broadcast %cst_48 : f32 to vector<1x128xf32>
    %99 = arith.mulf %97, %98 : vector<1x128xf32>
    %100 = vector.extract_strided_slice %22 {offsets = [64, 0], sizes = [8, 128], strides = [1, 1]} : vector<72x128xf32> to vector<8x128xf32>
    %cst_49 = arith.constant dense<0.000000e+00> : vector<128xf32>
    %101 = vector.multi_reduction <add>, %100, %cst_49 [0] : vector<8x128xf32> to vector<128xf32>
    %102 = vector.shape_cast %101 : vector<128xf32> to vector<1x128xf32>
    %cst_50 = arith.constant 1.250000e-01 : f32
    %103 = vector.broadcast %cst_50 : f32 to vector<1x128xf32>
    %104 = arith.mulf %102, %103 : vector<1x128xf32>
    %105 = tpu.concatenate %64, %69, %74, %79, %84, %89, %94, %99, %104 in 1 : vector<1x128xf32>, vector<1x128xf32>, vector<1x128xf32>, vector<1x128xf32>, vector<1x128xf32>, vector<1x128xf32>, vector<1x128xf32>, vector<1x128xf32>, vector<1x128xf32> -> vector<1x1152xf32>
    %c0_51 = arith.constant 0 : index
    %c0_52 = arith.constant 0 : index
    %106 = vector.load %arg10[%c0_51, %c0_52] : memref<1152x512xf32, #tpu.memory_space<vmem>>, vector<1152x512xf32>
    %cst_53 = arith.constant dense<0.000000e+00> : vector<1x512xf32>
    %107 = tpu.matmul %105, %106, %cst_53 {dimension_numbers = #tpu.dot_dimension_numbers<[1], [0], [0], [1], [0, 0, 1, 1], [], []>} : vector<1x1152xf32>, vector<1152x512xf32>, vector<1x512xf32> -> vector<1x512xf32>
    %c0_54 = arith.constant 0 : index
    %c0_55 = arith.constant 0 : index
    %108 = vector.load %arg11[%c0_54, %c0_55] : memref<1x512xf32, #tpu.memory_space<vmem>>, vector<1x512xf32>
    %109 = arith.addf %107, %108 : vector<1x512xf32>
    %cst_56 = arith.constant 1.000000e-01 : f32
    %110 = vector.broadcast %cst_56 : f32 to vector<1x512xf32>
    %111 = arith.mulf %110, %109 : vector<1x512xf32>
    %112 = arith.maximumf %109, %111 : vector<1x512xf32>
    %c0_57 = arith.constant 0 : index
    %c0_58 = arith.constant 0 : index
    %113 = vector.load %arg12[%c0_57, %c0_58] : memref<512x256xf32, #tpu.memory_space<vmem>>, vector<512x256xf32>
    %cst_59 = arith.constant dense<0.000000e+00> : vector<1x256xf32>
    %114 = tpu.matmul %112, %113, %cst_59 {dimension_numbers = #tpu.dot_dimension_numbers<[1], [0], [0], [1], [0, 0, 1, 1], [], []>} : vector<1x512xf32>, vector<512x256xf32>, vector<1x256xf32> -> vector<1x256xf32>
    %c0_60 = arith.constant 0 : index
    %c0_61 = arith.constant 0 : index
    %115 = vector.load %arg13[%c0_60, %c0_61] : memref<1x256xf32, #tpu.memory_space<vmem>>, vector<1x256xf32>
    %116 = arith.addf %114, %115 : vector<1x256xf32>
    %cst_62 = arith.constant 1.000000e-01 : f32
    %117 = vector.broadcast %cst_62 : f32 to vector<1x256xf32>
    %118 = arith.mulf %117, %116 : vector<1x256xf32>
    %119 = arith.maximumf %116, %118 : vector<1x256xf32>
    %c0_63 = arith.constant 0 : index
    %c0_64 = arith.constant 0 : index
    %120 = vector.load %arg14[%c0_63, %c0_64] : memref<256x128xf32, #tpu.memory_space<vmem>>, vector<256x128xf32>
    %cst_65 = arith.constant dense<0.000000e+00> : vector<1x128xf32>
    %121 = tpu.matmul %119, %120, %cst_65 {dimension_numbers = #tpu.dot_dimension_numbers<[1], [0], [0], [1], [0, 0, 1, 1], [], []>} : vector<1x256xf32>, vector<256x128xf32>, vector<1x128xf32> -> vector<1x128xf32>
    %c0_66 = arith.constant 0 : index
    %c0_67 = arith.constant 0 : index
    %122 = vector.load %arg15[%c0_66, %c0_67] : memref<1x128xf32, #tpu.memory_space<vmem>>, vector<1x128xf32>
    %123 = arith.addf %121, %122 : vector<1x128xf32>
    %124 = tpu.iota {dimensions = array<i32: 1>} : vector<1x128xi32>
    %c7_i32 = arith.constant 7 : i32
    %125 = vector.broadcast %c7_i32 : i32 to vector<1x128xi32>
    %126 = arith.cmpi eq, %124, %125 : vector<1x128xi32>
    %127 = arith.extui %126 : vector<1x128xi1> to vector<1x128xi32>
    %128 = arith.sitofp %127 : vector<1x128xi32> to vector<1x128xf32>
    %129 = vector.broadcast %59 : vector<1x1xf32> to vector<1x128xf32>
    %130 = arith.mulf %128, %129 : vector<1x128xf32>
    %131 = arith.addf %123, %130 : vector<1x128xf32>
    %132 = vector.shape_cast %131 : vector<1x128xf32> to vector<1x128xf32>
    %133 = vector.broadcast %132 : vector<1x128xf32> to vector<8x128xf32>
    %c0_68 = arith.constant 0 : index
    %c0_69 = arith.constant 0 : index
    %c0_70 = arith.constant 0 : index
    %134 = vector.load %arg16[%c0_68, %c0_69, %c0_70] : memref<1x8x128xf32, #tpu.memory_space<vmem>>, vector<1x8x128xf32>
    %135 = vector.shape_cast %134 : vector<1x8x128xf32> to vector<8x128xf32>
    %136 = vector.shape_cast %133 : vector<8x128xf32> to vector<1x8x128xf32>
    tpu.vector_store %arg16[%c0_68, %c0_69, %c0_70], %136 {strides = array<i32>} : memref<1x8x128xf32, #tpu.memory_space<vmem>>, vector<1x8x128xf32>,
    return
  }
  func.func @transform_0(%arg0: i32) -> (i32, i32, i32) {
    %c0_i32 = arith.constant 0 : i32
    %c0_i32_0 = arith.constant 0 : i32
    %c0_i32_1 = arith.constant 0 : i32
    return %arg0, %c0_i32, %c0_i32_0 : i32, i32, i32
  }
  func.func @transform_1(%arg0: i32) -> (i32, i32) {
    %c0_i32 = arith.constant 0 : i32
    %c0_i32_0 = arith.constant 0 : i32
    %c0_i32_1 = arith.constant 0 : i32
    return %c0_i32, %c0_i32_0 : i32, i32
  }
  func.func @transform_2(%arg0: i32) -> (i32, i32) {
    %c0_i32 = arith.constant 0 : i32
    %c0_i32_0 = arith.constant 0 : i32
    %c0_i32_1 = arith.constant 0 : i32
    return %c0_i32, %c0_i32_0 : i32, i32
  }
  func.func @transform_3(%arg0: i32) -> (i32, i32) {
    %c0_i32 = arith.constant 0 : i32
    %c0_i32_0 = arith.constant 0 : i32
    %c0_i32_1 = arith.constant 0 : i32
    return %c0_i32, %c0_i32_0 : i32, i32
  }
  func.func @transform_4(%arg0: i32) -> (i32, i32) {
    %c0_i32 = arith.constant 0 : i32
    %c0_i32_0 = arith.constant 0 : i32
    %c0_i32_1 = arith.constant 0 : i32
    return %c0_i32, %c0_i32_0 : i32, i32
  }
  func.func @transform_5(%arg0: i32) -> (i32, i32) {
    %c0_i32 = arith.constant 0 : i32
    %c0_i32_0 = arith.constant 0 : i32
    %c0_i32_1 = arith.constant 0 : i32
    return %c0_i32, %c0_i32_0 : i32, i32
  }
  func.func @transform_6(%arg0: i32) -> (i32, i32) {
    %c0_i32 = arith.constant 0 : i32
    %c0_i32_0 = arith.constant 0 : i32
    %c0_i32_1 = arith.constant 0 : i32
    return %c0_i32, %c0_i32_0 : i32, i32
  }
  func.func @transform_7(%arg0: i32) -> (i32, i32) {
    %c0_i32 = arith.constant 0 : i32
    %c0_i32_0 = arith.constant 0 : i32
    %c0_i32_1 = arith.constant 0 : i32
    return %c0_i32, %c0_i32_0 : i32, i32
  }
  func.func @transform_8(%arg0: i32) -> (i32, i32) {
    %c0_i32 = arith.constant 0 : i32
    %c0_i32_0 = arith.constant 0 : i32
    %c0_i32_1 = arith.constant 0 : i32
    return %c0_i32, %c0_i32_0 : i32, i32
  }
  func.func @transform_9(%arg0: i32) -> (i32, i32) {
    %c0_i32 = arith.constant 0 : i32
    %c0_i32_0 = arith.constant 0 : i32
    %c0_i32_1 = arith.constant 0 : i32
    return %c0_i32, %c0_i32_0 : i32, i32
  }
  func.func @transform_10(%arg0: i32) -> (i32, i32) {
    %c0_i32 = arith.constant 0 : i32
    %c0_i32_0 = arith.constant 0 : i32
    %c0_i32_1 = arith.constant 0 : i32
    return %c0_i32, %c0_i32_0 : i32, i32
  }
  func.func @transform_11(%arg0: i32) -> (i32, i32) {
    %c0_i32 = arith.constant 0 : i32
    %c0_i32_0 = arith.constant 0 : i32
    %c0_i32_1 = arith.constant 0 : i32
    return %c0_i32, %c0_i32_0 : i32, i32
  }
  func.func @transform_12(%arg0: i32) -> (i32, i32) {
    %c0_i32 = arith.constant 0 : i32
    %c0_i32_0 = arith.constant 0 : i32
    %c0_i32_1 = arith.constant 0 : i32
    return %c0_i32, %c0_i32_0 : i32, i32
  }
  func.func @transform_13(%arg0: i32) -> (i32, i32) {
    %c0_i32 = arith.constant 0 : i32
    %c0_i32_0 = arith.constant 0 : i32
    %c0_i32_1 = arith.constant 0 : i32
    return %c0_i32, %c0_i32_0 : i32, i32
  }
  func.func @transform_14(%arg0: i32) -> (i32, i32) {
    %c0_i32 = arith.constant 0 : i32
    %c0_i32_0 = arith.constant 0 : i32
    %c0_i32_1 = arith.constant 0 : i32
    return %c0_i32, %c0_i32_0 : i32, i32
  }
  func.func @transform_15(%arg0: i32) -> (i32, i32, i32) {
    %c0_i32 = arith.constant 0 : i32
    %c0_i32_0 = arith.constant 0 : i32
    %c0_i32_1 = arith.constant 0 : i32
    return %arg0, %c0_i32, %c0_i32_0 : i32, i32, i32
  }
}

</mosaic_0001>

<bundles_post_ra>
// kernel: forward.1
= control target key start
LH: loop header
LB: loop body
LE: loop exit
PB: predicated region body
PF: predicated region fallthrough
CT: control target
= control target key end

     0   :  { %s6506_s0 = inlined_call_operand.vmem [shape: f32[2,72,8], index: 0, kind: input, shape index: {}]   ;;  %s6507_s1 = inlined_call_operand.hbm [shape: f32[8,128], index: 1, kind: input, shape index: {}]   ;;  %s6508_s2 = inlined_call_operand.hbm [shape: f32[1,128], index: 2, kind: input, shape index: {}]   ;;  %s6509_s3 = inlined_call_operand.hbm [shape: f32[128,128], index: 3, kind: input, shape index: {}]   ;;  %s6510_s4 = inlined_call_operand.hbm [shape: f32[1,128], index: 4, kind: input, shape index: {}]   ;;  %s6511_s5 = inlined_call_operand.hbm [shape: f32[128,128], index: 5, kind: input, shape index: {}]   ;;  %s6512_s6 = inlined_call_operand.hbm [shape: f32[1,128], index: 6, kind: input, shape index: {}]   ;;  %s6513_s7 = inlined_call_operand.hbm [shape: bf16[72,72], index: 7, kind: input, shape index: {}]   ;;  %s6514_s8 = inlined_call_operand.hbm [shape: bf16[72,72], index: 8, kind: input, shape index: {}]   ;;  %s6515_s9 = inlined_call_operand.hbm [shape: f32[1152,512], index: 9, kind: input, shape index: {}]   ;;  %s6516_s10 = inlined_call_operand.hbm [shape: f32[1,512], index: 10, kind: input, shape index: {}]   ;;  %s6517_s11 = inlined_call_operand.hbm [shape: f32[512,256], index: 11, kind: input, shape index: {}]   ;;  %s6518_s12 = inlined_call_operand.hbm [shape: f32[1,256], index: 12, kind: input, shape index: {}]   ;;  %s6519_s13 = inlined_call_operand.hbm [shape: f32[256,128], index: 13, kind: input, shape index: {}]   ;;  %s6520_s14 = inlined_call_operand.hbm [shape: f32[1,128], index: 14, kind: input, shape index: {}]   ;;  %s6521_s15 = inlined_call_operand.vmem [shape: f32[2,8,128], index: 15, kind: output, shape index: {}]  }
   0x1   :  { %6529 = sst [smem:[#allocation33_spill]] %s6506_s0 }
   0x2   :  { %6530 = sst [smem:[#allocation34_spill]] %s6508_s2 }
   0x3   :  { %6531 = sst [smem:[#allocation35_spill]] %s6510_s4 }
   0x4   :  { %6532 = sst [smem:[#allocation36_spill]] %s6512_s6 }
   0x5   :  { %6533 = sst [smem:[#allocation37_spill]] %s6521_s15 }
   0x6   :  { %20 = vsyncpa [#allocation3], 0 }
   0x7   :  { %21 = vsyncpa [#allocation5], 0 }
   0x8   :  { %22 = vsyncpa [#allocation8], 0 }
   0x9   :  { %23 = vsyncpa [#allocation11], 0 }
   0xa   :  { %24 = vsyncpa [#allocation14], 0 }
   0xb   :  { %25 = vsyncpa [#allocation17], 0 }
   0xc   :  { %26 = vsyncpa [#allocation20], 0 }
   0xd   :  { %27 = vsyncpa [#allocation23], 0  ;;  %s5718_s18 = smov 0  }
   0xe LB: > { %6534 = sst [smem:[#allocation32_spill]] %s5611_s18  ;;  %s5613_s19 = smov [#allocation4]   ;;  %s5611_s18 = sphi %s5718_s18, %s33_s18  }
   0xf   : > { %s408_s20 = sshll.u32 %s5613_s19, 4  ;;  %s5724_s21 = sadd.s32 4294967295, %s5611_s18   ;;  %s5729_s20 = int_to_ptr.vmem [resolvable:$true] %s408_s20 }
  0x10   : > { %p3662_p0 = scmp.ge.s32.totalorder %s5611_s18, 1  ;;  %p384_p1 = scmp.lt.s32.totalorder %s5611_s18, 3 }
  0x11   : > { %p6523_p2 = scmp.eq.s32.totalorder %s5724_s21, 0  ;;  %s5614_s23 = smov [#allocation7]  }
  0x12   : > { %p5731_p3 = pnand %p3662_p0, %p384_p1  ;;  %s432_s24 = sshll.u32 %s5614_s23, 4  ;;  %s5737_s24 = int_to_ptr.vmem [resolvable:$true] %s432_s24 }
  0x13   : > { %s5615_s25 = smov [#allocation10]   ;;  %s5616_s28 = smov [#allocation13]  }
  0x14   : > { %s6535_s22 = scalar_select %p5731_p3, 1, 0 }
  0x15   : > { %p5023_p4 = pneg %p5731_p3  ;;  %s456_s26 = sshll.u32 %s5615_s25, 4  ;;  %s5745_s26 = int_to_ptr.vmem [resolvable:$true] %s456_s26 }
  0x16   : > { %s5747_s29 = sshll.u32 %s5616_s28, 4  ;;  %s6537_s2 = sld [smem:[#allocation34_spill]]  ;;  %s480_s29 = int_to_ptr.vmem [resolvable:$true] %s5747_s29 }
  0x17   : > { %p5741_p5 = pnand %p6523_p2, %p5023_p4 }
  0x19   : > { %p5757_p7 = pneg %p5741_p5 }
  0x1c   : > { %s5181_s17 = scalar_lea.hbm %s6537_s2, 16 }
  0x1d   : > { %p5182_p6 = scmp.ne.s32.totalorder %s6537_s2, %s5181_s17  ;;  %p5188_p10 = scmp.lt.u32.totalorder %s5181_s17, %s6537_s2 }
  0x1f   : > { %p5184_p8 = pnand %p5757_p7, %p5182_p6 }
  0x21   : > { %p5185_p9 = pneg %p5184_p8 }
  0x23   : > { %p5190_p11 = pnand %p5188_p10, %p5185_p9 }
  0x25   : > { %5193 = shalt.err (!%p5190_p11)
}
  0x26   : > { %s5194_s30 = scalar_lea.vmem %s5729_s20, 16  ;;  %s5201_s16 = scalar_lea.vmem %s5729_s20, 32 }
  0x27   : > { %p5195_p12 = scmp.ne.s32.totalorder %s5729_s20, %s5194_s30  ;;  %p5202_p1 = scmp.lt.s32.totalorder %s5729_s20, %s5729_s20 }
  0x28   : > { %p5203_p4 = scmp.lt.s32.totalorder %s5201_s16, %s5194_s30 }
  0x29   : > { %p5197_p13 = pnand %p5195_p12, %p5757_p7 }
  0x2a   : > { %p5204_p6 = por %p5203_p4, %p5202_p1 }
  0x2b   : > { %p5198_p0 = pneg %p5197_p13 }
  0x2d   : > { %p5205_p8 = pnand %p5204_p6, %p5198_p0 }
  0x2f   : > { %5208 = shalt.err (!%p5205_p8)
}
  0x30   : > { %5029 = dma.hbm_to_vmem [thread:$0]  (!%p5741_p5), %s6537_s2, 16, %s5729_s20, [#allocation5]  }
  0x31   : > { %s6539_s4 = sld [smem:[#allocation35_spill]] }
  0x37   : > { %s5209_s28 = scalar_lea.hbm %s6539_s4, 16 }
  0x38   : > { %p5210_p9 = scmp.ne.s32.totalorder %s6539_s4, %s5209_s28  ;;  %p5216_p12 = scmp.lt.u32.totalorder %s5209_s28, %s6539_s4 }
  0x3a   : > { %p5212_p10 = pnand %p5210_p9, %p5757_p7 }
  0x3c   : > { %p5213_p11 = pneg %p5212_p10 }
  0x3e   : > { %p5218_p13 = pnand %p5216_p12, %p5213_p11 }
  0x40   : > { %5221 = shalt.err (!%p5218_p13)
}
  0x41   : > { %s5222_s20 = scalar_lea.vmem %s5737_s24, 16  ;;  %s5229_s0 = scalar_lea.vmem %s5737_s24, 32 }
  0x42   : > { %p5223_p0 = scmp.ne.s32.totalorder %s5737_s24, %s5222_s20  ;;  %p5230_p6 = scmp.lt.s32.totalorder %s5737_s24, %s5737_s24 }
  0x43   : > { %p5231_p8 = scmp.lt.s32.totalorder %s5229_s0, %s5222_s20 }
  0x44   : > { %p5225_p1 = pnand %p5223_p0, %p5757_p7 }
  0x45   : > { %p5232_p9 = por %p5231_p8, %p5230_p6 }
  0x46   : > { %p5226_p4 = pneg %p5225_p1 }
  0x48   : > { %p5233_p10 = pnand %p5232_p9, %p5226_p4 }
  0x4a   : > { %5236 = shalt.err (!%p5233_p10)
}
  0x4b   : > { %5035 = dma.hbm_to_vmem [thread:$0]  (!%p5741_p5), %s6539_s4, 16, %s5737_s24, [#allocation8]  }
  0x4c   : > { %s6540_s6 = sld [smem:[#allocation36_spill]] }
  0x52   : > { %s5237_s23 = scalar_lea.hbm %s6540_s6, 16 }
  0x53   : > { %p5238_p11 = scmp.ne.s32.totalorder %s6540_s6, %s5237_s23  ;;  %p5244_p0 = scmp.lt.u32.totalorder %s5237_s23, %s6540_s6 }
  0x55   : > { %p5240_p12 = pnand %p5238_p11, %p5757_p7 }
  0x57   : > { %p5241_p13 = pneg %p5240_p12 }
  0x59   : > { %p5246_p1 = pnand %p5244_p0, %p5241_p13 }
  0x5b   : > { %5249 = shalt.err (!%p5246_p1)
}
  0x5c   : > { %s5250_s24 = scalar_lea.vmem %s5745_s26, 16  ;;  %s5257_s0 = scalar_lea.vmem %s5745_s26, 32 }
  0x5d   : > { %p5251_p4 = scmp.ne.s32.totalorder %s5745_s26, %s5250_s24  ;;  %p5258_p9 = scmp.lt.s32.totalorder %s5745_s26, %s5745_s26 }
  0x5e   : > { %p5259_p10 = scmp.lt.s32.totalorder %s5257_s0, %s5250_s24 }
  0x5f   : > { %p5253_p6 = pnand %p5251_p4, %p5757_p7 }
  0x60   : > { %p5260_p11 = por %p5259_p10, %p5258_p9 }
  0x61   : > { %p5254_p8 = pneg %p5253_p6 }
  0x63   : > { %p5261_p12 = pnand %p5260_p11, %p5254_p8 }
  0x65   : > { %5264 = shalt.err (!%p5261_p12)
}
  0x66   : > { %5041 = dma.hbm_to_vmem [thread:$0]  (!%p5741_p5), %s6540_s6, 16, %s5745_s26, [#allocation11]  }
  0x67   : > { %s5265_s23 = scalar_lea.hbm %s6514_s8, 576 }
  0x68   : > { %p5266_p13 = scmp.ne.s32.totalorder %s6514_s8, %s5265_s23  ;;  %p5272_p4 = scmp.lt.u32.totalorder %s5265_s23, %s6514_s8 }
  0x6a   : > { %p5268_p0 = pnand %p5266_p13, %p5757_p7 }
  0x6c   : > { %p5269_p1 = pneg %p5268_p0 }
  0x6e   : > { %p5274_p6 = pnand %p5272_p4, %p5269_p1 }
  0x70   : > { %5277 = shalt.err (!%p5274_p6)
}
  0x71   : > { %s5278_s24 = scalar_lea.vmem %s480_s29, 576  ;;  %p5286_p11 = scmp.lt.s32.totalorder %s480_s29, %s480_s29 }
  0x72   : > { %p5279_p8 = scmp.ne.s32.totalorder %s480_s29, %s5278_s24  ;;  %p5287_p12 = scmp.lt.s32.totalorder %s5278_s24, %s5278_s24 }
  0x74   : > { %p5281_p9 = pnand %p5279_p8, %p5757_p7  ;;  %p5288_p2 = por %p5287_p12, %p5286_p11 }
  0x76   : > { %p5282_p10 = pneg %p5281_p9 }
  0x78   : > { %p5289_p3 = pnand %p5288_p2, %p5282_p10 }
  0x7a   : > { %5292 = shalt.err (!%p5289_p3)
}
  0x7b   : > { %s6525_s26 = smov 64   ;;  %s6526_s0 = smov 4  }
  0x7c   : > { %5047 = dma.hbm_to_vmem [thread:$0]  (!%p5741_p5), %s6514_s8, 576, %s480_s29, [#allocation14], %s6525_s26, %s6525_s26, %s6526_s0  }
  0x7d   : > { %s5619_s17 = smov [#allocation16]   ;;  %s5620_s23 = smov [#allocation19]  }
  0x7e   : > { %s506_s19 = sshll.u32 %s5619_s17, 4  ;;  %s530_s28 = sshll.u32 %s5620_s23, 4  ;;  %s507_s19 = int_to_ptr.vmem [resolvable:$true] %s506_s19  ;;  %s531_s28 = int_to_ptr.vmem [resolvable:$true] %s530_s28 }
  0x7f   : > { %s5293_s20 = scalar_lea.hbm %s6516_s10, 64 }
  0x80   : > { %p5294_p2 = scmp.ne.s32.totalorder %s6516_s10, %s5293_s20  ;;  %p5300_p0 = scmp.lt.u32.totalorder %s5293_s20, %s6516_s10 }
  0x82   : > { %p5296_p3 = pnand %p5294_p2, %p5757_p7 }
  0x84   : > { %p5297_p13 = pneg %p5296_p3 }
  0x86   : > { %p5302_p1 = pnand %p5300_p0, %p5297_p13 }
  0x88   : > { %5305 = shalt.err (!%p5302_p1)
}
  0x89   : > { %s5306_s29 = scalar_lea.vmem %s507_s19, 64  ;;  %p5314_p9 = scmp.lt.s32.totalorder %s507_s19, %s507_s19 }
  0x8a   : > { %p5307_p4 = scmp.ne.s32.totalorder %s507_s19, %s5306_s29  ;;  %p5315_p10 = scmp.lt.s32.totalorder %s5306_s29, %s5306_s29 }
  0x8c   : > { %p5309_p6 = pnand %p5307_p4, %p5757_p7  ;;  %p5316_p11 = por %p5315_p10, %p5314_p9 }
  0x8e   : > { %p5310_p8 = pneg %p5309_p6 }
  0x90   : > { %p5317_p12 = pnand %p5316_p11, %p5310_p8 }
  0x92   : > { %5320 = shalt.err (!%p5317_p12)
}
  0x93   : > { %5053 = dma.hbm_to_vmem [thread:$0]  (!%p5741_p5), %s6516_s10, 64, %s507_s19, [#allocation17]  }
  0x94   : > { %s5321_s18 = scalar_lea.hbm %s6518_s12, 32 }
  0x95   : > { %p5322_p2 = scmp.ne.s32.totalorder %s6518_s12, %s5321_s18  ;;  %p5328_p0 = scmp.lt.u32.totalorder %s5321_s18, %s6518_s12 }
  0x97   : > { %p5324_p3 = pnand %p5322_p2, %p5757_p7 }
  0x99   : > { %p5325_p13 = pneg %p5324_p3 }
  0x9b   : > { %p5330_p1 = pnand %p5328_p0, %p5325_p13 }
  0x9d   : > { %5333 = shalt.err (!%p5330_p1)
}
  0x9e   : > { %s5334_s20 = scalar_lea.vmem %s531_s28, 32  ;;  %p5342_p9 = scmp.lt.s32.totalorder %s531_s28, %s531_s28 }
  0x9f   : > { %p5335_p4 = scmp.ne.s32.totalorder %s531_s28, %s5334_s20  ;;  %p5343_p10 = scmp.lt.s32.totalorder %s5334_s20, %s5334_s20 }
  0xa1   : > { %p5337_p6 = pnand %p5335_p4, %p5757_p7  ;;  %p5344_p11 = por %p5343_p10, %p5342_p9 }
  0xa3   : > { %p5338_p8 = pneg %p5337_p6 }
  0xa5   : > { %p5345_p12 = pnand %p5344_p11, %p5338_p8 }
  0xa7   : > { %5348 = shalt.err (!%p5345_p12)
}
  0xa8   : > { %5059 = dma.hbm_to_vmem [thread:$0]  (!%p5741_p5), %s6518_s12, 32, %s531_s28, [#allocation20]  }
  0xa9   : > { %s5621_s29 = smov [#allocation2]   ;;  %s5622_s15 = smov [#allocation6]  }
  0xaa   : > { %s397_s2 = sshll.u32 %s5621_s29, 4  ;;  %s418_s4 = sshll.u32 %s5622_s15, 4  ;;  %s398_s2 = int_to_ptr.vmem [resolvable:$true] %s397_s2  ;;  %s419_s4 = int_to_ptr.vmem [resolvable:$true] %s418_s4 }
  0xab   : > { %s5349_s17 = scalar_lea.hbm %s6507_s1, 128 }
  0xac   : > { %p5350_p2 = scmp.ne.s32.totalorder %s6507_s1, %s5349_s17  ;;  %p5356_p0 = scmp.lt.u32.totalorder %s5349_s17, %s6507_s1 }
  0xae   : > { %p5352_p3 = pnand %p5350_p2, %p5757_p7 }
  0xb0   : > { %p5353_p13 = pneg %p5352_p3 }
  0xb2   : > { %p5358_p1 = pnand %p5356_p0, %p5353_p13 }
  0xb4   : > { %5361 = shalt.err (!%p5358_p1)
}
  0xb5   : > { %s5362_s28 = scalar_lea.vmem %s398_s2, 128  ;;  %p5370_p9 = scmp.lt.s32.totalorder %s398_s2, %s398_s2 }
  0xb6   : > { %p5363_p4 = scmp.ne.s32.totalorder %s398_s2, %s5362_s28  ;;  %p5371_p10 = scmp.lt.s32.totalorder %s5362_s28, %s5362_s28 }
  0xb8   : > { %p5365_p6 = pnand %p5363_p4, %p5757_p7  ;;  %p5372_p11 = por %p5371_p10, %p5370_p9 }
  0xba   : > { %p5366_p8 = pneg %p5365_p6 }
  0xbc   : > { %p5373_p12 = pnand %p5372_p11, %p5366_p8 }
  0xbe   : > { %5376 = shalt.err (!%p5373_p12)
}
  0xbf   : > { %5026 = dma.hbm_to_vmem [thread:$0]  (!%p5741_p5), %s6507_s1, 128, %s398_s2, [#allocation3]  }
  0xc0   : > { %s5377_s6 = scalar_lea.hbm %s6509_s3, 2048 }
  0xc1   : > { %p5378_p2 = scmp.ne.s32.totalorder %s6509_s3, %s5377_s6  ;;  %p5384_p0 = scmp.lt.u32.totalorder %s5377_s6, %s6509_s3 }
  0xc3   : > { %p5380_p3 = pnand %p5378_p2, %p5757_p7 }
  0xc5   : > { %p5381_p13 = pneg %p5380_p3 }
  0xc7   : > { %p5386_p1 = pnand %p5384_p0, %p5381_p13 }
  0xc9   : > { %5389 = shalt.err (!%p5386_p1)
}
  0xca   : > { %s5390_s16 = scalar_lea.vmem %s419_s4, 2048  ;;  %p5398_p9 = scmp.lt.s32.totalorder %s419_s4, %s419_s4 }
  0xcb   : > { %p5391_p4 = scmp.ne.s32.totalorder %s419_s4, %s5390_s16  ;;  %p5399_p10 = scmp.lt.s32.totalorder %s5390_s16, %s5390_s16 }
  0xcd   : > { %p5393_p6 = pnand %p5391_p4, %p5757_p7  ;;  %p5400_p11 = por %p5399_p10, %p5398_p9 }
  0xcf   : > { %p5394_p8 = pneg %p5393_p6 }
  0xd1   : > { %p5401_p12 = pnand %p5400_p11, %p5394_p8 }
  0xd3   : > { %5404 = shalt.err (!%p5401_p12)
}
  0xd4   : > { %s6527_s2 = smov 128   ;;  %s6528_s20 = smov 8  }
  0xd5   : > { %5032 = dma.hbm_to_vmem [thread:$0]  (!%p5741_p5), %s6509_s3, 2048, %s419_s4, [#allocation5], %s6527_s2, %s6527_s2, %s6528_s20  }
  0xd6   : > { %s5625_s24 = smov [#allocation9]   ;;  %s5626_s15 = smov [#allocation12]  }
  0xd7   : > { %s442_s29 = sshll.u32 %s5625_s24, 4  ;;  %s466_s6 = sshll.u32 %s5626_s15, 4  ;;  %s443_s29 = int_to_ptr.vmem [resolvable:$true] %s442_s29  ;;  %s467_s6 = int_to_ptr.vmem [resolvable:$true] %s466_s6 }
  0xd8   : > { %s5405_s23 = scalar_lea.hbm %s6511_s5, 2048 }
  0xd9   : > { %p5406_p2 = scmp.ne.s32.totalorder %s6511_s5, %s5405_s23  ;;  %p5412_p0 = scmp.lt.u32.totalorder %s5405_s23, %s6511_s5 }
  0xdb   : > { %p5408_p3 = pnand %p5406_p2, %p5757_p7 }
  0xdd   : > { %p5409_p13 = pneg %p5408_p3 }
  0xdf   : > { %p5414_p1 = pnand %p5412_p0, %p5409_p13 }
  0xe1   : > { %5417 = shalt.err (!%p5414_p1)
}
  0xe2   : > { %s5418_s4 = scalar_lea.vmem %s443_s29, 2048  ;;  %p5426_p9 = scmp.lt.s32.totalorder %s443_s29, %s443_s29 }
  0xe3   : > { %p5419_p4 = scmp.ne.s32.totalorder %s443_s29, %s5418_s4  ;;  %p5427_p10 = scmp.lt.s32.totalorder %s5418_s4, %s5418_s4 }
  0xe5   : > { %p5421_p6 = pnand %p5419_p4, %p5757_p7  ;;  %p5428_p11 = por %p5427_p10, %p5426_p9 }
  0xe7   : > { %p5422_p8 = pneg %p5421_p6 }
  0xe9   : > { %p5429_p12 = pnand %p5428_p11, %p5422_p8 }
  0xeb   : > { %5432 = shalt.err (!%p5429_p12)
}
  0xec   : > { %5038 = dma.hbm_to_vmem [thread:$0]  (!%p5741_p5), %s6511_s5, 2048, %s443_s29, [#allocation8], %s6527_s2, %s6527_s2, %s6528_s20  }
  0xed   : > { %s5433_s24 = scalar_lea.hbm %s6513_s7, 576 }
  0xee   : > { %p5434_p2 = scmp.ne.s32.totalorder %s6513_s7, %s5433_s24  ;;  %p5440_p0 = scmp.lt.u32.totalorder %s5433_s24, %s6513_s7 }
  0xf0   : > { %p5436_p3 = pnand %p5434_p2, %p5757_p7 }
  0xf2   : > { %p5437_p13 = pneg %p5436_p3 }
  0xf4   : > { %p5442_p1 = pnand %p5440_p0, %p5437_p13 }
  0xf6   : > { %5445 = shalt.err (!%p5442_p1)
}
  0xf7   : > { %s5446_s30 = scalar_lea.vmem %s467_s6, 576  ;;  %p5454_p9 = scmp.lt.s32.totalorder %s467_s6, %s467_s6 }
  0xf8   : > { %p5447_p4 = scmp.ne.s32.totalorder %s467_s6, %s5446_s30  ;;  %p5455_p10 = scmp.lt.s32.totalorder %s5446_s30, %s5446_s30 }
  0xfa   : > { %p5449_p6 = pnand %p5447_p4, %p5757_p7  ;;  %p5456_p11 = por %p5455_p10, %p5454_p9 }
  0xfc   : > { %p5450_p8 = pneg %p5449_p6 }
  0xfe   : > { %p5457_p12 = pnand %p5456_p11, %p5450_p8 }
 0x100   : > { %5460 = shalt.err (!%p5457_p12)
}
 0x101   : > { %s6541_s29 = smov 4   ;;  %s6542_s16 = smov 64  }
 0x102   : > { %5044 = dma.hbm_to_vmem [thread:$0]  (!%p5741_p5), %s6513_s7, 576, %s467_s6, [#allocation11], %s6542_s16, %s6542_s16, %s6541_s29  }
 0x103   : > { %s5627_s0 = smov [#allocation15]   ;;  %s5461_s15 = scalar_lea.hbm %s6515_s9, 73728 }
 0x104   : > { %s492_s28 = sshll.u32 %s5627_s0, 4  ;;  %p5462_p2 = scmp.ne.s32.totalorder %s6515_s9, %s5461_s15  ;;  %s493_s28 = int_to_ptr.vmem [resolvable:$true] %s492_s28 }
 0x105   : > { %p5468_p0 = scmp.lt.u32.totalorder %s5461_s15, %s6515_s9 }
 0x106   : > { %p5464_p3 = pnand %p5462_p2, %p5757_p7 }
 0x108   : > { %p5465_p13 = pneg %p5464_p3 }
 0x10a   : > { %p5470_p1 = pnand %p5468_p0, %p5465_p13 }
 0x10c   : > { %5473 = shalt.err (!%p5470_p1)
}
 0x10d   : > { %s5474_s6 = scalar_lea.vmem %s493_s28, 73728  ;;  %p5482_p9 = scmp.lt.s32.totalorder %s493_s28, %s493_s28 }
 0x10e   : > { %p5475_p4 = scmp.ne.s32.totalorder %s493_s28, %s5474_s6  ;;  %p5483_p10 = scmp.lt.s32.totalorder %s5474_s6, %s5474_s6 }
 0x110   : > { %p5477_p6 = pnand %p5475_p4, %p5757_p7  ;;  %p5484_p11 = por %p5483_p10, %p5482_p9 }
 0x112   : > { %p5478_p8 = pneg %p5477_p6 }
 0x114   : > { %p5485_p12 = pnand %p5484_p11, %p5478_p8 }
 0x116   : > { %5488 = shalt.err (!%p5485_p12)
}
 0x117   : > { %s5628_s29 = smov 512   ;;  %s5629_s16 = smov 32  }
 0x118   : > { %5050 = dma.hbm_to_vmem [thread:$0]  (!%p5741_p5), %s6515_s9, 73728, %s493_s28, [#allocation14], %s5628_s29, %s5628_s29, %s5629_s16  }
 0x119   : > { %s5630_s0 = smov [#allocation18]   ;;  %s5489_s18 = scalar_lea.hbm %s6517_s11, 16384 }
 0x11a   : > { %s516_s19 = sshll.u32 %s5630_s0, 4  ;;  %p5490_p2 = scmp.ne.s32.totalorder %s6517_s11, %s5489_s18  ;;  %s517_s19 = int_to_ptr.vmem [resolvable:$true] %s516_s19 }
 0x11b   : > { %p5496_p0 = scmp.lt.u32.totalorder %s5489_s18, %s6517_s11 }
 0x11c   : > { %p5492_p3 = pnand %p5490_p2, %p5757_p7 }
 0x11e   : > { %p5493_p13 = pneg %p5492_p3 }
 0x120   : > { %p5498_p1 = pnand %p5496_p0, %p5493_p13 }
 0x122   : > { %5501 = shalt.err (!%p5498_p1)
}
 0x123   : > { %s5502_s28 = scalar_lea.vmem %s517_s19, 16384  ;;  %p5510_p9 = scmp.lt.s32.totalorder %s517_s19, %s517_s19 }
 0x124   : > { %p5503_p4 = scmp.ne.s32.totalorder %s517_s19, %s5502_s28  ;;  %p5511_p10 = scmp.lt.s32.totalorder %s5502_s28, %s5502_s28 }
 0x126   : > { %p5505_p6 = pnand %p5503_p4, %p5757_p7  ;;  %p5512_p11 = por %p5511_p10, %p5510_p9 }
 0x128   : > { %p5506_p8 = pneg %p5505_p6 }
 0x12a   : > { %p5513_p12 = pnand %p5512_p11, %p5506_p8 }
 0x12c   : > { %5516 = shalt.err (!%p5513_p12)
}
 0x12d   : > { %s5631_s29 = smov 256   ;;  %s5632_s16 = smov 16  }
 0x12e   : > { %5056 = dma.hbm_to_vmem [thread:$0]  (!%p5741_p5), %s6517_s11, 16384, %s517_s19, [#allocation17], %s5631_s29, %s5631_s29, %s5632_s16  }
 0x12f   : > { %s5633_s0 = smov [#allocation21]   ;;  %s5634_s15 = smov [#allocation22]  }
 0x130   : > { %s540_s24 = sshll.u32 %s5633_s0, 4  ;;  %s554_s18 = sshll.u32 %s5634_s15, 4  ;;  %s541_s24 = int_to_ptr.vmem [resolvable:$true] %s540_s24  ;;  %s555_s18 = int_to_ptr.vmem [resolvable:$true] %s554_s18 }
 0x131   : > { %s5517_s30 = scalar_lea.hbm %s6519_s13, 4096 }
 0x132   : > { %p5518_p2 = scmp.ne.s32.totalorder %s6519_s13, %s5517_s30  ;;  %p5524_p0 = scmp.lt.u32.totalorder %s5517_s30, %s6519_s13 }
 0x134   : > { %p5520_p3 = pnand %p5518_p2, %p5757_p7 }
 0x136   : > { %p5521_p13 = pneg %p5520_p3 }
 0x138   : > { %p5526_p1 = pnand %p5524_p0, %p5521_p13 }
 0x13a   : > { %5529 = shalt.err (!%p5526_p1)
}
 0x13b   : > { %s5530_s19 = scalar_lea.vmem %s541_s24, 4096  ;;  %p5538_p9 = scmp.lt.s32.totalorder %s541_s24, %s541_s24 }
 0x13c   : > { %p5531_p4 = scmp.ne.s32.totalorder %s541_s24, %s5530_s19  ;;  %p5539_p10 = scmp.lt.s32.totalorder %s5530_s19, %s5530_s19 }
 0x13e   : > { %p5533_p6 = pnand %p5531_p4, %p5757_p7  ;;  %p5540_p11 = por %p5539_p10, %p5538_p9 }
 0x140   : > { %p5534_p8 = pneg %p5533_p6 }
 0x142   : > { %p5541_p12 = pnand %p5540_p11, %p5534_p8 }
 0x144   : > { %5544 = shalt.err (!%p5541_p12)
}
 0x145   : > { %s6543_s29 = smov 8   ;;  %s6544_s16 = smov 128  }
 0x146   : > { %5062 = dma.hbm_to_vmem [thread:$0]  (!%p5741_p5), %s6519_s13, 4096, %s541_s24, [#allocation20], %s6544_s16, %s6544_s16, %s6543_s29  }
 0x147   : > { %s5545_s0 = scalar_lea.hbm %s6520_s14, 16 }
 0x148   : > { %p5546_p2 = scmp.ne.s32.totalorder %s6520_s14, %s5545_s0  ;;  %p5552_p0 = scmp.lt.u32.totalorder %s5545_s0, %s6520_s14 }
 0x14a   : > { %p5548_p3 = pnand %p5546_p2, %p5757_p7 }
 0x14c   : > { %p5549_p13 = pneg %p5548_p3 }
 0x14e   : > { %p5554_p1 = pnand %p5552_p0, %p5549_p13 }
 0x150   : > { %5557 = shalt.err (!%p5554_p1)
}
 0x151   : > { %s5558_s6 = scalar_lea.vmem %s555_s18, 16  ;;  %s5565_s24 = scalar_lea.vmem %s555_s18, 32 }
 0x152   : > { %p5559_p4 = scmp.ne.s32.totalorder %s555_s18, %s5558_s6  ;;  %p5566_p9 = scmp.lt.s32.totalorder %s555_s18, %s555_s18 }
 0x153   : > { %p5567_p10 = scmp.lt.s32.totalorder %s5565_s24, %s5558_s6 }
 0x154   : > { %p5561_p6 = pnand %p5559_p4, %p5757_p7 }
 0x155   : > { %p5568_p11 = por %p5567_p10, %p5566_p9 }
 0x156   : > { %p5562_p8 = pneg %p5561_p6 }
 0x158   : > { %p5569_p12 = pnand %p5568_p11, %p5562_p8 }
 0x15a   : > { %5572 = shalt.err (!%p5569_p12)
}
 0x15b   : > { %5065 = dma.hbm_to_vmem [thread:$0]  (!%p5741_p5), %s6520_s14, 16, %s555_s18, [#allocation23]  }
 0x15c   : > { %p6545_p2 = scmp.ne.s32.totalorder %s6535_s22, 0 }
 0x15d   : > { %p6546_p3 = scmp.eq.s32.totalorder (!%p6545_p2), %s5724_s21, 0 }
 0x15e   : > { %575 = sbr.rel (%p6545_p2) target bundleno = 2089 (0x829), region = 80 }
 0x165   : > { %5578 = dma.done.wait (%p6546_p3), [#allocation3], 128   ;;  %p6547_p7 = pmov %p6546_p3 }
 0x166   : > { %p6548_p13 = pmov %p6546_p3 }
 0x167   : > { %5580 = vsyncadd (%p6547_p7), [#allocation3], 4294967168 }
 0x168   : > { %5582 = dma.done.wait (%p6548_p13), [#allocation5], 2064   ;;  %p6549_p0 = pmov %p6546_p3 }
 0x16a   : > { %5584 = vsyncadd (%p6549_p0), [#allocation5], 4294965232  ;;  %p6550_p1 = pmov %p6549_p0 }
 0x16b   : > { %p6551_p5 = pmov %p6549_p0 }
 0x16c   : > { %5586 = dma.done.wait (%p6550_p1), [#allocation8], 2064  }
 0x16d   : > { %5588 = vsyncadd (%p6551_p5), [#allocation8], 4294965232  ;;  %p6552_p4 = pmov %p6549_p0 }
 0x16e   : > { %p6553_p6 = pmov %p6549_p0 }
 0x16f   : > { %5590 = dma.done.wait (%p6552_p4), [#allocation11], 592  }
 0x170   : > { %5592 = vsyncadd (%p6553_p6), [#allocation11], 4294966704  ;;  %p6554_p8 = pmov %p6549_p0 }
 0x171   : > { %p6555_p9 = pmov %p6549_p0 }
 0x172   : > { %5594 = dma.done.wait (%p6554_p8), [#allocation14], 74304  }
 0x173   : > { %5596 = vsyncadd (%p6555_p9), [#allocation14], 4294892992  ;;  %p6556_p10 = pmov %p6549_p0 }
 0x174   : > { %p6557_p11 = pmov %p6549_p0 }
 0x175   : > { %5598 = dma.done.wait (%p6556_p10), [#allocation17], 16448  }
 0x176   : > { %5600 = vsyncadd (%p6557_p11), [#allocation17], 4294950848  ;;  %p6558_p12 = pmov %p6549_p0 }
 0x177   : > { %p6559_p2 = pmov %p6549_p0 }
 0x178   : > { %5602 = dma.done.wait (%p6558_p12), [#allocation20], 4128  }
 0x179   : > { %5604 = vsyncadd (%p6559_p2), [#allocation20], 4294963168  ;;  %p6560_p3 = pmov %p6549_p0 }
 0x17a   : > { %p6561_p7 = pmov %p6549_p0 }
 0x17b   : > { %5606 = dma.done.wait (%p6560_p3), [#allocation23], 16  }
 0x17c   : > { %5608 = vsyncadd (%p6561_p7), [#allocation23], 4294967280  ;;  %p674_p13 = scmp.lt.s32.totalorder %s5724_s21, 1  ;;  %v5635_v0 = vmov 0.0   ;;  %vm5636_vm0 = vmmov 0   ;;  %v5637_v1 = vmov 0.0|0.0  }
 0x17d   : > { %3897 = vmatprep.subr.mxu0 %v5635_v0  ;;  %3899 = vmatprep.mubr.msk.f32.mxu0 %vm5636_vm0, %v5635_v0  ;;  %s6562_s18 = sld [smem:[#allocation33_spill]]  ;;  %vm700_vm1 = vcmask 64512   ;;  %v692_v2 = vld [vmem:[#allocation2] sm:$0xff]  ;;  %v856_v5 = vld [vmem:[#allocation6] sm:$0xff]  ;;  %v857_v6 = vld [vmem:[#allocation6 + $0x8] sm:$0xff]  ;;  %vm1194_vm2 = vcmask 588800  }
 0x17e   : > { %s6566_s21 = smov (!%p674_p13, %s5724_s21), 1  ;;  %4182 = vmatprep.subr.bf16.mxu1 %v5637_v1  ;;  %4062 = vmatprep.mubr.msk.f32.mxu1 %vm5636_vm0, %v5635_v0  ;;  %v4135_v7 = vpack.c.bf16 %v857_v6, %v856_v5  ;;  %v858_v8 = vld [vmem:[#allocation6 + $0x10] sm:$0xff]  ;;  %v859_v9 = vld [vmem:[#allocation6 + $0x18] sm:$0xff]  ;;  %v860_v12 = vld [vmem:[#allocation6 + $0x20] sm:$0xff]  ;;  %s6563_s4 = sld [smem:[#allocation37_spill]] }
 0x17f   : > { %s4966_s22 = smul.u32 72, %s6566_s21  ;;  %3898 = vmatpush3.msra.mxu0 %v692_v2  ;;  %v4138_v11 = vpack.c.bf16 %v859_v9, %v858_v8  ;;  %v861_v13 = vld [vmem:[#allocation6 + $0x28] sm:$0xff]  ;;  %v862_v16 = vld [vmem:[#allocation6 + $0x30] sm:$0xff]  ;;  %v863_v17 = vld [vmem:[#allocation6 + $0x38] sm:$0xff]  ;;  %s3694_s16 = sshll.u32 %s6566_s21, 3 }
 0x180   : > { %4134 = vmatprep.subr.bf16.mxu0 %v5637_v1  ;;  %v4141_v15 = vpack.c.bf16 %v861_v13, %v860_v12  ;;  %v4144_v19 = vpack.c.bf16 %v863_v17, %v862_v16  ;;  %v864_v20 = vld [vmem:[#allocation6 + $0x40] sm:$0xff]  ;;  %v865_v21 = vld [vmem:[#allocation6 + $0x48] sm:$0xff]  ;;  %v866_v24 = vld [vmem:[#allocation6 + $0x50] sm:$0xff] }
 0x181   : > { %v4147_v23 = vpack.c.bf16 %v865_v21, %v864_v20  ;;  %v867_v25 = vld [vmem:[#allocation6 + $0x58] sm:$0xff]  ;;  %v868_v28 = vld [vmem:[#allocation6 + $0x60] sm:$0xff]  ;;  %v869_v29 = vld [vmem:[#allocation6 + $0x68] sm:$0xff] }
 0x182   : > { %v4150_v27 = vpack.c.bf16 %v867_v25, %v866_v24  ;;  %v4153_v31 = vpack.c.bf16 %v869_v29, %v868_v28  ;;  %v870_v33 = vld [vmem:[#allocation6 + $0x70] sm:$0xff]  ;;  %v871_v34 = vld [vmem:[#allocation6 + $0x78] sm:$0xff]  ;;  %v1007_v40 = vld [vmem:[#allocation9] sm:$0xff] }
 0x183   : > { %s6089_s29 = scalar_lea.vmem %s6562_s18, %s4966_s22  ;;  %v4156_v35 = vpack.c.bf16 %v871_v34, %v870_v33  ;;  %v6136_v36 = vld [vmem:[#allocation4] ss:$0 sm:$0xff]  ;;  %v1008_v41 = vld [vmem:[#allocation9 + $0x8] sm:$0xff]  ;;  %v1009_v48 = vld [vmem:[#allocation9 + $0x10] sm:$0xff] }
 0x184   : > { %v683_v3 = vld [vmem:[%s6089_s29] sm:$0xff]  ;;  %v684_v4 = vld [vmem:[%s6089_s29 + $0x8] sm:$0xff]  ;;  %v685_v10 = vld [vmem:[%s6089_s29 + $0x10] sm:$0xff]  ;;  %v4159_v44 = vpack.c.bf16 %v1008_v41, %v1007_v40  ;;  %s682_s26 = scalar_lea.vmem %s6563_s4, %s3694_s16 }
 0x185   : > { %3900 = vmatmul.mubr.msk.f32.vlgmr.msra.gmra.mrb[0].mxu0 %vm700_vm1, %v683_v3  ;;  %v686_v14 = vld [vmem:[%s6089_s29 + $0x18] sm:$0xff]  ;;  %v687_v18 = vld [vmem:[%s6089_s29 + $0x20] sm:$0xff]  ;;  %v688_v22 = vld [vmem:[%s6089_s29 + $0x28] sm:$0xff] }
 0x186   : > { %3902 = vmatprep.mubr.msk.f32.mxu0 %vm5636_vm0, %v5635_v0  ;;  %4136 = vmatpush3.bf16.msra.mxu0 %v4135_v7  ;;  %v689_v26 = vld [vmem:[%s6089_s29 + $0x30] sm:$0xff]  ;;  %v690_v30 = vld [vmem:[%s6089_s29 + $0x38] sm:$0xff]  ;;  %v691_v32 = vld [vmem:[%s6089_s29 + $0x40] sm:$0xff] }
 0x187   : > { %4137 = vmatprep.subr.bf16.mxu0 %v5637_v1  ;;  %v1010_v49 = vld [vmem:[#allocation9 + $0x18] sm:$0xff]  ;;  %v1011_v56 = vld [vmem:[#allocation9 + $0x20] sm:$0xff]  ;;  %v1012_v57 = vld [vmem:[#allocation9 + $0x28] sm:$0xff] }
 0x188   : > { %v4162_v52 = vpack.c.bf16 %v1010_v49, %v1009_v48  ;;  %v4165_v60 = vpack.c.bf16 %v1012_v57, %v1011_v56  ;;  %v1013_v2 = vld [vmem:[#allocation9 + $0x30] sm:$0xff]  ;;  %v1014_v3 = vld [vmem:[#allocation9 + $0x38] sm:$0xff] }
 0x189   : > { %3903 = vmatmul.mubr.msk.f32.gmra.mrb[2].mxu0 %vm700_vm1, %v684_v4  ;;  %v4168_v6 = vpack.c.bf16 %v1014_v3, %v1013_v2 }
 0x18a   : > { %3905 = vmatprep.mubr.msk.f32.mxu0 %vm5636_vm0, %v5635_v0  ;;  %4139 = vmatpush3.bf16.msra.mxu0 %v4138_v11  ;;  %v1016_v11 = vld [vmem:[#allocation9 + $0x48] sm:$0xff] }
 0x18b   : > { %4140 = vmatprep.subr.bf16.mxu0 %v5637_v1 }
 0x18d   : > { %3906 = vmatmul.mubr.msk.f32.gmra.mrb[4].mxu0 %vm700_vm1, %v685_v10  ;;  %v1015_v10 = vld [vmem:[#allocation9 + $0x40] sm:$0xff] }
 0x18e   : > { %3908 = vmatprep.mubr.msk.f32.mxu0 %vm5636_vm0, %v5635_v0  ;;  %4142 = vmatpush3.bf16.msra.mxu0 %v4141_v15 }
 0x18f   : > { %4143 = vmatprep.subr.bf16.mxu0 %v5637_v1 }
 0x191   : > { %3909 = vmatmul.mubr.msk.f32.gmra.mrb[6].mxu0 %vm700_vm1, %v686_v14  ;;  %v4171_v14 = vpack.c.bf16 %v1016_v11, %v1015_v10 }
 0x192   : > { %3911 = vmatprep.mubr.msk.f32.mxu0 %vm5636_vm0, %v5635_v0  ;;  %4145 = vmatpush3.bf16.msra.mxu0 %v4144_v19  ;;  %v1018_v19 = vld [vmem:[#allocation9 + $0x58] sm:$0xff] }
 0x193   : > { %4146 = vmatprep.subr.bf16.mxu0 %v5637_v1 }
 0x195   : > { %3912 = vmatmul.mubr.msk.f32.gmra.mrb[8].mxu0 %vm700_vm1, %v687_v18  ;;  %v1017_v18 = vld [vmem:[#allocation9 + $0x50] sm:$0xff] }
 0x196   : > { %3914 = vmatprep.mubr.msk.f32.mxu0 %vm5636_vm0, %v5635_v0  ;;  %4148 = vmatpush3.bf16.msra.mxu0 %v4147_v23 }
 0x197   : > { %4149 = vmatprep.subr.bf16.mxu0 %v5637_v1 }
 0x199   : > { %3915 = vmatmul.mubr.msk.f32.gmra.mrb[10].mxu0 %vm700_vm1, %v688_v22  ;;  %v4174_v22 = vpack.c.bf16 %v1018_v19, %v1017_v18 }
 0x19a   : > { %3917 = vmatprep.mubr.msk.f32.mxu0 %vm5636_vm0, %v5635_v0  ;;  %4151 = vmatpush3.bf16.msra.mxu0 %v4150_v27  ;;  %v1020_v27 = vld [vmem:[#allocation9 + $0x68] sm:$0xff] }
 0x19b   : > { %4152 = vmatprep.subr.bf16.mxu0 %v5637_v1 }
 0x19d   : > { %3918 = vmatmul.mubr.msk.f32.gmra.mrb[12].mxu0 %vm700_vm1, %v689_v26  ;;  %v1019_v26 = vld [vmem:[#allocation9 + $0x60] sm:$0xff] }
 0x19e   : > { %3920 = vmatprep.mubr.msk.f32.mxu0 %vm5636_vm0, %v5635_v0  ;;  %4154 = vmatpush3.bf16.msra.mxu0 %v4153_v31 }
 0x19f   : > { %4155 = vmatprep.subr.bf16.mxu0 %v5637_v1 }
 0x1a1   : > { %3921 = vmatmul.mubr.msk.f32.gmra.mrb[14].mxu0 %vm700_vm1, %v690_v30  ;;  %v4177_v30 = vpack.c.bf16 %v1020_v27, %v1019_v26 }
 0x1a2   : > { %3923 = vmatprep.mubr.msk.f32.mxu0 %vm5636_vm0, %v5635_v0  ;;  %4157 = vmatpush3.bf16.msra.mxu0 %v4156_v35 }
 0x1a3   : > { %4158 = vmatprep.subr.bf16.mxu0 %v5637_v1 }
 0x1a5   : > { %3924 = vmatmul.mubr.msk.f32.gmra.mrb[16].mxu0 %vm700_vm1, %v691_v32 }
 0x1a6   : > { %3958 = vmatprep.mubr.msk.f32.mxu0 %vm5636_vm0, %v5635_v0 }
 0x258   : > { %v794_v37 = vpop.f32.mrb[0].mxu0 }
 0x259   : > { %v795_v38 = vadd.f32 %v6136_v36, %v794_v37  ;;  %v3901_v39 = vpop.f32.mrb[1].mxu0 }
 0x25b   : > { %v838_v42 = vmul.f32 0.1, %v795_v38 }
 0x25c   : > { %v799_v43 = vpop.f32.mrb[2].mxu0 }
 0x25d   : > { %v847_v45 = vmax.f32 %v795_v38, %v838_v42  ;;  %v800_v46 = vadd.f32 %v6136_v36, %v799_v43  ;;  %v3904_v47 = vpop.f32.mrb[3].mxu0  ;;  %v1021_v42 = vld [vmem:[#allocation9 + $0x70] sm:$0xff]  ;;  %v1022_v43 = vld [vmem:[#allocation9 + $0x78] sm:$0xff] }
 0x25f   : > { %v839_v50 = vmul.f32 0.1, %v800_v46  ;;  %3959 = vmatmul.mubr.f32.vlgmr.msra.gmra.mrb[18].mxu0 %v847_v45 }
 0x260   : > { %v804_v51 = vpop.f32.mrb[4].mxu0  ;;  %3961 = vmatprep.mubr.msk.f32.mxu0 %vm5636_vm0, %v5635_v0  ;;  %4160 = vmatpush3.bf16.msra.mxu0 %v4159_v44  ;;  %v4180_v44 = vpack.c.bf16 %v1022_v43, %v1021_v42 }
 0x261   : > { %v848_v53 = vmax.f32 %v800_v46, %v839_v50  ;;  %v805_v54 = vadd.f32 %v6136_v36, %v804_v51  ;;  %v3907_v55 = vpop.f32.mrb[5].mxu0  ;;  %4161 = vmatprep.subr.bf16.mxu0 %v5637_v1 }
 0x263   : > { %v840_v58 = vmul.f32 0.1, %v805_v54  ;;  %3962 = vmatmul.mubr.f32.gmra.mrb[20].mxu0 %v848_v53 }
 0x264   : > { %v809_v59 = vpop.f32.mrb[6].mxu0  ;;  %3964 = vmatprep.mubr.msk.f32.mxu0 %vm5636_vm0, %v5635_v0  ;;  %4163 = vmatpush3.bf16.msra.mxu0 %v4162_v52 }
 0x265   : > { %v849_v61 = vmax.f32 %v805_v54, %v840_v58  ;;  %v810_v62 = vadd.f32 %v6136_v36, %v809_v59  ;;  %v3910_v63 = vpop.f32.mrb[7].mxu0  ;;  %4164 = vmatprep.subr.bf16.mxu0 %v5637_v1 }
 0x267   : > { %v841_v4 = vmul.f32 0.1, %v810_v62  ;;  %3965 = vmatmul.mubr.f32.gmra.mrb[22].mxu0 %v849_v61 }
 0x268   : > { %v814_v5 = vpop.f32.mrb[8].mxu0  ;;  %3967 = vmatprep.mubr.msk.f32.mxu0 %vm5636_vm0, %v5635_v0  ;;  %4166 = vmatpush3.bf16.msra.mxu0 %v4165_v60 }
 0x269   : > { %v850_v7 = vmax.f32 %v810_v62, %v841_v4  ;;  %v815_v8 = vadd.f32 %v6136_v36, %v814_v5  ;;  %v3913_v9 = vpop.f32.mrb[9].mxu0  ;;  %4167 = vmatprep.subr.bf16.mxu0 %v5637_v1 }
 0x26b   : > { %v842_v12 = vmul.f32 0.1, %v815_v8  ;;  %3968 = vmatmul.mubr.f32.gmra.mrb[24].mxu0 %v850_v7 }
 0x26c   : > { %v819_v13 = vpop.f32.mrb[10].mxu0  ;;  %3970 = vmatprep.mubr.msk.f32.mxu0 %vm5636_vm0, %v5635_v0  ;;  %4169 = vmatpush3.bf16.msra.mxu0 %v4168_v6 }
 0x26d   : > { %v851_v15 = vmax.f32 %v815_v8, %v842_v12  ;;  %v820_v16 = vadd.f32 %v6136_v36, %v819_v13  ;;  %v3916_v17 = vpop.f32.mrb[11].mxu0  ;;  %4170 = vmatprep.subr.bf16.mxu0 %v5637_v1 }
 0x26f   : > { %v843_v20 = vmul.f32 0.1, %v820_v16  ;;  %3971 = vmatmul.mubr.f32.gmra.mrb[26].mxu0 %v851_v15 }
 0x270   : > { %v824_v21 = vpop.f32.mrb[12].mxu0  ;;  %3973 = vmatprep.mubr.msk.f32.mxu0 %vm5636_vm0, %v5635_v0  ;;  %4172 = vmatpush3.bf16.msra.mxu0 %v4171_v14 }
 0x271   : > { %v852_v23 = vmax.f32 %v820_v16, %v843_v20  ;;  %v825_v24 = vadd.f32 %v6136_v36, %v824_v21  ;;  %v3919_v25 = vpop.f32.mrb[13].mxu0  ;;  %4173 = vmatprep.subr.bf16.mxu0 %v5637_v1 }
 0x273   : > { %v844_v28 = vmul.f32 0.1, %v825_v24  ;;  %3974 = vmatmul.mubr.f32.gmra.mrb[28].mxu0 %v852_v23 }
 0x274   : > { %v829_v29 = vpop.f32.mrb[14].mxu0  ;;  %3976 = vmatprep.mubr.msk.f32.mxu0 %vm5636_vm0, %v5635_v0  ;;  %4175 = vmatpush3.bf16.msra.mxu0 %v4174_v22 }
 0x275   : > { %v853_v31 = vmax.f32 %v825_v24, %v844_v28  ;;  %v830_v32 = vadd.f32 %v6136_v36, %v829_v29  ;;  %v3922_v33 = vpop.f32.mrb[15].mxu0  ;;  %4176 = vmatprep.subr.bf16.mxu0 %v5637_v1  ;;  %v3706_v28 = vld [vmem:[#allocation10] ss:$0 sm:$0xff] }
 0x277   : > { %v845_v34 = vmul.f32 0.1, %v830_v32  ;;  %3977 = vmatmul.mubr.f32.gmra.mrb[30].mxu0 %v853_v31 }
 0x278   : > { %v834_v35 = vpop.f32.mrb[16].mxu0  ;;  %3979 = vmatprep.mubr.msk.f32.mxu0 %vm5636_vm0, %v5635_v0  ;;  %4178 = vmatpush3.bf16.msra.mxu0 %v4177_v30 }
 0x279   : > { %v854_v37 = vmax.f32 %v830_v32, %v845_v34  ;;  %v835_v38 = vadd.f32 %v6136_v36, %v834_v35  ;;  %v3925_v39 = vpop.f32.mrb[17].mxu0  ;;  %4179 = vmatprep.subr.bf16.mxu0 %v5637_v1  ;;  %v3705_v36 = vld [vmem:[#allocation7] ss:$0 sm:$0xff] }
 0x27b   : > { %v846_v40 = vmul.f32 0.1, %v835_v38  ;;  %3980 = vmatmul.mubr.f32.gmra.mrb[32].mxu0 %v854_v37 }
 0x27c   : > { %3982 = vmatprep.mubr.msk.f32.mxu0 %vm5636_vm0, %v5635_v0  ;;  %4181 = vmatpush3.bf16.msra.mxu0 %v4180_v44 }
 0x27d   : > { %v855_v41 = vmax.f32 %v835_v38, %v846_v40  ;;  %4194 = vmatprep.subr.bf16.mxu0 %v5637_v1 }
 0x27f   : > { %3983 = vmatmul.mubr.f32.gmra.mrb[34].mxu0 %v855_v41 }
 0x280   : > { %4017 = vmatprep.mubr.msk.f32.mxu0 %vm5636_vm0, %v5635_v0 }
 0x332   : > { %v945_v45 = vpop.f32.mrb[18].mxu0 }
 0x333   : > { %v946_v46 = vadd.f32 %v3705_v36, %v945_v45  ;;  %v3960_v47 = vpop.f32.mrb[19].mxu0 }
 0x335   : > { %v989_v48 = vmul.f32 0.1, %v946_v46 }
 0x336   : > { %v950_v49 = vpop.f32.mrb[20].mxu0 }
 0x337   : > { %v998_v50 = vmax.f32 %v946_v46, %v989_v48  ;;  %v951_v51 = vadd.f32 %v3705_v36, %v950_v49  ;;  %v3963_v52 = vpop.f32.mrb[21].mxu0 }
 0x339   : > { %v990_v53 = vmul.f32 0.1, %v951_v51  ;;  %4018 = vmatmul.mubr.f32.vlgmr.msra.gmra.mrb[36].mxu0 %v998_v50 }
 0x33a   : > { %v955_v54 = vpop.f32.mrb[22].mxu0  ;;  %4020 = vmatprep.mubr.msk.f32.mxu0 %vm5636_vm0, %v5635_v0 }
 0x33b   : > { %v999_v55 = vmax.f32 %v951_v51, %v990_v53  ;;  %v956_v56 = vadd.f32 %v3705_v36, %v955_v54  ;;  %v3966_v57 = vpop.f32.mrb[23].mxu0 }
 0x33d   : > { %v991_v58 = vmul.f32 0.1, %v956_v56  ;;  %4021 = vmatmul.mubr.f32.gmra.mrb[38].mxu0 %v999_v55 }
 0x33e   : > { %v960_v59 = vpop.f32.mrb[24].mxu0  ;;  %4023 = vmatprep.mubr.msk.f32.mxu0 %vm5636_vm0, %v5635_v0 }
 0x33f   : > { %v1000_v60 = vmax.f32 %v956_v56, %v991_v58  ;;  %v961_v61 = vadd.f32 %v3705_v36, %v960_v59  ;;  %v3969_v62 = vpop.f32.mrb[25].mxu0 }
 0x341   : > { %v992_v63 = vmul.f32 0.1, %v961_v61  ;;  %4024 = vmatmul.mubr.f32.gmra.mrb[40].mxu0 %v1000_v60 }
 0x342   : > { %v965_v2 = vpop.f32.mrb[26].mxu0  ;;  %4026 = vmatprep.mubr.msk.f32.mxu0 %vm5636_vm0, %v5635_v0 }
 0x343   : > { %v1001_v3 = vmax.f32 %v961_v61, %v992_v63  ;;  %v966_v4 = vadd.f32 %v3705_v36, %v965_v2  ;;  %v3972_v5 = vpop.f32.mrb[27].mxu0 }
 0x345   : > { %v993_v6 = vmul.f32 0.1, %v966_v4  ;;  %4027 = vmatmul.mubr.f32.gmra.mrb[42].mxu0 %v1001_v3  ;;  %v3729_v3 = vld [vmem:[#allocation12] sm:$0xff]  }
 0x346   : > { %v970_v7 = vpop.f32.mrb[28].mxu0  ;;  %4029 = vmatprep.mubr.msk.f32.mxu0 %vm5636_vm0, %v5635_v0 }
 0x347   : > { %v1002_v8 = vmax.f32 %v966_v4, %v993_v6  ;;  %v971_v9 = vadd.f32 %v3705_v36, %v970_v7  ;;  %v3975_v10 = vpop.f32.mrb[29].mxu0  ;;  %v6237_v4 = vld [vmem:[#allocation13] sm:$0xff]   ;;  %v1755_v6 = vld [vmem:[#allocation15 + $0x8] sm:$0xff] }
 0x348   : > { %v1759_v7 = vld [vmem:[#allocation15 + $0x28] sm:$0xff]  ;;  %v1761_v10 = vld [vmem:[#allocation15 + $0x38] sm:$0xff] }
 0x349   : > { %v994_v11 = vmul.f32 0.1, %v971_v9  ;;  %4030 = vmatmul.mubr.f32.gmra.mrb[44].mxu0 %v1002_v8  ;;  %v1757_v8 = vld [vmem:[#allocation15 + $0x18] sm:$0xff] }
 0x34a   : > { %v975_v12 = vpop.f32.mrb[30].mxu0  ;;  %4032 = vmatprep.mubr.msk.f32.mxu0 %vm5636_vm0, %v5635_v0 }
 0x34b   : > { %v1003_v13 = vmax.f32 %v971_v9, %v994_v11  ;;  %v976_v14 = vadd.f32 %v3705_v36, %v975_v12  ;;  %v3978_v15 = vpop.f32.mrb[31].mxu0  ;;  %v1754_v11 = vld [vmem:[#allocation15] sm:$0xff] }
 0x34c   : > { %v1758_v12 = vld [vmem:[#allocation15 + $0x20] sm:$0xff]  ;;  %v1760_v15 = vld [vmem:[#allocation15 + $0x30] sm:$0xff] }
 0x34d   : > { %v995_v16 = vmul.f32 0.1, %v976_v14  ;;  %4033 = vmatmul.mubr.f32.gmra.mrb[46].mxu0 %v1003_v13  ;;  %v3730_v13 = vunpack.c.l.bf16 %v3729_v3 }
 0x34e   : > { %v980_v17 = vpop.f32.mrb[32].mxu0  ;;  %4035 = vmatprep.mubr.msk.f32.mxu0 %vm5636_vm0, %v5635_v0 }
 0x34f   : > { %v1004_v18 = vmax.f32 %v976_v14, %v995_v16  ;;  %v981_v19 = vadd.f32 %v3705_v36, %v980_v17  ;;  %v3981_v20 = vpop.f32.mrb[33].mxu0  ;;  %v1756_v14 = vld [vmem:[#allocation15 + $0x10] sm:$0xff]  ;;  %v3746_v17 = vunpack.c.l.bf16 %v6237_v4 }
 0x350   : > { %v4208_v20 = vpack.c.bf16 %v1758_v12, %v1754_v11 }
 0x351   : > { %v996_v21 = vmul.f32 0.1, %v981_v19  ;;  %4036 = vmatmul.mubr.f32.gmra.mrb[48].mxu0 %v1004_v18  ;;  %v4206_v18 = vpack.c.bf16 %v1759_v7, %v1755_v6  ;;  %v1784_v6 = vld [vmem:[#allocation15 + $0xf0] sm:$0xff] }
 0x352   : > { %v985_v22 = vpop.f32.mrb[34].mxu0  ;;  %4038 = vmatprep.mubr.msk.f32.mxu0 %vm5636_vm0, %v5635_v0 }
 0x353   : > { %v1005_v23 = vmax.f32 %v981_v19, %v996_v21  ;;  %v986_v24 = vadd.f32 %v3705_v36, %v985_v22  ;;  %v3984_v25 = vpop.f32.mrb[35].mxu0  ;;  %v4494_v19 = vpack.c.bf16 %v1761_v10, %v1757_v8  ;;  %v1763_v21 = vld [vmem:[#allocation15 + $0x48] sm:$0xff] }
 0x354   : > { %v1767_v22 = vld [vmem:[#allocation15 + $0x68] sm:$0xff]  ;;  %v1769_v25 = vld [vmem:[#allocation15 + $0x78] sm:$0xff] }
 0x355   : > { %v997_v26 = vmul.f32 0.1, %v986_v24  ;;  %4039 = vmatmul.mubr.f32.gmra.mrb[50].mxu0 %v1005_v23  ;;  %v1765_v23 = vld [vmem:[#allocation15 + $0x58] sm:$0xff]  ;;  %v6273_v10 = vld [vmem:[#allocation13 + $0x10] sm:$0xff]  }
 0x356   : > { %4041 = vmatprep.mubr.msk.f32.mxu0 %vm5636_vm0, %v5635_v0 }
 0x357   : > { %v1006_v27 = vmax.f32 %v986_v24, %v997_v26  ;;  %v4496_v24 = vpack.c.bf16 %v1760_v15, %v1756_v14  ;;  %v1762_v26 = vld [vmem:[#allocation15 + $0x40] sm:$0xff]  ;;  %v1787_v14 = vld [vmem:[#allocation15 + $0x108] sm:$0xff] }
 0x358   : > { %v1791_v15 = vld [vmem:[#allocation15 + $0x128] sm:$0xff] }
 0x359   : > { %4042 = vmatmul.mubr.f32.gmra.mrb[52].mxu0 %v1006_v27  ;;  %v1766_v27 = vld [vmem:[#allocation15 + $0x60] sm:$0xff] }
 0x35a   : > { %4107 = vmatprep.mubr.msk.f32.mxu0 %vm5636_vm0, %v5635_v0 }
 0x40c   : > { %v1096_v29 = vpop.f32.mrb[36].mxu0 }
 0x40d   : > { %v6191_v30 = vadd.f32 %v3706_v28, %v1096_v29  ;;  %v4019_v31 = vpop.f32.mrb[37].mxu0  ;;  %v1764_v29 = vld [vmem:[#allocation15 + $0x50] sm:$0xff] }
 0x40e   : > { %v1768_v31 = vld [vmem:[#allocation15 + $0x70] sm:$0xff] }
 0x40f   : > { %v1140_v32 = vmul.f32 %v6191_v30, %v6191_v30 }
 0x410   : > { %v1101_v33 = vpop.f32.mrb[38].mxu0 }
 0x411   : > { %v6195_v34 = vadd.f32 %v3706_v28, %v1101_v33  ;;  %1149 = vadd.xlane.f32.xlu0 %v1140_v32  ;;  %v4022_v35 = vpop.f32.mrb[39].mxu0  ;;  %v3747_v32 = vunpack.c.h.bf16 %v6237_v4  ;;  %v4210_v33 = vpack.c.bf16 %v1767_v22, %v1763_v21  ;;  %v1788_v22 = vld [vmem:[#allocation15 + $0x110] sm:$0xff] }
 0x412   : > { %v6251_v35 = vld [vmem:[#allocation12 + $0x8] sm:$0xff]  }
 0x413   : > { %v4183_v37 = vpack.c.bf16 %v6195_v34, %v6191_v30  ;;  %v1141_v38 = vmul.f32 %v6195_v34, %v6195_v34  ;;  %v3735_v4 = vunpack.c.h.bf16 %v6251_v35  ;;  %v1698_v11 = vrot.slane %v6195_v34, 4 }
 0x414   : > { %v1106_v39 = vpop.f32.mrb[40].mxu0 }
 0x415   : > { %v6201_v40 = vadd.f32 %v3706_v28, %v1106_v39  ;;  %4184 = vmatpush3.bf16.msra.mxu1 %v4183_v37  ;;  %4196 = vmatpush3.bf16.msra.mxu0 %v4183_v37  ;;  %v4025_v41 = vpop.f32.mrb[41].mxu0  ;;  %v6253_v37 = vld [vmem:[#allocation13 + $0x8] sm:$0xff]   ;;  %v4212_v39 = vpack.c.bf16 %v1766_v27, %v1762_v26  ;;  %v1699_v26 = vadd.f32 %v1698_v11, %v6195_v34  ;;  %v1817_v11 = vld [vmem:[#allocation15 + $0x1f8] sm:$0xff] }
 0x416   : > { %1151 = vadd.xlane.f32.xlu0 %v1141_v38  ;;  %4185 = vmatprep.subr.bf16.mxu1 %v5637_v1  ;;  %v4498_v38 = vpack.c.bf16 %v1769_v25, %v1765_v23  ;;  %v1771_v41 = vld [vmem:[#allocation15 + $0x88] sm:$0xff]  ;;  %v3751_v7 = vunpack.c.h.bf16 %v6253_v37  ;;  %v1792_v23 = vld [vmem:[#allocation15 + $0x130] sm:$0xff]  ;;  %v4222_v25 = vpack.c.bf16 %v1791_v15, %v1787_v14 }
 0x417   : > { %v1142_v42 = vmul.f32 %v6201_v40, %v6201_v40  ;;  %4197 = vmatprep.subr.bf16.mxu0 %v5637_v1  ;;  %v1812_v15 = vld [vmem:[#allocation15 + $0x1d0] sm:$0xff] }
 0x418   : > { %v1111_v43 = vpop.f32.mrb[42].mxu0 }
 0x419   : > { %v6207_v44 = vadd.f32 %v3706_v28, %v1111_v43  ;;  %1153 = vadd.xlane.f32.xlu1 %v1142_v42  ;;  %v4028_v36 = vpop.f32.mrb[43].mxu0  ;;  %v1775_v42 = vld [vmem:[#allocation15 + $0xa8] sm:$0xff]  ;;  %v1773_v43 = vld [vmem:[#allocation15 + $0x98] sm:$0xff] }
 0x41a   : > { %v4500_v36 = vpack.c.bf16 %v1768_v31, %v1764_v29  ;;  %v1795_v29 = vld [vmem:[#allocation15 + $0x148] sm:$0xff] }
 0x41b   : > { %v4186_v45 = vpack.c.bf16 %v6207_v44, %v6201_v40  ;;  %v1143_v46 = vmul.f32 %v6207_v44, %v6207_v44  ;;  %v1799_v31 = vld [vmem:[#allocation15 + $0x168] sm:$0xff] }
 0x41c   : > { %v1116_v47 = vpop.f32.mrb[44].mxu0 }
 0x41d   : > { %v6213_v48 = vadd.f32 %v3706_v28, %v1116_v47  ;;  %4187 = vmatpush3.bf16.msra.mxu1 %v4186_v45  ;;  %4199 = vmatpush3.bf16.msra.mxu0 %v4186_v45  ;;  %v4031_v49 = vpop.f32.mrb[45].mxu0  ;;  %v1777_v45 = vld [vmem:[#allocation15 + $0xb8] sm:$0xff]  ;;  %v1774_v47 = vld [vmem:[#allocation15 + $0xa0] sm:$0xff] }
 0x41e   : > { %1155 = vadd.xlane.f32.xlu1 %v1143_v46  ;;  %4188 = vmatprep.subr.bf16.mxu1 %v5637_v1  ;;  %v1770_v46 = vld [vmem:[#allocation15 + $0x80] sm:$0xff]  ;;  %v3734_v49 = vunpack.c.l.bf16 %v6251_v35  ;;  %v1801_v35 = vld [vmem:[#allocation15 + $0x178] sm:$0xff] }
 0x41f   : > { %v1144_v50 = vmul.f32 %v6213_v48, %v6213_v48  ;;  %4200 = vmatprep.subr.bf16.mxu0 %v5637_v1 }
 0x420   : > { %v1121_v51 = vpop.f32.mrb[46].mxu0 }
 0x421   : > { %v6219_v52 = vadd.f32 %v3706_v28, %v1121_v51  ;;  %v4034_v53 = vpop.f32.mrb[47].mxu0  ;;  %v1776_v51 = vld [vmem:[#allocation15 + $0xb0] sm:$0xff] }
 0x422   : > { %1157 = vadd.xlane.f32.xlu1 %v1144_v50  ;;  %v1772_v50 = vld [vmem:[#allocation15 + $0x90] sm:$0xff]  ;;  %v3750_v53 = vunpack.c.l.bf16 %v6253_v37  ;;  %v1794_v37 = vld [vmem:[#allocation15 + $0x140] sm:$0xff] }
 0x423   : > { %v4189_v54 = vpack.c.bf16 %v6219_v52, %v6213_v48  ;;  %v1145_v55 = vmul.f32 %v6219_v52, %v6219_v52 }
 0x424   : > { %v1126_v56 = vpop.f32.mrb[48].mxu0 }
 0x425   : > { %v6225_v57 = vadd.f32 %v3706_v28, %v1126_v56  ;;  %4190 = vmatpush3.bf16.msra.mxu1 %v4189_v54  ;;  %4202 = vmatpush3.bf16.msra.mxu0 %v4189_v54  ;;  %v4037_v58 = vpop.f32.mrb[49].mxu0  ;;  %v4214_v54 = vpack.c.bf16 %v1775_v42, %v1771_v41  ;;  %v4216_v56 = vpack.c.bf16 %v1774_v47, %v1770_v46  ;;  %v1796_v41 = vld [vmem:[#allocation15 + $0x150] sm:$0xff]  ;;  %v1700_v47 = vrot.slane %v1699_v26, 2 }
 0x426   : > { %1159 = vadd.xlane.f32.xlu0 %v1145_v55  ;;  %4191 = vmatprep.subr.bf16.mxu1 %v5637_v1  ;;  %v4502_v55 = vpack.c.bf16 %v1777_v45, %v1773_v43  ;;  %v1779_v58 = vld [vmem:[#allocation15 + $0xc8] sm:$0xff]  ;;  %v1800_v42 = vld [vmem:[#allocation15 + $0x170] sm:$0xff]  ;;  %v3755_v43 = vunpack.c.h.bf16 %v6273_v10 }
 0x427   : > { %v1146_v59 = vmul.f32 %v6225_v57, %v6225_v57  ;;  %4203 = vmatprep.subr.bf16.mxu0 %v5637_v1  ;;  %v6293_v45 = vld [vmem:[#allocation12 + $0x18] sm:$0xff]  }
 0x428   : > { %v1131_v60 = vpop.f32.mrb[50].mxu0  ;;  %v6295_v46 = vld [vmem:[#allocation13 + $0x18] sm:$0xff]   ;;  %v3743_v14 = vunpack.c.h.bf16 %v6293_v45 }
 0x429   : > { %v6231_v61 = vadd.f32 %v3706_v28, %v1131_v60  ;;  %1161 = vadd.xlane.f32.xlu1 %v1146_v59  ;;  %v4040_v62 = vpop.f32.mrb[51].mxu0  ;;  %v1783_v59 = vld [vmem:[#allocation15 + $0xe8] sm:$0xff]  ;;  %v1781_v60 = vld [vmem:[#allocation15 + $0xd8] sm:$0xff] }
 0x42a   : > { %v4504_v62 = vpack.c.bf16 %v1776_v51, %v1772_v50  ;;  %v4218_v8 = vpack.c.bf16 %v1783_v59, %v1779_v58  ;;  %v1803_v51 = vld [vmem:[#allocation15 + $0x188] sm:$0xff]  ;;  %v1802_v58 = vld [vmem:[#allocation15 + $0x180] sm:$0xff] }
 0x42b   : > { %v4192_v63 = vpack.c.bf16 %v6231_v61, %v6225_v57  ;;  %v1147_v2 = vmul.f32 %v6231_v61, %v6231_v61  ;;  %v1806_v59 = vld [vmem:[#allocation15 + $0x1a0] sm:$0xff] }
 0x42c   : > { %v1136_v5 = vpop.f32.mrb[52].mxu0 }
 0x42d   : > { %v6239_v9 = vadd.f32 %v3706_v28, %v1136_v5  ;;  %4193 = vmatpush3.bf16.msra.mxu1 %v4192_v63  ;;  %4205 = vmatpush3.bf16.msra.mxu0 %v4192_v63  ;;  %v4043_v1 = vpop.f32.mrb[53].mxu0  ;;  %v3731_v28 = vunpack.c.h.bf16 %v3729_v3  ;;  %v1785_v63 = vld [vmem:[#allocation15 + $0xf8] sm:$0xff]  ;;  %v1782_v3 = vld [vmem:[#allocation15 + $0xe0] sm:$0xff]  ;;  %v1780_v5 = vld [vmem:[#allocation15 + $0xd0] sm:$0xff] }
 0x42e   : > { %1163 = vadd.xlane.f32.xlu0 %v1147_v2  ;;  %4060 = vmatprep.subr.mxu1 %v5635_v0  ;;  %v1778_v2 = vld [vmem:[#allocation15 + $0xc0] sm:$0xff]  ;;  %v6271_v1 = vld [vmem:[#allocation12 + $0x10] sm:$0xff]   ;;  %v4506_v12 = vpack.c.bf16 %v1785_v63, %v1781_v60  ;;  %v3742_v60 = vunpack.c.l.bf16 %v6293_v45  ;;  %v1808_v63 = vld [vmem:[#allocation15 + $0x1b0] sm:$0xff] }
 0x42f   : > { %4105 = vmatprep.subr.mxu0 %v5635_v0  ;;  %v1148_v16 = vmul.f32 %v6239_v9, %v6239_v9  ;;  %v3738_v21 = vunpack.c.l.bf16 %v6271_v1  ;;  %v1829_v45 = vld [vmem:[#allocation15 + $0x258] sm:$0xff] }
 0x431   : > { %4061 = vmatpush3.msra.mxu1 %v6239_v9  ;;  %4106 = vmatpush3.msra.mxu0 %v6239_v9 }
 0x432   : > { %1165 = vadd.xlane.f32.xlu0 %v1148_v16  ;;  %4063 = vmatmul.mubr.msk.f32.vlgmr.msra.gmra.mrb[0].mxu1 %vm1194_vm2, %v3730_v13  ;;  %v4220_v13 = vpack.c.bf16 %v1782_v3, %v1778_v2  ;;  %v1789_v16 = vld [vmem:[#allocation15 + $0x118] sm:$0xff]  ;;  %v3758_v2 = vunpack.c.l.bf16 %v6295_v46 }
 0x433   : > { %4108 = vmatmul.mubr.msk.f32.vlgmr.msra.gmra.mrb[54].mxu0 %vm1194_vm2, %v3746_v17  ;;  %4207 = vmatprep.subr.bf16.mxu1 %v4206_v18  ;;  %v4508_v17 = vpack.c.bf16 %v1784_v6, %v1780_v5  ;;  %v1793_v18 = vld [vmem:[#allocation15 + $0x138] sm:$0xff]  ;;  %v4232_v6 = vpack.c.bf16 %v1806_v59, %v1802_v58 }
 0x434   : > { %4495 = vmatprep.subr.bf16.mxu0 %v4494_v19  ;;  %4209 = vmatpush1.bf16.msra.mxu1 %v4208_v20  ;;  %v1786_v19 = vld [vmem:[#allocation15 + $0x100] sm:$0xff]  ;;  %v4510_v27 = vpack.c.bf16 %v1793_v18, %v1789_v16  ;;  %v1816_v16 = vld [vmem:[#allocation15 + $0x1f0] sm:$0xff] }
 0x435   : > { %4497 = vmatpush1.bf16.msra.mxu0 %v4496_v24  ;;  %4065 = vmatprep.mubr.msk.f32.mxu1 %vm5636_vm0, %v5635_v0  ;;  %v1790_v20 = vld [vmem:[#allocation15 + $0x120] sm:$0xff]  ;;  %v3754_v24 = vunpack.c.l.bf16 %v6273_v10 }
 0x436   : > { %4110 = vmatprep.mubr.msk.f32.mxu0 %vm5636_vm0, %v5635_v0  ;;  %4066 = vmatmul.mubr.msk.f32.gmra.mrb[2].mxu1 %vm1194_vm2, %v3731_v28  ;;  %v4224_v28 = vpack.c.bf16 %v1790_v20, %v1786_v19  ;;  %v1184_v19 = vld [vmem:[#allocation12 + $0x20] sm:$0xf]  ;;  %v1340_v20 = vld [vmem:[#allocation13 + $0x20] sm:$0xf] }
 0x437   : > { %4111 = vmatmul.mubr.msk.f32.gmra.mrb[56].mxu0 %vm1194_vm2, %v3747_v32  ;;  %4211 = vmatprep.subr.bf16.mxu1 %v4210_v33  ;;  %v1797_v32 = vld [vmem:[#allocation15 + $0x158] sm:$0xff]  ;;  %v4512_v33 = vpack.c.bf16 %v1792_v23, %v1788_v22 }
 0x438   : > { %4499 = vmatprep.subr.bf16.mxu0 %v4498_v38  ;;  %4213 = vmatpush1.bf16.msra.mxu1 %v4212_v39  ;;  %v1798_v38 = vld [vmem:[#allocation15 + $0x160] sm:$0xff]  ;;  %v3739_v39 = vunpack.c.h.bf16 %v6271_v1  ;;  %v1813_v1 = vld [vmem:[#allocation15 + $0x1d8] sm:$0xff] }
 0x439   : > { %4501 = vmatpush1.bf16.msra.mxu0 %v4500_v36  ;;  %4068 = vmatprep.mubr.msk.f32.mxu1 %vm5636_vm0, %v5635_v0  ;;  %v4226_v36 = vpack.c.bf16 %v1799_v31, %v1795_v29  ;;  %v4228_v50 = vpack.c.bf16 %v1798_v38, %v1794_v37  ;;  %v4522_v22 = vpack.c.bf16 %v1817_v11, %v1813_v1  ;;  %v1818_v29 = vld [vmem:[#allocation15 + $0x200] sm:$0xff]  ;;  %v1349_v37 = vunpack.c.l.bf16 %v1340_v20  ;;  %v1843_v1 = vld [vmem:[#allocation15 + $0x2c8] sm:$0xff]  ;;  %v1845_v11 = vld [vmem:[#allocation15 + $0x2d8] sm:$0xff] }
 0x43a   : > { %4113 = vmatprep.mubr.msk.f32.mxu0 %vm5636_vm0, %v5635_v0  ;;  %4069 = vmatmul.mubr.msk.f32.gmra.mrb[4].mxu1 %vm1194_vm2, %v3734_v49  ;;  %v4514_v49 = vpack.c.bf16 %v1801_v35, %v1797_v32  ;;  %v1822_v31 = vld [vmem:[#allocation15 + $0x220] sm:$0xff]  ;;  %v1193_v32 = vunpack.c.l.bf16 %v1184_v19  ;;  %v1824_v35 = vld [vmem:[#allocation15 + $0x230] sm:$0xff]  ;;  %v1691_v19 = vrot.slane %v6191_v30, 4 }
 0x43b   : > { %4114 = vmatmul.mubr.msk.f32.gmra.mrb[58].mxu0 %vm1194_vm2, %v3750_v53  ;;  %4215 = vmatprep.subr.bf16.mxu1 %v4214_v54  ;;  %v1807_v53 = vld [vmem:[#allocation15 + $0x1a8] sm:$0xff]  ;;  %v1805_v54 = vld [vmem:[#allocation15 + $0x198] sm:$0xff] }
 0x43c   : > { %4503 = vmatprep.subr.bf16.mxu0 %v4502_v55  ;;  %4217 = vmatpush1.bf16.msra.mxu1 %v4216_v56  ;;  %v4516_v55 = vpack.c.bf16 %v1800_v42, %v1796_v41  ;;  %v1809_v56 = vld [vmem:[#allocation15 + $0x1b8] sm:$0xff]  ;;  %v4230_v3 = vpack.c.bf16 %v1807_v53, %v1803_v51  ;;  %v1827_v41 = vld [vmem:[#allocation15 + $0x248] sm:$0xff]  ;;  %v1828_v51 = vld [vmem:[#allocation15 + $0x250] sm:$0xff] }
 0x43d   : > { %4505 = vmatpush1.bf16.msra.mxu0 %v4504_v62  ;;  %4071 = vmatprep.mubr.msk.f32.mxu1 %vm5636_vm0, %v5635_v0  ;;  %v1804_v62 = vld [vmem:[#allocation15 + $0x190] sm:$0xff]  ;;  %v4518_v5 = vpack.c.bf16 %v1809_v56, %v1805_v54  ;;  %v1831_v42 = vld [vmem:[#allocation15 + $0x268] sm:$0xff] }
 0x43e   : > { %4116 = vmatprep.mubr.msk.f32.mxu0 %vm5636_vm0, %v5635_v0  ;;  %4072 = vmatmul.mubr.msk.f32.gmra.mrb[6].mxu1 %vm1194_vm2, %v3735_v4  ;;  %v1701_v4 = vadd.f32 %v1700_v47, %v1699_v26  ;;  %v4520_v10 = vpack.c.bf16 %v1808_v63, %v1804_v62  ;;  %v1821_v26 = vld [vmem:[#allocation15 + $0x218] sm:$0xff]  ;;  %v4242_v53 = vpack.c.bf16 %v1831_v42, %v1827_v41  ;;  %v1832_v54 = vld [vmem:[#allocation15 + $0x270] sm:$0xff]  ;;  %v1839_v56 = vld [vmem:[#allocation15 + $0x2a8] sm:$0xff] }
 0x43f   : > { %4117 = vmatmul.mubr.msk.f32.gmra.mrb[60].mxu0 %vm1194_vm2, %v3751_v7  ;;  %4219 = vmatprep.subr.bf16.mxu1 %v4218_v8  ;;  %v1811_v7 = vld [vmem:[#allocation15 + $0x1c8] sm:$0xff]  ;;  %v1841_v62 = vld [vmem:[#allocation15 + $0x2b8] sm:$0xff] }
 0x440   : > { %4507 = vmatprep.subr.bf16.mxu0 %v4506_v12  ;;  %4221 = vmatpush1.bf16.msra.mxu1 %v4220_v13  ;;  %v1815_v8 = vld [vmem:[#allocation15 + $0x1e8] sm:$0xff]  ;;  %v1810_v12 = vld [vmem:[#allocation15 + $0x1c0] sm:$0xff]  ;;  %v1861_v42 = vld [vmem:[#allocation15 + $0x358] sm:$0xff] }
 0x441   : > { %4509 = vmatpush1.bf16.msra.mxu0 %v4508_v17  ;;  %4074 = vmatprep.mubr.msk.f32.mxu1 %vm5636_vm0, %v5635_v0  ;;  %v1814_v13 = vld [vmem:[#allocation15 + $0x1e0] sm:$0xff]  ;;  %v3759_v17 = vunpack.c.h.bf16 %v6295_v46  ;;  %v4234_v18 = vpack.c.bf16 %v1815_v8, %v1811_v7  ;;  %v1833_v46 = vld [vmem:[#allocation15 + $0x278] sm:$0xff]  ;;  %v1840_v8 = vld [vmem:[#allocation15 + $0x2b0] sm:$0xff] }
 0x442   : > { %4119 = vmatprep.mubr.msk.f32.mxu0 %vm5636_vm0, %v5635_v0  ;;  %4075 = vmatmul.mubr.msk.f32.gmra.mrb[8].mxu1 %vm1194_vm2, %v3738_v21  ;;  %v1702_v21 = vrot.slane %v1701_v4, 1  ;;  %v4236_v23 = vpack.c.bf16 %v1814_v13, %v1810_v12  ;;  %v4530_v59 = vpack.c.bf16 %v1833_v46, %v1829_v45  ;;  %v1849_v12 = vld [vmem:[#allocation15 + $0x2f8] sm:$0xff]  ;;  %v1863_v41 = vld [vmem:[#allocation15 + $0x368] sm:$0xff] }
 0x443   : > { %4120 = vmatmul.mubr.msk.f32.gmra.mrb[62].mxu0 %vm1194_vm2, %v3754_v24  ;;  %4223 = vmatprep.subr.bf16.mxu1 %v4222_v25  ;;  %v1819_v24 = vld [vmem:[#allocation15 + $0x208] sm:$0xff]  ;;  %v4538_v20 = vpack.c.bf16 %v1849_v12, %v1845_v11  ;;  %v1877_v12 = vld [vmem:[#allocation15 + $0x3d8] sm:$0xff] }
 0x444   : > { %4511 = vmatprep.subr.bf16.mxu0 %v4510_v27  ;;  %4225 = vmatpush1.bf16.msra.mxu1 %v4224_v28  ;;  %v1823_v25 = vld [vmem:[#allocation15 + $0x228] sm:$0xff]  ;;  %v4524_v27 = vpack.c.bf16 %v1816_v16, %v1812_v15  ;;  %v1825_v28 = vld [vmem:[#allocation15 + $0x238] sm:$0xff]  ;;  %v1842_v16 = vld [vmem:[#allocation15 + $0x2c0] sm:$0xff] }
 0x445   : > { %4513 = vmatpush1.bf16.msra.mxu0 %v4512_v33  ;;  %4077 = vmatprep.mubr.msk.f32.mxu1 %vm5636_vm0, %v5635_v0  ;;  %v1820_v33 = vld [vmem:[#allocation15 + $0x210] sm:$0xff]  ;;  %v4238_v38 = vpack.c.bf16 %v1823_v25, %v1819_v24  ;;  %v1853_v24 = vld [vmem:[#allocation15 + $0x318] sm:$0xff]  ;;  %v1879_v11 = vld [vmem:[#allocation15 + $0x3e8] sm:$0xff] }
 0x446   : > { %4122 = vmatprep.mubr.msk.f32.mxu0 %vm5636_vm0, %v5635_v0  ;;  %4078 = vmatmul.mubr.msk.f32.gmra.mrb[10].mxu1 %vm1194_vm2, %v3739_v39  ;;  %v1703_v39 = vadd.f32 %v1702_v21, %v1701_v4  ;;  %v4528_v47 = vpack.c.bf16 %v1824_v35, %v1820_v33  ;;  %v1834_v4 = vld [vmem:[#allocation15 + $0x280] sm:$0xff]  ;;  %v1848_v21 = vld [vmem:[#allocation15 + $0x2f0] sm:$0xff]  ;;  %v1857_v25 = vld [vmem:[#allocation15 + $0x338] sm:$0xff]  ;;  %v1692_v35 = vadd.f32 %v1691_v19, %v6191_v30 }
 0x447   : > { %4123 = vmatmul.mubr.msk.f32.gmra.mrb[64].mxu0 %vm1194_vm2, %v3755_v43  ;;  %4227 = vmatprep.subr.bf16.mxu1 %v4226_v36  ;;  %v4526_v43 = vpack.c.bf16 %v1825_v28, %v1821_v26  ;;  %v4240_v36 = vpack.c.bf16 %v1822_v31, %v1818_v29  ;;  %v1712_v26 = vrot.slane %v6207_v44, 4  ;;  %v1850_v31 = vld [vmem:[#allocation15 + $0x300] sm:$0xff]  ;;  %v1852_v33 = vld [vmem:[#allocation15 + $0x310] sm:$0xff] }
 0x448   : > { %4515 = vmatprep.subr.bf16.mxu0 %v4514_v49  ;;  %4229 = vmatpush1.bf16.msra.mxu1 %v4228_v50  ;;  %v1826_v49 = vld [vmem:[#allocation15 + $0x240] sm:$0xff]  ;;  %v1704_v58 = vmul.f32 0.125, %v1703_v39  ;;  %v1859_v39 = vld [vmem:[#allocation15 + $0x348] sm:$0xff] }
 0x449   : > { %4517 = vmatpush1.bf16.msra.mxu0 %v4516_v55  ;;  %4080 = vmatprep.mubr.msk.f32.mxu1 %vm5636_vm0, %v5635_v0  ;;  %v1830_v50 = vld [vmem:[#allocation15 + $0x260] sm:$0xff]  ;;  %v1835_v55 = vld [vmem:[#allocation15 + $0x288] sm:$0xff] }
 0x44a   : > { %4125 = vmatprep.mubr.msk.f32.mxu0 %vm5636_vm0, %v5635_v0  ;;  %4081 = vmatmul.mubr.msk.f32.gmra.mrb[12].mxu1 %vm1194_vm2, %v3742_v60  ;;  %v1837_v60 = vld [vmem:[#allocation15 + $0x298] sm:$0xff]  ;;  %v4244_v63 = vpack.c.bf16 %v1830_v50, %v1826_v49  ;;  %v1858_v49 = vld [vmem:[#allocation15 + $0x340] sm:$0xff] }
 0x44b   : > { %4126 = vmatmul.mubr.msk.f32.gmra.mrb[66].mxu0 %vm1194_vm2, %v3758_v2  ;;  %4231 = vmatprep.subr.bf16.mxu1 %v4230_v3  ;;  %v4532_v2 = vpack.c.bf16 %v1832_v54, %v1828_v51  ;;  %v4246_v3 = vpack.c.bf16 %v1839_v56, %v1835_v55  ;;  %v4534_v7 = vpack.c.bf16 %v1841_v62, %v1837_v60  ;;  %v1862_v50 = vld [vmem:[#allocation15 + $0x360] sm:$0xff]  ;;  %v1860_v51 = vld [vmem:[#allocation15 + $0x350] sm:$0xff]  ;;  %v1867_v56 = vld [vmem:[#allocation15 + $0x388] sm:$0xff] }
 0x44c   : > { %4519 = vmatprep.subr.bf16.mxu0 %v4518_v5  ;;  %4233 = vmatpush1.bf16.msra.mxu1 %v4232_v6  ;;  %v1838_v5 = vld [vmem:[#allocation15 + $0x2a0] sm:$0xff]  ;;  %v1836_v6 = vld [vmem:[#allocation15 + $0x290] sm:$0xff]  ;;  %v1873_v60 = vld [vmem:[#allocation15 + $0x3b8] sm:$0xff] }
 0x44d   : > { %4521 = vmatpush1.bf16.msra.mxu0 %v4520_v10  ;;  %4083 = vmatprep.mubr.msk.f32.mxu1 %vm5636_vm0, %v5635_v0  ;;  %v1847_v10 = vld [vmem:[#allocation15 + $0x2e8] sm:$0xff]  ;;  %v4248_v13 = vpack.c.bf16 %v1838_v5, %v1834_v4  ;;  %v1864_v55 = vld [vmem:[#allocation15 + $0x370] sm:$0xff]  ;;  %v1866_v4 = vld [vmem:[#allocation15 + $0x380] sm:$0xff] }
 0x44e   : > { %4128 = vmatprep.mubr.msk.f32.mxu0 %vm5636_vm0, %v5635_v0  ;;  %4084 = vmatmul.mubr.msk.f32.gmra.mrb[14].mxu1 %vm1194_vm2, %v3743_v14  ;;  %v4536_v14 = vpack.c.bf16 %v1840_v8, %v1836_v6  ;;  %v4250_v15 = vpack.c.bf16 %v1847_v10, %v1843_v1  ;;  %v1870_v5 = vld [vmem:[#allocation15 + $0x3a0] sm:$0xff]  ;;  %v1868_v6 = vld [vmem:[#allocation15 + $0x390] sm:$0xff]  ;;  %v1875_v10 = vld [vmem:[#allocation15 + $0x3c8] sm:$0xff] }
 0x44f   : > { %4129 = vmatmul.mubr.msk.f32.gmra.mrb[68].mxu0 %vm1194_vm2, %v3759_v17  ;;  %4235 = vmatprep.subr.bf16.mxu1 %v4234_v18  ;;  %v1846_v17 = vld [vmem:[#allocation15 + $0x2e0] sm:$0xff]  ;;  %v1844_v18 = vld [vmem:[#allocation15 + $0x2d0] sm:$0xff] }
 0x450   : > { %4523 = vmatprep.subr.bf16.mxu0 %v4522_v22  ;;  %4237 = vmatpush1.bf16.msra.mxu1 %v4236_v23  ;;  %v1851_v22 = vld [vmem:[#allocation15 + $0x308] sm:$0xff]  ;;  %v4540_v28 = vpack.c.bf16 %v1848_v21, %v1844_v18  ;;  %v1872_v1 = vld [vmem:[#allocation15 + $0x3b0] sm:$0xff]  ;;  %v1874_v18 = vld [vmem:[#allocation15 + $0x3c0] sm:$0xff] }
 0x451   : > { %4525 = vmatpush1.bf16.msra.mxu0 %v4524_v27  ;;  %4086 = vmatprep.mubr.msk.f32.mxu1 %vm5636_vm0, %v5635_v0  ;;  %v1855_v23 = vld [vmem:[#allocation15 + $0x328] sm:$0xff]  ;;  %v4252_v27 = vpack.c.bf16 %v1846_v17, %v1842_v16  ;;  %v4552_v16 = vpack.c.bf16 %v1872_v1, %v1868_v6  ;;  %v4266_v17 = vpack.c.bf16 %v1879_v11, %v1875_v10  ;;  %v1878_v19 = vld [vmem:[#allocation15 + $0x3e0] sm:$0xff]  ;;  %v1904_v10 = vld [vmem:[#allocation15 + $0x4b0] sm:$0xff] }
 0x452   : > { %4131 = vmatprep.mubr.msk.f32.mxu0 %vm5636_vm0, %v5635_v0  ;;  %4087 = vmatmul.mubr.msk.f32.gmra.mrb[16].mxu1 %vm1194_vm2, %v1193_v32  ;;  %v4254_v29 = vpack.c.bf16 %v1855_v23, %v1851_v22  ;;  %v1854_v32 = vld [vmem:[#allocation15 + $0x320] sm:$0xff]  ;;  %v1880_v23 = vld [vmem:[#allocation15 + $0x3f0] sm:$0xff]  ;;  %v1907_v11 = vld [vmem:[#allocation15 + $0x4c8] sm:$0xff] }
 0x453   : > { %4132 = vmatmul.mubr.msk.f32.gmra.mrb[70].mxu0 %vm1194_vm2, %v1349_v37  ;;  %4239 = vmatprep.subr.bf16.mxu1 %v4238_v38  ;;  %v4542_v37 = vpack.c.bf16 %v1857_v25, %v1853_v24  ;;  %v1856_v38 = vld [vmem:[#allocation15 + $0x330] sm:$0xff]  ;;  %v4256_v45 = vpack.c.bf16 %v1854_v32, %v1850_v31  ;;  %v1883_v24 = vld [vmem:[#allocation15 + $0x408] sm:$0xff]  ;;  %v1898_v6 = vld [vmem:[#allocation15 + $0x480] sm:$0xff] }
 0x454   : > { %4527 = vmatprep.subr.bf16.mxu0 %v4526_v43  ;;  %4241 = vmatpush1.bf16.msra.mxu1 %v4240_v36  ;;  %v1865_v43 = vld [vmem:[#allocation15 + $0x378] sm:$0xff]  ;;  %v1713_v36 = vadd.f32 %v1712_v26, %v6207_v44  ;;  %v4544_v46 = vpack.c.bf16 %v1856_v38, %v1852_v33  ;;  %v1887_v25 = vld [vmem:[#allocation15 + $0x428] sm:$0xff] }
 0x455   : > { %2416 = vmatprep.mubr.f32.mxu1 %v1704_v58  ;;  %4529 = vmatpush1.bf16.msra.mxu0 %v4528_v47  ;;  %v4258_v47 = vpack.c.bf16 %v1863_v41, %v1859_v39  ;;  %v4546_v54 = vpack.c.bf16 %v1865_v43, %v1861_v42  ;;  %v1885_v26 = vld [vmem:[#allocation15 + $0x418] sm:$0xff]  ;;  %v4270_v33 = vpack.c.bf16 %v1887_v25, %v1883_v24  ;;  %v1884_v39 = vld [vmem:[#allocation15 + $0x410] sm:$0xff]  ;;  %v1891_v43 = vld [vmem:[#allocation15 + $0x448] sm:$0xff] }
 0x456   : > { %2771 = vmatprep.mubr.f32.mxu0 %v1704_v58  ;;  %4243 = vmatprep.subr.bf16.mxu1 %v4242_v53  ;;  %v1693_v53 = vrot.slane %v1692_v35, 2  ;;  %v1871_v58 = vld [vmem:[#allocation15 + $0x3a8] sm:$0xff]  ;;  %v1714_v62 = vrot.slane %v1713_v36, 2  ;;  %v1888_v41 = vld [vmem:[#allocation15 + $0x430] sm:$0xff]  ;;  %v1917_v25 = vld [vmem:[#allocation15 + $0x518] sm:$0xff] }
 0x457   : > { %4531 = vmatprep.subr.bf16.mxu0 %v4530_v59  ;;  %v1869_v59 = vld [vmem:[#allocation15 + $0x398] sm:$0xff]  ;;  %v1919_v24 = vld [vmem:[#allocation15 + $0x528] sm:$0xff] }
 0x458   : > { %4245 = vmatpush1.bf16.msra.mxu1 %v4244_v63  ;;  %v4260_v63 = vpack.c.bf16 %v1862_v50, %v1858_v49  ;;  %v4550_v8 = vpack.c.bf16 %v1873_v60, %v1869_v59  ;;  %v4560_v50 = vpack.c.bf16 %v1888_v41, %v1884_v39  ;;  %v1903_v59 = vld [vmem:[#allocation15 + $0x4a8] sm:$0xff]  ;;  %v1925_v41 = vld [vmem:[#allocation15 + $0x558] sm:$0xff] }
 0x459   : > { %4533 = vmatpush1.bf16.msra.mxu0 %v4532_v2  ;;  %4247 = vmatprep.subr.bf16.mxu1 %v4246_v3  ;;  %v4548_v2 = vpack.c.bf16 %v1864_v55, %v1860_v51  ;;  %v4262_v3 = vpack.c.bf16 %v1871_v58, %v1867_v56  ;;  %v1890_v51 = vld [vmem:[#allocation15 + $0x440] sm:$0xff]  ;;  %v1896_v56 = vld [vmem:[#allocation15 + $0x470] sm:$0xff]  ;;  %v1899_v58 = vld [vmem:[#allocation15 + $0x488] sm:$0xff] }
 0x45a   : > { %4535 = vmatprep.subr.bf16.mxu0 %v4534_v7  ;;  %v1694_v7 = vadd.f32 %v1693_v53, %v1692_v35  ;;  %v1882_v35 = vld [vmem:[#allocation15 + $0x400] sm:$0xff]  ;;  %v1927_v39 = vld [vmem:[#allocation15 + $0x568] sm:$0xff] }
 0x45b   : > { %v1894_v53 = vld [vmem:[#allocation15 + $0x460] sm:$0xff] }
 0x45c   : > { %4249 = vmatpush1.bf16.msra.mxu1 %v4248_v13  ;;  %v1881_v13 = vld [vmem:[#allocation15 + $0x3f8] sm:$0xff]  ;;  %v1695_v21 = vrot.slane %v1694_v7, 1 }
 0x45d   : > { %4537 = vmatpush1.bf16.msra.mxu0 %v4536_v14  ;;  %4251 = vmatprep.subr.bf16.mxu1 %v4250_v15  ;;  %v1715_v14 = vadd.f32 %v1714_v62, %v1713_v36  ;;  %v4264_v15 = vpack.c.bf16 %v1870_v5, %v1866_v4  ;;  %v4554_v22 = vpack.c.bf16 %v1881_v13, %v1877_v12  ;;  %v1895_v36 = vld [vmem:[#allocation15 + $0x468] sm:$0xff]  ;;  %v1909_v13 = vld [vmem:[#allocation15 + $0x4d8] sm:$0xff] }
 0x45e   : > { %4539 = vmatprep.subr.bf16.mxu0 %v4538_v20  ;;  %v1876_v20 = vld [vmem:[#allocation15 + $0x3d0] sm:$0xff]  ;;  %v1696_v32 = vadd.f32 %v1695_v21, %v1694_v7  ;;  %v4274_v55 = vpack.c.bf16 %v1895_v36, %v1891_v43  ;;  %v4278_v5 = vpack.c.bf16 %v1903_v59, %v1899_v58  ;;  %v1902_v7 = vld [vmem:[#allocation15 + $0x4a0] sm:$0xff]  ;;  %v1911_v12 = vld [vmem:[#allocation15 + $0x4e8] sm:$0xff] }
 0x45f   : > { %v4556_v31 = vpack.c.bf16 %v1880_v23, %v1876_v20  ;;  %v1908_v20 = vld [vmem:[#allocation15 + $0x4d0] sm:$0xff]  ;;  %v1915_v23 = vld [vmem:[#allocation15 + $0x508] sm:$0xff] }
 0x460   : > { %4253 = vmatpush1.bf16.msra.mxu1 %v4252_v27  ;;  %v1889_v27 = vld [vmem:[#allocation15 + $0x438] sm:$0xff]  ;;  %v1697_v49 = vmul.f32 0.125, %v1696_v32  ;;  %v1918_v32 = vld [vmem:[#allocation15 + $0x520] sm:$0xff] }
 0x461   : > { %4541 = vmatpush1.bf16.msra.mxu0 %v4540_v28  ;;  %4255 = vmatprep.subr.bf16.mxu1 %v4254_v29  ;;  %v1716_v28 = vrot.slane %v1715_v14, 1  ;;  %v4268_v29 = vpack.c.bf16 %v1878_v19, %v1874_v18  ;;  %v4558_v38 = vpack.c.bf16 %v1889_v27, %v1885_v26  ;;  %v1906_v18 = vld [vmem:[#allocation15 + $0x4c0] sm:$0xff]  ;;  %v1921_v26 = vld [vmem:[#allocation15 + $0x538] sm:$0xff] }
 0x462   : > { %4543 = vmatprep.subr.bf16.mxu0 %v4542_v37  ;;  %v1886_v37 = vld [vmem:[#allocation15 + $0x420] sm:$0xff] }
 0x463   : > { %v1717_v42 = vadd.f32 %v1716_v28, %v1715_v14  ;;  %v1913_v14 = vld [vmem:[#allocation15 + $0x4f8] sm:$0xff]  ;;  %v1910_v19 = vld [vmem:[#allocation15 + $0x4e0] sm:$0xff] }
 0x464   : > { %4257 = vmatpush1.bf16.msra.mxu1 %v4256_v45  ;;  %v4272_v45 = vpack.c.bf16 %v1886_v37, %v1882_v35  ;;  %v4570_v21 = vpack.c.bf16 %v1913_v14, %v1909_v13  ;;  %v4284_v27 = vpack.c.bf16 %v1910_v19, %v1906_v18  ;;  %v4574_v35 = vpack.c.bf16 %v1921_v26, %v1917_v25  ;;  %v1920_v37 = vld [vmem:[#allocation15 + $0x530] sm:$0xff]  ;;  %v1942_v13 = vld [vmem:[#allocation15 + $0x5e0] sm:$0xff]  ;;  %v1951_v18 = vld [vmem:[#allocation15 + $0x628] sm:$0xff] }
 0x465   : > { %4545 = vmatpush1.bf16.msra.mxu0 %v4544_v46  ;;  %4259 = vmatprep.subr.bf16.mxu1 %v4258_v47  ;;  %v1893_v46 = vld [vmem:[#allocation15 + $0x458] sm:$0xff]  ;;  %v1718_v60 = vmul.f32 0.125, %v1717_v42  ;;  %v1940_v14 = vld [vmem:[#allocation15 + $0x5d0] sm:$0xff]  ;;  %v1950_v25 = vld [vmem:[#allocation15 + $0x620] sm:$0xff] }
 0x466   : > { %4547 = vmatprep.subr.bf16.mxu0 %v4546_v54  ;;  %v1897_v47 = vld [vmem:[#allocation15 + $0x478] sm:$0xff]  ;;  %v1892_v54 = vld [vmem:[#allocation15 + $0x450] sm:$0xff] }
 0x467   : > { %v4562_v62 = vpack.c.bf16 %v1897_v47, %v1893_v46  ;;  %v4564_v4 = vpack.c.bf16 %v1896_v56, %v1892_v54  ;;  %v1929_v42 = vld [vmem:[#allocation15 + $0x578] sm:$0xff]  ;;  %v1922_v46 = vld [vmem:[#allocation15 + $0x540] sm:$0xff]  ;;  %v1935_v54 = vld [vmem:[#allocation15 + $0x5a8] sm:$0xff] }
 0x468   : > { %4261 = vmatpush1.bf16.msra.mxu1 %v4260_v63  ;;  %v1901_v63 = vld [vmem:[#allocation15 + $0x498] sm:$0xff]  ;;  %v1926_v47 = vld [vmem:[#allocation15 + $0x560] sm:$0xff]  ;;  %v1948_v26 = vld [vmem:[#allocation15 + $0x610] sm:$0xff] }
 0x469   : > { %4549 = vmatpush1.bf16.msra.mxu0 %v4548_v2  ;;  %4263 = vmatprep.subr.bf16.mxu1 %v4262_v3  ;;  %v1905_v2 = vld [vmem:[#allocation15 + $0x4b8] sm:$0xff]  ;;  %v4276_v3 = vpack.c.bf16 %v1894_v53, %v1890_v51  ;;  %v1928_v51 = vld [vmem:[#allocation15 + $0x570] sm:$0xff]  ;;  %v1931_v53 = vld [vmem:[#allocation15 + $0x588] sm:$0xff]  ;;  %v4292_v58 = vpack.c.bf16 %v1926_v47, %v1922_v46 }
 0x46a   : > { %4551 = vmatprep.subr.bf16.mxu0 %v4550_v8  ;;  %v1900_v8 = vld [vmem:[#allocation15 + $0x490] sm:$0xff]  ;;  %v4566_v1 = vpack.c.bf16 %v1905_v2, %v1901_v63  ;;  %v1937_v56 = vld [vmem:[#allocation15 + $0x5b8] sm:$0xff]  ;;  %v1934_v63 = vld [vmem:[#allocation15 + $0x5a0] sm:$0xff] }
 0x46b   : > { %v1932_v2 = vld [vmem:[#allocation15 + $0x590] sm:$0xff]  ;;  %v1949_v19 = vld [vmem:[#allocation15 + $0x618] sm:$0xff]  ;;  %v1967_v46 = vld [vmem:[#allocation15 + $0x6a8] sm:$0xff] }
 0x46c   : > { %4265 = vmatpush1.bf16.msra.mxu1 %v4264_v15  ;;  %v4280_v15 = vpack.c.bf16 %v1902_v7, %v1898_v6  ;;  %v1943_v6 = vld [vmem:[#allocation15 + $0x5e8] sm:$0xff]  ;;  %v1941_v7 = vld [vmem:[#allocation15 + $0x5d8] sm:$0xff] }
 0x46d   : > { %4553 = vmatpush1.bf16.msra.mxu0 %v4552_v16  ;;  %4267 = vmatprep.subr.bf16.mxu1 %v4266_v17  ;;  %v4568_v16 = vpack.c.bf16 %v1904_v10, %v1900_v8  ;;  %v4282_v17 = vpack.c.bf16 %v1911_v12, %v1907_v11  ;;  %v1945_v8 = vld [vmem:[#allocation15 + $0x5f8] sm:$0xff]  ;;  %v1938_v12 = vld [vmem:[#allocation15 + $0x5c0] sm:$0xff] }
 0x46e   : > { %4555 = vmatprep.subr.bf16.mxu0 %v4554_v22  ;;  %v1912_v22 = vld [vmem:[#allocation15 + $0x4f0] sm:$0xff]  ;;  %v1965_v47 = vld [vmem:[#allocation15 + $0x698] sm:$0xff] }
 0x46f   : > { %v4572_v28 = vpack.c.bf16 %v1912_v22, %v1908_v20  ;;  %v1953_v20 = vld [vmem:[#allocation15 + $0x638] sm:$0xff] }
 0x470   : > { %4269 = vmatpush1.bf16.msra.mxu1 %v4268_v29  ;;  %v4286_v29 = vpack.c.bf16 %v1919_v24, %v1915_v23  ;;  %v1946_v24 = vld [vmem:[#allocation15 + $0x600] sm:$0xff] }
 0x471   : > { %4557 = vmatpush1.bf16.msra.mxu0 %v4556_v31  ;;  %4271 = vmatprep.subr.bf16.mxu1 %v4270_v33  ;;  %v1914_v31 = vld [vmem:[#allocation15 + $0x500] sm:$0xff]  ;;  %v1916_v33 = vld [vmem:[#allocation15 + $0x510] sm:$0xff] }
 0x472   : > { %4559 = vmatprep.subr.bf16.mxu0 %v4558_v38  ;;  %v1923_v38 = vld [vmem:[#allocation15 + $0x548] sm:$0xff]  ;;  %v4288_v43 = vpack.c.bf16 %v1918_v32, %v1914_v31  ;;  %v4576_v36 = vpack.c.bf16 %v1920_v37, %v1916_v33  ;;  %v1957_v32 = vld [vmem:[#allocation15 + $0x658] sm:$0xff] }
 0x473   : > { %2417 = vmatmul.mubr.f32.vlgmr.msra.gmra.mrb[18].mxu1 %v1697_v49  ;;  %v1959_v31 = vld [vmem:[#allocation15 + $0x668] sm:$0xff]  ;;  %v1961_v33 = vld [vmem:[#allocation15 + $0x678] sm:$0xff] }
 0x474   : > { %2772 = vmatmul.mubr.f32.vlgmr.msra.gmra.mrb[72].mxu0 %v1697_v49  ;;  %4273 = vmatpush1.bf16.msra.mxu1 %v4272_v45  ;;  %v4290_v45 = vpack.c.bf16 %v1927_v39, %v1923_v38  ;;  %v1924_v49 = vld [vmem:[#allocation15 + $0x550] sm:$0xff]  ;;  %v1954_v39 = vld [vmem:[#allocation15 + $0x640] sm:$0xff] }
 0x475   : > { %2487 = vmatprep.mubr.f32.mxu1 %v1718_v60  ;;  %4561 = vmatpush1.bf16.msra.mxu0 %v4560_v50  ;;  %v4578_v50 = vpack.c.bf16 %v1929_v42, %v1925_v41  ;;  %v4580_v59 = vpack.c.bf16 %v1928_v51, %v1924_v49  ;;  %v1958_v41 = vld [vmem:[#allocation15 + $0x660] sm:$0xff]  ;;  %v1956_v42 = vld [vmem:[#allocation15 + $0x650] sm:$0xff]  ;;  %v1969_v49 = vld [vmem:[#allocation15 + $0x6b8] sm:$0xff] }
 0x476   : > { %2842 = vmatprep.mubr.f32.mxu0 %v1718_v60  ;;  %4275 = vmatprep.subr.bf16.mxu1 %v4274_v55  ;;  %v1933_v55 = vld [vmem:[#allocation15 + $0x598] sm:$0xff]  ;;  %v4294_v60 = vpack.c.bf16 %v1935_v54, %v1931_v53  ;;  %v1962_v54 = vld [vmem:[#allocation15 + $0x680] sm:$0xff] }
 0x477   : > { %4563 = vmatprep.subr.bf16.mxu0 %v4562_v62  ;;  %v1930_v62 = vld [vmem:[#allocation15 + $0x580] sm:$0xff] }
 0x478   : > { %4277 = vmatpush1.bf16.msra.mxu1 %v4276_v3  ;;  %v4582_v3 = vpack.c.bf16 %v1937_v56, %v1933_v55  ;;  %v1966_v55 = vld [vmem:[#allocation15 + $0x6a0] sm:$0xff]  ;;  %v1964_v56 = vld [vmem:[#allocation15 + $0x690] sm:$0xff] }
 0x479   : > { %4565 = vmatpush1.bf16.msra.mxu0 %v4564_v4  ;;  %4279 = vmatprep.subr.bf16.mxu1 %v4278_v5  ;;  %v1936_v4 = vld [vmem:[#allocation15 + $0x5b0] sm:$0xff]  ;;  %v1939_v5 = vld [vmem:[#allocation15 + $0x5c8] sm:$0xff] }
 0x47a   : > { %4567 = vmatprep.subr.bf16.mxu0 %v4566_v1  ;;  %v4296_v1 = vpack.c.bf16 %v1934_v63, %v1930_v62  ;;  %v4584_v10 = vpack.c.bf16 %v1936_v4, %v1932_v2  ;;  %v4298_v11 = vpack.c.bf16 %v1943_v6, %v1939_v5  ;;  %v1975_v62 = vld [vmem:[#allocation15 + $0x6e8] sm:$0xff]  ;;  %v1973_v63 = vld [vmem:[#allocation15 + $0x6d8] sm:$0xff]  ;;  %v1970_v6 = vld [vmem:[#allocation15 + $0x6c0] sm:$0xff] }
 0x47b   : > { %v1977_v2 = vld [vmem:[#allocation15 + $0x6f8] sm:$0xff] }
 0x47c   : > { %4281 = vmatpush1.bf16.msra.mxu1 %v4280_v15  ;;  %v4586_v15 = vpack.c.bf16 %v1945_v8, %v1941_v7  ;;  %v1974_v7 = vld [vmem:[#allocation15 + $0x6e0] sm:$0xff]  ;;  %v1972_v8 = vld [vmem:[#allocation15 + $0x6d0] sm:$0xff] }
 0x47d   : > { %4569 = vmatpush1.bf16.msra.mxu0 %v4568_v16  ;;  %4283 = vmatprep.subr.bf16.mxu1 %v4282_v17  ;;  %v1944_v16 = vld [vmem:[#allocation15 + $0x5f0] sm:$0xff]  ;;  %v1947_v17 = vld [vmem:[#allocation15 + $0x608] sm:$0xff] }
 0x47e   : > { %4571 = vmatprep.subr.bf16.mxu0 %v4570_v21  ;;  %v4300_v21 = vpack.c.bf16 %v1942_v13, %v1938_v12  ;;  %v4588_v22 = vpack.c.bf16 %v1944_v16, %v1940_v14  ;;  %v4302_v23 = vpack.c.bf16 %v1951_v18, %v1947_v17  ;;  %v1979_v12 = vld [vmem:[#allocation15 + $0x708] sm:$0xff]  ;;  %v1981_v14 = vld [vmem:[#allocation15 + $0x718] sm:$0xff]  ;;  %v1726_v16 = vrot.slane %v6219_v52, 4 }
 0x47f   : > { %v1983_v13 = vld [vmem:[#allocation15 + $0x728] sm:$0xff]  ;;  %v4316_v17 = vpack.c.bf16 %v1974_v7, %v1970_v6 }
 0x480   : > { %4285 = vmatpush1.bf16.msra.mxu1 %v4284_v27  ;;  %v4590_v27 = vpack.c.bf16 %v1953_v20, %v1949_v19  ;;  %v4318_v19 = vpack.c.bf16 %v1983_v13, %v1979_v12  ;;  %v1978_v20 = vld [vmem:[#allocation15 + $0x700] sm:$0xff]  ;;  %v2008_v13 = vld [vmem:[#allocation15 + $0x7f0] sm:$0xff] }
 0x481   : > { %4573 = vmatpush1.bf16.msra.mxu0 %v4572_v28  ;;  %4287 = vmatprep.subr.bf16.mxu1 %v4286_v29  ;;  %v1952_v28 = vld [vmem:[#allocation15 + $0x630] sm:$0xff]  ;;  %v1955_v29 = vld [vmem:[#allocation15 + $0x648] sm:$0xff] }
 0x482   : > { %4575 = vmatprep.subr.bf16.mxu0 %v4574_v35  ;;  %v4304_v35 = vpack.c.bf16 %v1950_v25, %v1946_v24  ;;  %v4592_v37 = vpack.c.bf16 %v1952_v28, %v1948_v26  ;;  %v4306_v38 = vpack.c.bf16 %v1959_v31, %v1955_v29  ;;  %v1984_v25 = vld [vmem:[#allocation15 + $0x730] sm:$0xff]  ;;  %v1987_v26 = vld [vmem:[#allocation15 + $0x748] sm:$0xff]  ;;  %v1989_v28 = vld [vmem:[#allocation15 + $0x758] sm:$0xff]  ;;  %v1727_v31 = vadd.f32 %v1726_v16, %v6219_v52 }
 0x483   : > { %v1993_v29 = vld [vmem:[#allocation15 + $0x778] sm:$0xff] }
 0x484   : > { %4289 = vmatpush1.bf16.msra.mxu1 %v4288_v43  ;;  %v4594_v43 = vpack.c.bf16 %v1961_v33, %v1957_v32  ;;  %v2013_v16 = vld [vmem:[#allocation15 + $0x818] sm:$0xff] }
 0x485   : > { %4577 = vmatpush1.bf16.msra.mxu0 %v4576_v36  ;;  %4291 = vmatprep.subr.bf16.mxu1 %v4290_v45  ;;  %v1960_v36 = vld [vmem:[#allocation15 + $0x670] sm:$0xff]  ;;  %v1963_v45 = vld [vmem:[#allocation15 + $0x688] sm:$0xff] }
 0x486   : > { %4579 = vmatprep.subr.bf16.mxu0 %v4578_v50  ;;  %v4308_v50 = vpack.c.bf16 %v1958_v41, %v1954_v39  ;;  %v4596_v51 = vpack.c.bf16 %v1960_v36, %v1956_v42  ;;  %v4310_v53 = vpack.c.bf16 %v1967_v46, %v1963_v45  ;;  %v1988_v39 = vld [vmem:[#allocation15 + $0x750] sm:$0xff]  ;;  %v4610_v42 = vpack.c.bf16 %v1993_v29, %v1989_v28  ;;  %v1995_v36 = vld [vmem:[#allocation15 + $0x788] sm:$0xff]  ;;  %v1997_v46 = vld [vmem:[#allocation15 + $0x798] sm:$0xff] }
 0x487   : > { %v1999_v45 = vld [vmem:[#allocation15 + $0x7a8] sm:$0xff] }
 0x488   : > { %4293 = vmatpush1.bf16.msra.mxu1 %v4292_v58  ;;  %v4598_v58 = vpack.c.bf16 %v1969_v49, %v1965_v47  ;;  %v2001_v47 = vld [vmem:[#allocation15 + $0x7b8] sm:$0xff]  ;;  %v1728_v49 = vrot.slane %v1727_v31, 2  ;;  %v2019_v29 = vld [vmem:[#allocation15 + $0x848] sm:$0xff] }
 0x489   : > { %4581 = vmatpush1.bf16.msra.mxu0 %v4580_v59  ;;  %4295 = vmatprep.subr.bf16.mxu1 %v4294_v60  ;;  %v1968_v59 = vld [vmem:[#allocation15 + $0x6b0] sm:$0xff]  ;;  %v1971_v60 = vld [vmem:[#allocation15 + $0x6c8] sm:$0xff] }
 0x48a   : > { %4583 = vmatprep.subr.bf16.mxu0 %v4582_v3  ;;  %v4312_v3 = vpack.c.bf16 %v1966_v55, %v1962_v54  ;;  %v4600_v4 = vpack.c.bf16 %v1968_v59, %v1964_v56  ;;  %v4314_v5 = vpack.c.bf16 %v1975_v62, %v1971_v60  ;;  %v1994_v54 = vld [vmem:[#allocation15 + $0x780] sm:$0xff]  ;;  %v1996_v56 = vld [vmem:[#allocation15 + $0x790] sm:$0xff]  ;;  %v4614_v59 = vpack.c.bf16 %v2001_v47, %v1997_v46  ;;  %v2003_v62 = vld [vmem:[#allocation15 + $0x7c8] sm:$0xff] }
 0x48b   : > { %v1998_v55 = vld [vmem:[#allocation15 + $0x7a0] sm:$0xff]  ;;  %v2000_v60 = vld [vmem:[#allocation15 + $0x7b0] sm:$0xff]  ;;  %v2031_v46 = vld [vmem:[#allocation15 + $0x8a8] sm:$0xff] }
 0x48c   : > { %4297 = vmatpush1.bf16.msra.mxu1 %v4296_v1  ;;  %v1705_v1 = vrot.slane %v6201_v40, 4  ;;  %v4616_v6 = vpack.c.bf16 %v2000_v60, %v1996_v56  ;;  %v2026_v56 = vld [vmem:[#allocation15 + $0x880] sm:$0xff] }
 0x48d   : > { %4585 = vmatpush1.bf16.msra.mxu0 %v4584_v10  ;;  %4299 = vmatprep.subr.bf16.mxu1 %v4298_v11  ;;  %v4602_v10 = vpack.c.bf16 %v1977_v2, %v1973_v63  ;;  %v1976_v11 = vld [vmem:[#allocation15 + $0x6f0] sm:$0xff]  ;;  %v2007_v63 = vld [vmem:[#allocation15 + $0x7e8] sm:$0xff]  ;;  %v2005_v2 = vld [vmem:[#allocation15 + $0x7d8] sm:$0xff] }
 0x48e   : > { %4587 = vmatprep.subr.bf16.mxu0 %v4586_v15  ;;  %v1985_v15 = vld [vmem:[#allocation15 + $0x738] sm:$0xff]  ;;  %v4604_v18 = vpack.c.bf16 %v1976_v11, %v1972_v8  ;;  %v4330_v7 = vpack.c.bf16 %v2007_v63, %v2003_v62  ;;  %v2002_v8 = vld [vmem:[#allocation15 + $0x7c0] sm:$0xff]  ;;  %v2032_v62 = vld [vmem:[#allocation15 + $0x8b0] sm:$0xff] }
 0x48f   : > { %v4606_v24 = vpack.c.bf16 %v1985_v15, %v1981_v14  ;;  %v2011_v14 = vld [vmem:[#allocation15 + $0x808] sm:$0xff] }
 0x490   : > { %4301 = vmatpush1.bf16.msra.mxu1 %v4300_v21  ;;  %v1982_v21 = vld [vmem:[#allocation15 + $0x720] sm:$0xff]  ;;  %v2015_v15 = vld [vmem:[#allocation15 + $0x828] sm:$0xff] }
 0x491   : > { %4589 = vmatpush1.bf16.msra.mxu0 %v4588_v22  ;;  %4303 = vmatprep.subr.bf16.mxu1 %v4302_v23  ;;  %v1980_v22 = vld [vmem:[#allocation15 + $0x710] sm:$0xff]  ;;  %v1706_v23 = vadd.f32 %v1705_v1, %v6201_v40  ;;  %v4320_v32 = vpack.c.bf16 %v1982_v21, %v1978_v20  ;;  %v2006_v1 = vld [vmem:[#allocation15 + $0x7e0] sm:$0xff]  ;;  %v2035_v63 = vld [vmem:[#allocation15 + $0x8c8] sm:$0xff] }
 0x492   : > { %4591 = vmatprep.subr.bf16.mxu0 %v4590_v27  ;;  %v1991_v27 = vld [vmem:[#allocation15 + $0x768] sm:$0xff]  ;;  %v4608_v33 = vpack.c.bf16 %v1984_v25, %v1980_v22  ;;  %v4334_v22 = vpack.c.bf16 %v2015_v15, %v2011_v14  ;;  %v2045_v15 = vld [vmem:[#allocation15 + $0x918] sm:$0xff] }
 0x493   : > { %v1707_v41 = vrot.slane %v1706_v23, 2  ;;  %v2047_v14 = vld [vmem:[#allocation15 + $0x928] sm:$0xff] }
 0x494   : > { %4305 = vmatpush1.bf16.msra.mxu1 %v4304_v35  ;;  %v4322_v35 = vpack.c.bf16 %v1991_v27, %v1987_v26  ;;  %v2012_v26 = vld [vmem:[#allocation15 + $0x810] sm:$0xff] }
 0x495   : > { %4593 = vmatpush1.bf16.msra.mxu0 %v4592_v37  ;;  %4307 = vmatprep.subr.bf16.mxu1 %v4306_v38  ;;  %v1986_v37 = vld [vmem:[#allocation15 + $0x740] sm:$0xff]  ;;  %v2016_v27 = vld [vmem:[#allocation15 + $0x830] sm:$0xff] }
 0x496   : > { %4595 = vmatprep.subr.bf16.mxu0 %v4594_v43  ;;  %v1990_v38 = vld [vmem:[#allocation15 + $0x760] sm:$0xff]  ;;  %v1992_v43 = vld [vmem:[#allocation15 + $0x770] sm:$0xff] }
 0x498   : > { %4309 = vmatpush1.bf16.msra.mxu1 %v4308_v50  ;;  %v4324_v50 = vpack.c.bf16 %v1990_v38, %v1986_v37  ;;  %v4624_v38 = vpack.c.bf16 %v2016_v27, %v2012_v26  ;;  %v2055_v26 = vld [vmem:[#allocation15 + $0x968] sm:$0xff]  ;;  %v2053_v27 = vld [vmem:[#allocation15 + $0x958] sm:$0xff] }
 0x499   : > { %4597 = vmatpush1.bf16.msra.mxu0 %v4596_v51  ;;  %4311 = vmatprep.subr.bf16.mxu1 %v4310_v53  ;;  %v4612_v51 = vpack.c.bf16 %v1992_v43, %v1988_v39  ;;  %v4326_v53 = vpack.c.bf16 %v1999_v45, %v1995_v36  ;;  %v2018_v39 = vld [vmem:[#allocation15 + $0x840] sm:$0xff]  ;;  %v2024_v36 = vld [vmem:[#allocation15 + $0x870] sm:$0xff]  ;;  %v2027_v45 = vld [vmem:[#allocation15 + $0x888] sm:$0xff] }
 0x49a   : > { %4599 = vmatprep.subr.bf16.mxu0 %v4598_v58  ;;  %v1708_v58 = vadd.f32 %v1707_v41, %v1706_v23  ;;  %v2010_v23 = vld [vmem:[#allocation15 + $0x800] sm:$0xff] }
 0x49b   : > { %v2022_v41 = vld [vmem:[#allocation15 + $0x860] sm:$0xff] }
 0x49c   : > { %4313 = vmatpush1.bf16.msra.mxu1 %v4312_v3  ;;  %v2009_v3 = vld [vmem:[#allocation15 + $0x7f8] sm:$0xff]  ;;  %v1709_v11 = vrot.slane %v1708_v58, 1 }
 0x49d   : > { %4601 = vmatpush1.bf16.msra.mxu0 %v4600_v4  ;;  %4315 = vmatprep.subr.bf16.mxu1 %v4314_v5  ;;  %v1729_v4 = vadd.f32 %v1728_v49, %v1727_v31  ;;  %v4328_v5 = vpack.c.bf16 %v1998_v55, %v1994_v54  ;;  %v4618_v12 = vpack.c.bf16 %v2009_v3, %v2005_v2  ;;  %v2023_v31 = vld [vmem:[#allocation15 + $0x868] sm:$0xff]  ;;  %v2037_v3 = vld [vmem:[#allocation15 + $0x8d8] sm:$0xff] }
 0x49e   : > { %4603 = vmatprep.subr.bf16.mxu0 %v4602_v10  ;;  %v2004_v10 = vld [vmem:[#allocation15 + $0x7d0] sm:$0xff]  ;;  %v1710_v21 = vadd.f32 %v1709_v11, %v1708_v58  ;;  %v4338_v43 = vpack.c.bf16 %v2023_v31, %v2019_v29  ;;  %v4342_v55 = vpack.c.bf16 %v2031_v46, %v2027_v45  ;;  %v2030_v58 = vld [vmem:[#allocation15 + $0x8a0] sm:$0xff]  ;;  %v2039_v2 = vld [vmem:[#allocation15 + $0x8e8] sm:$0xff] }
 0x49f   : > { %v4620_v20 = vpack.c.bf16 %v2008_v13, %v2004_v10  ;;  %v2036_v10 = vld [vmem:[#allocation15 + $0x8d0] sm:$0xff]  ;;  %v2043_v13 = vld [vmem:[#allocation15 + $0x908] sm:$0xff] }
 0x4a0   : > { %4317 = vmatpush1.bf16.msra.mxu1 %v4316_v17  ;;  %v2017_v17 = vld [vmem:[#allocation15 + $0x838] sm:$0xff]  ;;  %v1711_v37 = vmul.f32 0.125, %v1710_v21  ;;  %v2046_v21 = vld [vmem:[#allocation15 + $0x920] sm:$0xff] }
 0x4a1   : > { %4605 = vmatpush1.bf16.msra.mxu0 %v4604_v18  ;;  %4319 = vmatprep.subr.bf16.mxu1 %v4318_v19  ;;  %v1730_v18 = vrot.slane %v1729_v4, 1  ;;  %v4332_v19 = vpack.c.bf16 %v2006_v1, %v2002_v8  ;;  %v4622_v25 = vpack.c.bf16 %v2017_v17, %v2013_v16  ;;  %v2034_v8 = vld [vmem:[#allocation15 + $0x8c0] sm:$0xff]  ;;  %v2049_v16 = vld [vmem:[#allocation15 + $0x938] sm:$0xff] }
 0x4a2   : > { %4607 = vmatprep.subr.bf16.mxu0 %v4606_v24  ;;  %v2014_v24 = vld [vmem:[#allocation15 + $0x820] sm:$0xff] }
 0x4a3   : > { %v1731_v28 = vadd.f32 %v1730_v18, %v1729_v4  ;;  %v2041_v4 = vld [vmem:[#allocation15 + $0x8f8] sm:$0xff]  ;;  %v2038_v1 = vld [vmem:[#allocation15 + $0x8e0] sm:$0xff] }
 0x4a4   : > { %4321 = vmatpush1.bf16.msra.mxu1 %v4320_v32  ;;  %v4336_v32 = vpack.c.bf16 %v2014_v24, %v2010_v23  ;;  %v4634_v11 = vpack.c.bf16 %v2041_v4, %v2037_v3  ;;  %v4348_v17 = vpack.c.bf16 %v2038_v1, %v2034_v8  ;;  %v4638_v23 = vpack.c.bf16 %v2049_v16, %v2045_v15  ;;  %v2048_v24 = vld [vmem:[#allocation15 + $0x930] sm:$0xff]  ;;  %v2070_v3 = vld [vmem:[#allocation15 + $0x9e0] sm:$0xff]  ;;  %v2079_v8 = vld [vmem:[#allocation15 + $0xa28] sm:$0xff] }
 0x4a5   : > { %4609 = vmatpush1.bf16.msra.mxu0 %v4608_v33  ;;  %4323 = vmatprep.subr.bf16.mxu1 %v4322_v35  ;;  %v2021_v33 = vld [vmem:[#allocation15 + $0x858] sm:$0xff]  ;;  %v1732_v47 = vmul.f32 0.125, %v1731_v28  ;;  %v2068_v4 = vld [vmem:[#allocation15 + $0x9d0] sm:$0xff]  ;;  %v2078_v15 = vld [vmem:[#allocation15 + $0xa20] sm:$0xff] }
 0x4a6   : > { %4611 = vmatprep.subr.bf16.mxu0 %v4610_v42  ;;  %v2025_v35 = vld [vmem:[#allocation15 + $0x878] sm:$0xff]  ;;  %v2020_v42 = vld [vmem:[#allocation15 + $0x850] sm:$0xff] }
 0x4a7   : > { %v4626_v49 = vpack.c.bf16 %v2025_v35, %v2021_v33  ;;  %v4628_v54 = vpack.c.bf16 %v2024_v36, %v2020_v42  ;;  %v2057_v28 = vld [vmem:[#allocation15 + $0x978] sm:$0xff]  ;;  %v2050_v33 = vld [vmem:[#allocation15 + $0x940] sm:$0xff]  ;;  %v2063_v42 = vld [vmem:[#allocation15 + $0x9a8] sm:$0xff] }
 0x4a8   : > { %4325 = vmatpush1.bf16.msra.mxu1 %v4324_v50  ;;  %v2029_v50 = vld [vmem:[#allocation15 + $0x898] sm:$0xff]  ;;  %v2054_v35 = vld [vmem:[#allocation15 + $0x960] sm:$0xff]  ;;  %v2076_v16 = vld [vmem:[#allocation15 + $0xa10] sm:$0xff] }
 0x4a9   : > { %4613 = vmatpush1.bf16.msra.mxu0 %v4612_v51  ;;  %4327 = vmatprep.subr.bf16.mxu1 %v4326_v53  ;;  %v2033_v51 = vld [vmem:[#allocation15 + $0x8b8] sm:$0xff]  ;;  %v4340_v53 = vpack.c.bf16 %v2022_v41, %v2018_v39  ;;  %v2056_v39 = vld [vmem:[#allocation15 + $0x970] sm:$0xff]  ;;  %v2059_v41 = vld [vmem:[#allocation15 + $0x988] sm:$0xff]  ;;  %v4356_v45 = vpack.c.bf16 %v2054_v35, %v2050_v33 }
 0x4aa   : > { %4615 = vmatprep.subr.bf16.mxu0 %v4614_v59  ;;  %v2028_v59 = vld [vmem:[#allocation15 + $0x890] sm:$0xff]  ;;  %v4630_v60 = vpack.c.bf16 %v2033_v51, %v2029_v50  ;;  %v2065_v36 = vld [vmem:[#allocation15 + $0x9b8] sm:$0xff]  ;;  %v2062_v50 = vld [vmem:[#allocation15 + $0x9a0] sm:$0xff] }
 0x4ab   : > { %v2060_v51 = vld [vmem:[#allocation15 + $0x990] sm:$0xff]  ;;  %v2077_v1 = vld [vmem:[#allocation15 + $0xa18] sm:$0xff]  ;;  %v2095_v33 = vld [vmem:[#allocation15 + $0xaa8] sm:$0xff] }
 0x4ac   : > { %4329 = vmatpush1.bf16.msra.mxu1 %v4328_v5  ;;  %v4344_v5 = vpack.c.bf16 %v2030_v58, %v2026_v56  ;;  %v2071_v56 = vld [vmem:[#allocation15 + $0x9e8] sm:$0xff]  ;;  %v2069_v58 = vld [vmem:[#allocation15 + $0x9d8] sm:$0xff] }
 0x4ad   : > { %4617 = vmatpush1.bf16.msra.mxu0 %v4616_v6  ;;  %4331 = vmatprep.subr.bf16.mxu1 %v4330_v7  ;;  %v4632_v6 = vpack.c.bf16 %v2032_v62, %v2028_v59  ;;  %v4346_v7 = vpack.c.bf16 %v2039_v2, %v2035_v63  ;;  %v2073_v59 = vld [vmem:[#allocation15 + $0x9f8] sm:$0xff]  ;;  %v2066_v2 = vld [vmem:[#allocation15 + $0x9c0] sm:$0xff] }
 0x4ae   : > { %4619 = vmatprep.subr.bf16.mxu0 %v4618_v12  ;;  %v2040_v12 = vld [vmem:[#allocation15 + $0x8f0] sm:$0xff]  ;;  %v2093_v35 = vld [vmem:[#allocation15 + $0xa98] sm:$0xff] }
 0x4af   : > { %v4636_v18 = vpack.c.bf16 %v2040_v12, %v2036_v10  ;;  %v2081_v10 = vld [vmem:[#allocation15 + $0xa38] sm:$0xff] }
 0x4b0   : > { %4333 = vmatpush1.bf16.msra.mxu1 %v4332_v19  ;;  %v4350_v19 = vpack.c.bf16 %v2047_v14, %v2043_v13  ;;  %v2074_v14 = vld [vmem:[#allocation15 + $0xa00] sm:$0xff] }
 0x4b1   : > { %4621 = vmatpush1.bf16.msra.mxu0 %v4620_v20  ;;  %4335 = vmatprep.subr.bf16.mxu1 %v4334_v22  ;;  %v2042_v20 = vld [vmem:[#allocation15 + $0x900] sm:$0xff]  ;;  %v2044_v22 = vld [vmem:[#allocation15 + $0x910] sm:$0xff] }
 0x4b2   : > { %4623 = vmatprep.subr.bf16.mxu0 %v4622_v25  ;;  %v2051_v25 = vld [vmem:[#allocation15 + $0x948] sm:$0xff]  ;;  %v4352_v29 = vpack.c.bf16 %v2046_v21, %v2042_v20  ;;  %v4640_v31 = vpack.c.bf16 %v2048_v24, %v2044_v22  ;;  %v2085_v21 = vld [vmem:[#allocation15 + $0xa58] sm:$0xff] }
 0x4b3   : > { %2488 = vmatmul.mubr.f32.vlgmr.msra.gmra.mrb[18].mxu1 %v1711_v37  ;;  %v2087_v20 = vld [vmem:[#allocation15 + $0xa68] sm:$0xff]  ;;  %v2089_v22 = vld [vmem:[#allocation15 + $0xa78] sm:$0xff] }
 0x4b4   : > { %2843 = vmatmul.mubr.f32.vlgmr.msra.gmra.mrb[72].mxu0 %v1711_v37  ;;  %4337 = vmatpush1.bf16.msra.mxu1 %v4336_v32  ;;  %v4354_v32 = vpack.c.bf16 %v2055_v26, %v2051_v25  ;;  %v2052_v37 = vld [vmem:[#allocation15 + $0x950] sm:$0xff]  ;;  %v2082_v26 = vld [vmem:[#allocation15 + $0xa40] sm:$0xff] }
 0x4b5   : > { %2558 = vmatprep.mubr.f32.mxu1 %v1732_v47  ;;  %4625 = vmatpush1.bf16.msra.mxu0 %v4624_v38  ;;  %v4642_v38 = vpack.c.bf16 %v2057_v28, %v2053_v27  ;;  %v4644_v46 = vpack.c.bf16 %v2056_v39, %v2052_v37  ;;  %v2086_v27 = vld [vmem:[#allocation15 + $0xa60] sm:$0xff]  ;;  %v2084_v28 = vld [vmem:[#allocation15 + $0xa50] sm:$0xff]  ;;  %v2097_v37 = vld [vmem:[#allocation15 + $0xab8] sm:$0xff] }
 0x4b6   : > { %2913 = vmatprep.mubr.f32.mxu0 %v1732_v47  ;;  %4339 = vmatprep.subr.bf16.mxu1 %v4338_v43  ;;  %v2061_v43 = vld [vmem:[#allocation15 + $0x998] sm:$0xff]  ;;  %v4358_v47 = vpack.c.bf16 %v2063_v42, %v2059_v41  ;;  %v2090_v42 = vld [vmem:[#allocation15 + $0xa80] sm:$0xff] }
 0x4b7   : > { %4627 = vmatprep.subr.bf16.mxu0 %v4626_v49  ;;  %v2058_v49 = vld [vmem:[#allocation15 + $0x980] sm:$0xff] }
 0x4b8   : > { %4341 = vmatpush1.bf16.msra.mxu1 %v4340_v53  ;;  %v4646_v53 = vpack.c.bf16 %v2065_v36, %v2061_v43  ;;  %v2094_v43 = vld [vmem:[#allocation15 + $0xaa0] sm:$0xff]  ;;  %v2092_v36 = vld [vmem:[#allocation15 + $0xa90] sm:$0xff] }
 0x4b9   : > { %4629 = vmatpush1.bf16.msra.mxu0 %v4628_v54  ;;  %4343 = vmatprep.subr.bf16.mxu1 %v4342_v55  ;;  %v2064_v54 = vld [vmem:[#allocation15 + $0x9b0] sm:$0xff]  ;;  %v2067_v55 = vld [vmem:[#allocation15 + $0x9c8] sm:$0xff] }
 0x4ba   : > { %4631 = vmatprep.subr.bf16.mxu0 %v4630_v60  ;;  %v4360_v60 = vpack.c.bf16 %v2062_v50, %v2058_v49  ;;  %v4648_v62 = vpack.c.bf16 %v2064_v54, %v2060_v51  ;;  %v4362_v63 = vpack.c.bf16 %v2071_v56, %v2067_v55  ;;  %v2103_v49 = vld [vmem:[#allocation15 + $0xae8] sm:$0xff]  ;;  %v2101_v50 = vld [vmem:[#allocation15 + $0xad8] sm:$0xff]  ;;  %v2098_v56 = vld [vmem:[#allocation15 + $0xac0] sm:$0xff] }
 0x4bb   : > { %v2105_v51 = vld [vmem:[#allocation15 + $0xaf8] sm:$0xff] }
 0x4bc   : > { %4345 = vmatpush1.bf16.msra.mxu1 %v4344_v5  ;;  %v4650_v5 = vpack.c.bf16 %v2073_v59, %v2069_v58  ;;  %v2102_v58 = vld [vmem:[#allocation15 + $0xae0] sm:$0xff]  ;;  %v2100_v59 = vld [vmem:[#allocation15 + $0xad0] sm:$0xff] }
 0x4bd   : > { %4633 = vmatpush1.bf16.msra.mxu0 %v4632_v6  ;;  %4347 = vmatprep.subr.bf16.mxu1 %v4346_v7  ;;  %v2072_v6 = vld [vmem:[#allocation15 + $0x9f0] sm:$0xff]  ;;  %v2075_v7 = vld [vmem:[#allocation15 + $0xa08] sm:$0xff] }
 0x4be   : > { %4635 = vmatprep.subr.bf16.mxu0 %v4634_v11  ;;  %v4364_v11 = vpack.c.bf16 %v2070_v3, %v2066_v2  ;;  %v4652_v12 = vpack.c.bf16 %v2072_v6, %v2068_v4  ;;  %v4366_v13 = vpack.c.bf16 %v2079_v8, %v2075_v7  ;;  %v2107_v2 = vld [vmem:[#allocation15 + $0xb08] sm:$0xff]  ;;  %v2109_v4 = vld [vmem:[#allocation15 + $0xb18] sm:$0xff]  ;;  %v1740_v6 = vrot.slane %v6231_v61, 4 }
 0x4bf   : > { %v2111_v3 = vld [vmem:[#allocation15 + $0xb28] sm:$0xff]  ;;  %v4380_v7 = vpack.c.bf16 %v2102_v58, %v2098_v56 }
 0x4c0   : > { %4349 = vmatpush1.bf16.msra.mxu1 %v4348_v17  ;;  %v4654_v17 = vpack.c.bf16 %v2081_v10, %v2077_v1  ;;  %v4382_v1 = vpack.c.bf16 %v2111_v3, %v2107_v2  ;;  %v2106_v10 = vld [vmem:[#allocation15 + $0xb00] sm:$0xff]  ;;  %v2136_v3 = vld [vmem:[#allocation15 + $0xbf0] sm:$0xff] }
 0x4c1   : > { %4637 = vmatpush1.bf16.msra.mxu0 %v4636_v18  ;;  %4351 = vmatprep.subr.bf16.mxu1 %v4350_v19  ;;  %v2080_v18 = vld [vmem:[#allocation15 + $0xa30] sm:$0xff]  ;;  %v2083_v19 = vld [vmem:[#allocation15 + $0xa48] sm:$0xff] }
 0x4c2   : > { %4639 = vmatprep.subr.bf16.mxu0 %v4638_v23  ;;  %v4368_v23 = vpack.c.bf16 %v2078_v15, %v2074_v14  ;;  %v4656_v24 = vpack.c.bf16 %v2080_v18, %v2076_v16  ;;  %v4370_v25 = vpack.c.bf16 %v2087_v20, %v2083_v19  ;;  %v2112_v15 = vld [vmem:[#allocation15 + $0xb30] sm:$0xff]  ;;  %v2115_v16 = vld [vmem:[#allocation15 + $0xb48] sm:$0xff]  ;;  %v2117_v18 = vld [vmem:[#allocation15 + $0xb58] sm:$0xff]  ;;  %v1741_v20 = vadd.f32 %v1740_v6, %v6231_v61 }
 0x4c3   : > { %v2121_v19 = vld [vmem:[#allocation15 + $0xb78] sm:$0xff] }
 0x4c4   : > { %4353 = vmatpush1.bf16.msra.mxu1 %v4352_v29  ;;  %v4658_v29 = vpack.c.bf16 %v2089_v22, %v2085_v21  ;;  %v2141_v6 = vld [vmem:[#allocation15 + $0xc18] sm:$0xff] }
 0x4c5   : > { %4641 = vmatpush1.bf16.msra.mxu0 %v4640_v31  ;;  %4355 = vmatprep.subr.bf16.mxu1 %v4354_v32  ;;  %v2088_v31 = vld [vmem:[#allocation15 + $0xa70] sm:$0xff]  ;;  %v2091_v32 = vld [vmem:[#allocation15 + $0xa88] sm:$0xff] }
 0x4c6   : > { %4643 = vmatprep.subr.bf16.mxu0 %v4642_v38  ;;  %v4372_v38 = vpack.c.bf16 %v2086_v27, %v2082_v26  ;;  %v4660_v39 = vpack.c.bf16 %v2088_v31, %v2084_v28  ;;  %v4374_v41 = vpack.c.bf16 %v2095_v33, %v2091_v32  ;;  %v2116_v26 = vld [vmem:[#allocation15 + $0xb50] sm:$0xff]  ;;  %v4674_v28 = vpack.c.bf16 %v2121_v19, %v2117_v18  ;;  %v2123_v31 = vld [vmem:[#allocation15 + $0xb88] sm:$0xff]  ;;  %v2125_v33 = vld [vmem:[#allocation15 + $0xb98] sm:$0xff] }
 0x4c7   : > { %v2127_v32 = vld [vmem:[#allocation15 + $0xba8] sm:$0xff] }
 0x4c8   : > { %4357 = vmatpush1.bf16.msra.mxu1 %v4356_v45  ;;  %v4662_v45 = vpack.c.bf16 %v2097_v37, %v2093_v35  ;;  %v2129_v35 = vld [vmem:[#allocation15 + $0xbb8] sm:$0xff]  ;;  %v1742_v37 = vrot.slane %v1741_v20, 2  ;;  %v2147_v19 = vld [vmem:[#allocation15 + $0xc48] sm:$0xff] }
 0x4c9   : > { %4645 = vmatpush1.bf16.msra.mxu0 %v4644_v46  ;;  %4359 = vmatprep.subr.bf16.mxu1 %v4358_v47  ;;  %v2096_v46 = vld [vmem:[#allocation15 + $0xab0] sm:$0xff]  ;;  %v2099_v47 = vld [vmem:[#allocation15 + $0xac8] sm:$0xff] }
 0x4ca   : > { %4647 = vmatprep.subr.bf16.mxu0 %v4646_v53  ;;  %v4376_v53 = vpack.c.bf16 %v2094_v43, %v2090_v42  ;;  %v4664_v54 = vpack.c.bf16 %v2096_v46, %v2092_v36  ;;  %v4378_v55 = vpack.c.bf16 %v2103_v49, %v2099_v47  ;;  %v2122_v42 = vld [vmem:[#allocation15 + $0xb80] sm:$0xff]  ;;  %v2124_v36 = vld [vmem:[#allocation15 + $0xb90] sm:$0xff]  ;;  %v4678_v46 = vpack.c.bf16 %v2129_v35, %v2125_v33  ;;  %v2131_v49 = vld [vmem:[#allocation15 + $0xbc8] sm:$0xff] }
 0x4cb   : > { %v2126_v43 = vld [vmem:[#allocation15 + $0xba0] sm:$0xff]  ;;  %v2128_v47 = vld [vmem:[#allocation15 + $0xbb0] sm:$0xff]  ;;  %v2159_v33 = vld [vmem:[#allocation15 + $0xca8] sm:$0xff] }
 0x4cc   : > { %4361 = vmatpush1.bf16.msra.mxu1 %v4360_v60  ;;  %v1719_v60 = vrot.slane %v6213_v48, 4  ;;  %v4680_v56 = vpack.c.bf16 %v2128_v47, %v2124_v36  ;;  %v2154_v36 = vld [vmem:[#allocation15 + $0xc80] sm:$0xff] }
 0x4cd   : > { %4649 = vmatpush1.bf16.msra.mxu0 %v4648_v62  ;;  %4363 = vmatprep.subr.bf16.mxu1 %v4362_v63  ;;  %v4666_v62 = vpack.c.bf16 %v2105_v51, %v2101_v50  ;;  %v2104_v63 = vld [vmem:[#allocation15 + $0xaf0] sm:$0xff]  ;;  %v2135_v50 = vld [vmem:[#allocation15 + $0xbe8] sm:$0xff]  ;;  %v2133_v51 = vld [vmem:[#allocation15 + $0xbd8] sm:$0xff] }
 0x4ce   : > { %4651 = vmatprep.subr.bf16.mxu0 %v4650_v5  ;;  %v2113_v5 = vld [vmem:[#allocation15 + $0xb38] sm:$0xff]  ;;  %v4668_v8 = vpack.c.bf16 %v2104_v63, %v2100_v59  ;;  %v4394_v58 = vpack.c.bf16 %v2135_v50, %v2131_v49  ;;  %v2130_v59 = vld [vmem:[#allocation15 + $0xbc0] sm:$0xff]  ;;  %v2160_v49 = vld [vmem:[#allocation15 + $0xcb0] sm:$0xff] }
 0x4cf   : > { %v4670_v14 = vpack.c.bf16 %v2113_v5, %v2109_v4  ;;  %v2139_v4 = vld [vmem:[#allocation15 + $0xc08] sm:$0xff] }
 0x4d0   : > { %4365 = vmatpush1.bf16.msra.mxu1 %v4364_v11  ;;  %v2110_v11 = vld [vmem:[#allocation15 + $0xb20] sm:$0xff]  ;;  %v2143_v5 = vld [vmem:[#allocation15 + $0xc28] sm:$0xff] }
 0x4d1   : > { %4653 = vmatpush1.bf16.msra.mxu0 %v4652_v12  ;;  %4367 = vmatprep.subr.bf16.mxu1 %v4366_v13  ;;  %v2108_v12 = vld [vmem:[#allocation15 + $0xb10] sm:$0xff]  ;;  %v1720_v13 = vadd.f32 %v1719_v60, %v6213_v48  ;;  %v4384_v21 = vpack.c.bf16 %v2110_v11, %v2106_v10  ;;  %v2134_v60 = vld [vmem:[#allocation15 + $0xbe0] sm:$0xff]  ;;  %v2163_v50 = vld [vmem:[#allocation15 + $0xcc8] sm:$0xff] }
 0x4d2   : > { %4655 = vmatprep.subr.bf16.mxu0 %v4654_v17  ;;  %v2119_v17 = vld [vmem:[#allocation15 + $0xb68] sm:$0xff]  ;;  %v4672_v22 = vpack.c.bf16 %v2112_v15, %v2108_v12  ;;  %v4398_v12 = vpack.c.bf16 %v2143_v5, %v2139_v4  ;;  %v2173_v5 = vld [vmem:[#allocation15 + $0xd18] sm:$0xff] }
 0x4d3   : > { %v1721_v27 = vrot.slane %v1720_v13, 2  ;;  %v2175_v4 = vld [vmem:[#allocation15 + $0xd28] sm:$0xff] }
 0x4d4   : > { %4369 = vmatpush1.bf16.msra.mxu1 %v4368_v23  ;;  %v4386_v23 = vpack.c.bf16 %v2119_v17, %v2115_v16  ;;  %v2140_v16 = vld [vmem:[#allocation15 + $0xc10] sm:$0xff] }
 0x4d5   : > { %4657 = vmatpush1.bf16.msra.mxu0 %v4656_v24  ;;  %4371 = vmatprep.subr.bf16.mxu1 %v4370_v25  ;;  %v2114_v24 = vld [vmem:[#allocation15 + $0xb40] sm:$0xff]  ;;  %v2144_v17 = vld [vmem:[#allocation15 + $0xc30] sm:$0xff] }
 0x4d6   : > { %4659 = vmatprep.subr.bf16.mxu0 %v4658_v29  ;;  %v2118_v25 = vld [vmem:[#allocation15 + $0xb60] sm:$0xff]  ;;  %v2120_v29 = vld [vmem:[#allocation15 + $0xb70] sm:$0xff] }
 0x4d8   : > { %4373 = vmatpush1.bf16.msra.mxu1 %v4372_v38  ;;  %v4388_v38 = vpack.c.bf16 %v2118_v25, %v2114_v24  ;;  %v4688_v25 = vpack.c.bf16 %v2144_v17, %v2140_v16  ;;  %v2183_v16 = vld [vmem:[#allocation15 + $0xd68] sm:$0xff]  ;;  %v2181_v17 = vld [vmem:[#allocation15 + $0xd58] sm:$0xff] }
 0x4d9   : > { %4661 = vmatpush1.bf16.msra.mxu0 %v4660_v39  ;;  %4375 = vmatprep.subr.bf16.mxu1 %v4374_v41  ;;  %v4676_v39 = vpack.c.bf16 %v2120_v29, %v2116_v26  ;;  %v4390_v41 = vpack.c.bf16 %v2127_v32, %v2123_v31  ;;  %v2146_v26 = vld [vmem:[#allocation15 + $0xc40] sm:$0xff]  ;;  %v2152_v31 = vld [vmem:[#allocation15 + $0xc70] sm:$0xff]  ;;  %v2155_v32 = vld [vmem:[#allocation15 + $0xc88] sm:$0xff] }
 0x4da   : > { %4663 = vmatprep.subr.bf16.mxu0 %v4662_v45  ;;  %v1722_v45 = vadd.f32 %v1721_v27, %v1720_v13  ;;  %v2138_v13 = vld [vmem:[#allocation15 + $0xc00] sm:$0xff] }
 0x4db   : > { %v2150_v27 = vld [vmem:[#allocation15 + $0xc60] sm:$0xff] }
 0x4dc   : > { %4377 = vmatpush1.bf16.msra.mxu1 %v4376_v53  ;;  %v2137_v53 = vld [vmem:[#allocation15 + $0xbf8] sm:$0xff]  ;;  %v1723_v63 = vrot.slane %v1722_v45, 1 }
 0x4dd   : > { %4665 = vmatpush1.bf16.msra.mxu0 %v4664_v54  ;;  %4379 = vmatprep.subr.bf16.mxu1 %v4378_v55  ;;  %v1743_v54 = vadd.f32 %v1742_v37, %v1741_v20  ;;  %v4392_v55 = vpack.c.bf16 %v2126_v43, %v2122_v42  ;;  %v4682_v2 = vpack.c.bf16 %v2137_v53, %v2133_v51  ;;  %v2151_v20 = vld [vmem:[#allocation15 + $0xc68] sm:$0xff]  ;;  %v2165_v53 = vld [vmem:[#allocation15 + $0xcd8] sm:$0xff] }
 0x4de   : > { %4667 = vmatprep.subr.bf16.mxu0 %v4666_v62  ;;  %v2132_v62 = vld [vmem:[#allocation15 + $0xbd0] sm:$0xff]  ;;  %v1724_v11 = vadd.f32 %v1723_v63, %v1722_v45  ;;  %v4402_v29 = vpack.c.bf16 %v2151_v20, %v2147_v19  ;;  %v4406_v43 = vpack.c.bf16 %v2159_v33, %v2155_v32  ;;  %v2158_v45 = vld [vmem:[#allocation15 + $0xca0] sm:$0xff]  ;;  %v2167_v51 = vld [vmem:[#allocation15 + $0xce8] sm:$0xff] }
 0x4df   : > { %v4684_v10 = vpack.c.bf16 %v2136_v3, %v2132_v62  ;;  %v2164_v62 = vld [vmem:[#allocation15 + $0xcd0] sm:$0xff]  ;;  %v2171_v3 = vld [vmem:[#allocation15 + $0xd08] sm:$0xff] }
 0x4e0   : > { %4381 = vmatpush1.bf16.msra.mxu1 %v4380_v7  ;;  %v2145_v7 = vld [vmem:[#allocation15 + $0xc38] sm:$0xff]  ;;  %v1725_v24 = vmul.f32 0.125, %v1724_v11  ;;  %v2174_v11 = vld [vmem:[#allocation15 + $0xd20] sm:$0xff] }
 0x4e1   : > { %4669 = vmatpush1.bf16.msra.mxu0 %v4668_v8  ;;  %4383 = vmatprep.subr.bf16.mxu1 %v4382_v1  ;;  %v1744_v8 = vrot.slane %v1743_v54, 1  ;;  %v4396_v1 = vpack.c.bf16 %v2134_v60, %v2130_v59  ;;  %v4686_v15 = vpack.c.bf16 %v2145_v7, %v2141_v6  ;;  %v2162_v59 = vld [vmem:[#allocation15 + $0xcc0] sm:$0xff]  ;;  %v2177_v6 = vld [vmem:[#allocation15 + $0xd38] sm:$0xff] }
 0x4e2   : > { %4671 = vmatprep.subr.bf16.mxu0 %v4670_v14  ;;  %v2142_v14 = vld [vmem:[#allocation15 + $0xc20] sm:$0xff] }
 0x4e3   : > { %v1745_v18 = vadd.f32 %v1744_v8, %v1743_v54  ;;  %v2169_v54 = vld [vmem:[#allocation15 + $0xcf8] sm:$0xff]  ;;  %v2166_v60 = vld [vmem:[#allocation15 + $0xce0] sm:$0xff] }
 0x4e4   : > { %4385 = vmatpush1.bf16.msra.mxu1 %v4384_v21  ;;  %v4400_v21 = vpack.c.bf16 %v2142_v14, %v2138_v13  ;;  %v4698_v63 = vpack.c.bf16 %v2169_v54, %v2165_v53  ;;  %v4412_v7 = vpack.c.bf16 %v2166_v60, %v2162_v59  ;;  %v4702_v13 = vpack.c.bf16 %v2177_v6, %v2173_v5  ;;  %v2176_v14 = vld [vmem:[#allocation15 + $0xd30] sm:$0xff]  ;;  %v2197_v53 = vld [vmem:[#allocation15 + $0xdd8] sm:$0xff]  ;;  %v2194_v60 = vld [vmem:[#allocation15 + $0xdc0] sm:$0xff] }
 0x4e5   : > { %4673 = vmatpush1.bf16.msra.mxu0 %v4672_v22  ;;  %4387 = vmatprep.subr.bf16.mxu1 %v4386_v23  ;;  %v2149_v22 = vld [vmem:[#allocation15 + $0xc58] sm:$0xff]  ;;  %v1746_v35 = vmul.f32 0.125, %v1745_v18  ;;  %v2196_v5 = vld [vmem:[#allocation15 + $0xdd0] sm:$0xff] }
 0x4e6   : > { %4675 = vmatprep.subr.bf16.mxu0 %v4674_v28  ;;  %v2153_v23 = vld [vmem:[#allocation15 + $0xc78] sm:$0xff]  ;;  %v2148_v28 = vld [vmem:[#allocation15 + $0xc50] sm:$0xff] }
 0x4e7   : > { %v4690_v37 = vpack.c.bf16 %v2153_v23, %v2149_v22  ;;  %v4692_v42 = vpack.c.bf16 %v2152_v31, %v2148_v28  ;;  %v2185_v18 = vld [vmem:[#allocation15 + $0xd78] sm:$0xff]  ;;  %v2178_v22 = vld [vmem:[#allocation15 + $0xd40] sm:$0xff]  ;;  %v2191_v28 = vld [vmem:[#allocation15 + $0xda8] sm:$0xff] }
 0x4e8   : > { %4389 = vmatpush1.bf16.msra.mxu1 %v4388_v38  ;;  %v2157_v38 = vld [vmem:[#allocation15 + $0xc98] sm:$0xff]  ;;  %v2182_v23 = vld [vmem:[#allocation15 + $0xd60] sm:$0xff]  ;;  %v2200_v6 = vld [vmem:[#allocation15 + $0xdf0] sm:$0xff] }
 0x4e9   : > { %4677 = vmatpush1.bf16.msra.mxu0 %v4676_v39  ;;  %4391 = vmatprep.subr.bf16.mxu1 %v4390_v41  ;;  %v2161_v39 = vld [vmem:[#allocation15 + $0xcb8] sm:$0xff]  ;;  %v4404_v41 = vpack.c.bf16 %v2150_v27, %v2146_v26  ;;  %v2184_v26 = vld [vmem:[#allocation15 + $0xd70] sm:$0xff]  ;;  %v2187_v27 = vld [vmem:[#allocation15 + $0xd88] sm:$0xff]  ;;  %v4420_v32 = vpack.c.bf16 %v2182_v23, %v2178_v22 }
 0x4ea   : > { %4679 = vmatprep.subr.bf16.mxu0 %v4678_v46  ;;  %v2156_v46 = vld [vmem:[#allocation15 + $0xc90] sm:$0xff]  ;;  %v4694_v47 = vpack.c.bf16 %v2161_v39, %v2157_v38  ;;  %v2193_v31 = vld [vmem:[#allocation15 + $0xdb8] sm:$0xff]  ;;  %v2190_v38 = vld [vmem:[#allocation15 + $0xda0] sm:$0xff] }
 0x4eb   : > { %v2201_v54 = vld [vmem:[#allocation15 + $0xdf8] sm:$0xff]  ;;  %v2204_v23 = vld [vmem:[#allocation15 + $0xe10] sm:$0xff] }
 0x4ec   : > { %4393 = vmatpush1.bf16.msra.mxu1 %v4392_v55  ;;  %v4408_v55 = vpack.c.bf16 %v2158_v45, %v2154_v36  ;;  %v4422_v36 = vpack.c.bf16 %v2191_v28, %v2187_v27  ;;  %v2215_v27 = vld [vmem:[#allocation15 + $0xe68] sm:$0xff]  ;;  %v2213_v28 = vld [vmem:[#allocation15 + $0xe58] sm:$0xff] }
 0x4ed   : > { %4681 = vmatpush1.bf16.msra.mxu0 %v4680_v56  ;;  %4395 = vmatprep.subr.bf16.mxu1 %v4394_v58  ;;  %v4696_v56 = vpack.c.bf16 %v2160_v49, %v2156_v46  ;;  %v4410_v58 = vpack.c.bf16 %v2167_v51, %v2163_v50  ;;  %v2188_v46 = vld [vmem:[#allocation15 + $0xd90] sm:$0xff]  ;;  %v2195_v49 = vld [vmem:[#allocation15 + $0xdc8] sm:$0xff] }
 0x4ee   : > { %4683 = vmatprep.subr.bf16.mxu0 %v4682_v2  ;;  %v2168_v2 = vld [vmem:[#allocation15 + $0xcf0] sm:$0xff]  ;;  %v2199_v51 = vld [vmem:[#allocation15 + $0xde8] sm:$0xff] }
 0x4ef   : > { %v4700_v8 = vpack.c.bf16 %v2168_v2, %v2164_v62  ;;  %v2198_v62 = vld [vmem:[#allocation15 + $0xde0] sm:$0xff] }
 0x4f0   : > { %4397 = vmatpush1.bf16.msra.mxu1 %v4396_v1  ;;  %v4414_v1 = vpack.c.bf16 %v2175_v4, %v2171_v3  ;;  %v4426_v3 = vpack.c.bf16 %v2199_v51, %v2195_v49  ;;  %v4714_v4 = vpack.c.bf16 %v2201_v54, %v2197_v53  ;;  %v2221_v51 = vld [vmem:[#allocation15 + $0xe98] sm:$0xff] }
 0x4f1   : > { %4685 = vmatpush1.bf16.msra.mxu0 %v4684_v10  ;;  %4399 = vmatprep.subr.bf16.mxu1 %v4398_v12  ;;  %v2170_v10 = vld [vmem:[#allocation15 + $0xd00] sm:$0xff]  ;;  %v2172_v12 = vld [vmem:[#allocation15 + $0xd10] sm:$0xff]  ;;  %v2225_v53 = vld [vmem:[#allocation15 + $0xeb8] sm:$0xff] }
 0x4f2   : > { %4687 = vmatprep.subr.bf16.mxu0 %v4686_v15  ;;  %v2179_v15 = vld [vmem:[#allocation15 + $0xd48] sm:$0xff]  ;;  %v4416_v19 = vpack.c.bf16 %v2174_v11, %v2170_v10  ;;  %v4704_v20 = vpack.c.bf16 %v2176_v14, %v2172_v12  ;;  %v2205_v11 = vld [vmem:[#allocation15 + $0xe18] sm:$0xff] }
 0x4f3   : > { %2559 = vmatmul.mubr.f32.vlgmr.msra.gmra.mrb[18].mxu1 %v1725_v24  ;;  %v2207_v10 = vld [vmem:[#allocation15 + $0xe28] sm:$0xff]  ;;  %v2209_v12 = vld [vmem:[#allocation15 + $0xe38] sm:$0xff] }
 0x4f4   : > { %2914 = vmatmul.mubr.f32.vlgmr.msra.gmra.mrb[72].mxu0 %v1725_v24  ;;  %4401 = vmatpush1.bf16.msra.mxu1 %v4400_v21  ;;  %v4418_v21 = vpack.c.bf16 %v2183_v16, %v2179_v15  ;;  %v4706_v24 = vpack.c.bf16 %v2185_v18, %v2181_v17  ;;  %v4716_v15 = vpack.c.bf16 %v2200_v6, %v2196_v5  ;;  %v2202_v17 = vld [vmem:[#allocation15 + $0xe00] sm:$0xff]  ;;  %v2224_v5 = vld [vmem:[#allocation15 + $0xeb0] sm:$0xff]  ;;  %v2227_v6 = vld [vmem:[#allocation15 + $0xec8] sm:$0xff] }
 0x4f5   : > { %2629 = vmatprep.mubr.f32.mxu1 %v1746_v35  ;;  %4689 = vmatpush1.bf16.msra.mxu0 %v4688_v25  ;;  %v2180_v25 = vld [vmem:[#allocation15 + $0xd50] sm:$0xff]  ;;  %v2206_v18 = vld [vmem:[#allocation15 + $0xe20] sm:$0xff]  ;;  %v4718_v22 = vpack.c.bf16 %v2209_v12, %v2205_v11 }
 0x4f6   : > { %2984 = vmatprep.mubr.f32.mxu0 %v1746_v35  ;;  %4403 = vmatprep.subr.bf16.mxu1 %v4402_v29  ;;  %v2189_v29 = vld [vmem:[#allocation15 + $0xd98] sm:$0xff]  ;;  %v4708_v35 = vpack.c.bf16 %v2184_v26, %v2180_v25  ;;  %v2211_v25 = vld [vmem:[#allocation15 + $0xe48] sm:$0xff] }
 0x4f7   : > { %4691 = vmatprep.subr.bf16.mxu0 %v4690_v37  ;;  %v2186_v37 = vld [vmem:[#allocation15 + $0xd80] sm:$0xff]  ;;  %v4710_v45 = vpack.c.bf16 %v2193_v31, %v2189_v29  ;;  %v2217_v29 = vld [vmem:[#allocation15 + $0xe78] sm:$0xff]  ;;  %v4432_v31 = vpack.c.bf16 %v2206_v18, %v2202_v17  ;;  %v1733_v17 = vrot.slane %v6225_v57, 4 }
 0x4f8   : > { %4405 = vmatpush1.bf16.msra.mxu1 %v4404_v41 }
 0x4f9   : > { %4693 = vmatpush1.bf16.msra.mxu0 %v4692_v42  ;;  %4407 = vmatprep.subr.bf16.mxu1 %v4406_v43 }
 0x4fa   : > { %4695 = vmatprep.subr.bf16.mxu0 %v4694_v47  ;;  %v2192_v47 = vld [vmem:[#allocation15 + $0xdb0] sm:$0xff] }
 0x4fb   : > { %v4712_v59 = vpack.c.bf16 %v2192_v47, %v2188_v46  ;;  %v2216_v46 = vld [vmem:[#allocation15 + $0xe70] sm:$0xff]  ;;  %v2219_v47 = vld [vmem:[#allocation15 + $0xe88] sm:$0xff] }
 0x4fc   : > { %4409 = vmatpush1.bf16.msra.mxu1 %v4408_v55  ;;  %v4424_v55 = vpack.c.bf16 %v2190_v38, %v2186_v37  ;;  %v2210_v37 = vld [vmem:[#allocation15 + $0xe40] sm:$0xff] }
 0x4fd   : > { %4697 = vmatpush1.bf16.msra.mxu0 %v4696_v56  ;;  %4411 = vmatprep.subr.bf16.mxu1 %v4410_v58  ;;  %v2214_v38 = vld [vmem:[#allocation15 + $0xe60] sm:$0xff] }
 0x4fe   : > { %4699 = vmatprep.subr.bf16.mxu0 %v4698_v63  ;;  %v4436_v54 = vpack.c.bf16 %v2214_v38, %v2210_v37  ;;  %v2234_v38 = vld [vmem:[#allocation15 + $0xf00] sm:$0xff] }
 0x500   : > { %4413 = vmatpush1.bf16.msra.mxu1 %v4412_v7  ;;  %v2203_v7 = vld [vmem:[#allocation15 + $0xe08] sm:$0xff] }
 0x501   : > { %4701 = vmatpush1.bf16.msra.mxu0 %v4700_v8  ;;  %4415 = vmatprep.subr.bf16.mxu1 %v4414_v1 }
 0x502   : > { %4703 = vmatprep.subr.bf16.mxu0 %v4702_v13  ;;  %v4428_v13 = vpack.c.bf16 %v2198_v62, %v2194_v60  ;;  %v2222_v60 = vld [vmem:[#allocation15 + $0xea0] sm:$0xff] }
 0x504   : > { %4417 = vmatpush1.bf16.msra.mxu1 %v4416_v19 }
 0x505   : > { %4705 = vmatpush1.bf16.msra.mxu0 %v4704_v20  ;;  %v1288_v33 = vpop.f32.mrb[0].mxu1  ;;  %4419 = vmatprep.subr.bf16.mxu1 %v4418_v21  ;;  %v4430_v21 = vpack.c.bf16 %v2207_v10, %v2203_v7  ;;  %v2233_v10 = vld [vmem:[#allocation15 + $0xef8] sm:$0xff] }
 0x506   : > { %v1443_v39 = vpop.f32.mrb[54].mxu0  ;;  %v4064_v41 = vpop.f32.mrb[1].mxu1  ;;  %4707 = vmatprep.subr.bf16.mxu0 %v4706_v24  ;;  %v1487_v42 = vmul.f32 %v1288_v33, %v1288_v33  ;;  %v1559_v43 = vmul.f32 %v1288_v33, %v6191_v30  ;;  %v2208_v24 = vld [vmem:[#allocation15 + $0xe30] sm:$0xff] }
 0x507   : > { %v4109_v50 = vpop.f32.mrb[55].mxu0  ;;  %v1523_v56 = vmul.f32 %v1443_v39, %v1443_v39  ;;  %v1604_v8 = vmul.f32 %v1443_v39, %v6191_v30  ;;  %v4720_v33 = vpack.c.bf16 %v2208_v24, %v2204_v23  ;;  %v2228_v23 = vld [vmem:[#allocation15 + $0xed0] sm:$0xff] }
 0x508   : > { %4421 = vmatpush1.bf16.msra.mxu1 %v4420_v32  ;;  %1496 = vadd.xlane.f32.xlu1 %v1487_v42  ;;  %v2223_v50 = vld [vmem:[#allocation15 + $0xea8] sm:$0xff]  ;;  %v2232_v24 = vld [vmem:[#allocation15 + $0xef0] sm:$0xff] }
 0x509   : > { %4709 = vmatpush1.bf16.msra.mxu0 %v4708_v35  ;;  %1568 = vadd.xlane.f32.xlu0 %v1559_v43  ;;  %v1293_v58 = vpop.f32.mrb[2].mxu1  ;;  %v4434_v43 = vpack.c.bf16 %v2215_v27, %v2211_v25  ;;  %v2235_v25 = vld [vmem:[#allocation15 + $0xf08] sm:$0xff] }
 0x50a   : > { %v1448_v63 = vpop.f32.mrb[56].mxu0  ;;  %4423 = vmatprep.subr.bf16.mxu1 %v4422_v36  ;;  %4711 = vmatprep.subr.bf16.mxu0 %v4710_v45  ;;  %v4067_v2 = vpop.f32.mrb[3].mxu1  ;;  %v1488_v16 = vmul.f32 %v1293_v58, %v1293_v58  ;;  %v1560_v20 = vmul.f32 %v1293_v58, %v6195_v34  ;;  %v4722_v36 = vpack.c.bf16 %v2217_v29, %v2213_v28  ;;  %v2212_v45 = vld [vmem:[#allocation15 + $0xe50] sm:$0xff]  ;;  %v2239_v28 = vld [vmem:[#allocation15 + $0xf28] sm:$0xff]  ;;  %v2237_v29 = vld [vmem:[#allocation15 + $0xf18] sm:$0xff] }
 0x50b   : > { %v4112_v1 = vpop.f32.mrb[57].mxu0  ;;  %v1524_v35 = vmul.f32 %v1448_v63, %v1448_v63  ;;  %v1605_v42 = vmul.f32 %v1448_v63, %v6195_v34  ;;  %v4724_v34 = vpack.c.bf16 %v2216_v46, %v2212_v45  ;;  %v4438_v2 = vpack.c.bf16 %v2223_v50, %v2219_v47  ;;  %v2236_v46 = vld [vmem:[#allocation15 + $0xf10] sm:$0xff] }
 0x50c   : > { %4425 = vmatpush1.bf16.msra.mxu1 %v4424_v55  ;;  %1532 = vadd.xlane.f32.xlu1 %v1523_v56  ;;  %v2229_v1 = vld [vmem:[#allocation15 + $0xed8] sm:$0xff]  ;;  %v2240_v47 = vld [vmem:[#allocation15 + $0xf30] sm:$0xff] }
 0x50d   : > { %4713 = vmatpush1.bf16.msra.mxu0 %v4712_v59  ;;  %1613 = vadd.xlane.f32.xlu0 %v1604_v8  ;;  %v6339_v14 = vpop.f32.mrb[4].mxu1  ;;  %v2218_v59 = vld [vmem:[#allocation15 + $0xe80] sm:$0xff]  ;;  %v2231_v8 = vld [vmem:[#allocation15 + $0xee8] sm:$0xff] }
 0x50e   : > { %v6341_v19 = vpop.f32.mrb[58].mxu0  ;;  %4427 = vmatprep.subr.bf16.mxu1 %v4426_v3  ;;  %4715 = vmatprep.subr.bf16.mxu0 %v4714_v4  ;;  %v4070_v30 = vpop.f32.mrb[5].mxu1  ;;  %v1489_v58 = vmul.f32 %v6339_v14, %v6339_v14  ;;  %v4726_v3 = vpack.c.bf16 %v2225_v53, %v2221_v51  ;;  %v2220_v4 = vld [vmem:[#allocation15 + $0xe90] sm:$0xff]  ;;  %v4440_v11 = vpack.c.bf16 %v2222_v60, %v2218_v59  ;;  %v2247_v51 = vld [vmem:[#allocation15 + $0xf68] sm:$0xff]  ;;  %v2245_v53 = vld [vmem:[#allocation15 + $0xf58] sm:$0xff] }
 0x50f   : > { %v4115_v26 = vpop.f32.mrb[59].mxu0  ;;  %v1525_v55 = vmul.f32 %v6341_v19, %v6341_v19  ;;  %v2242_v60 = vld [vmem:[#allocation15 + $0xf40] sm:$0xff] }
 0x510   : > { %4429 = vmatpush1.bf16.msra.mxu1 %v4428_v13  ;;  %1570 = vadd.xlane.f32.xlu1 %v1560_v20  ;;  %v4728_v13 = vpack.c.bf16 %v2224_v5, %v2220_v4  ;;  %v1561_v20 = vmul.f32 %v6339_v14, %v6201_v40  ;;  %v1606_v26 = vmul.f32 %v6341_v19, %v6201_v40 }
 0x511   : > { %4717 = vmatpush1.bf16.msra.mxu0 %v4716_v15  ;;  %1498 = vadd.xlane.f32.xlu0 %v1488_v16  ;;  %v6344_v32 = vpop.f32.mrb[6].mxu1  ;;  %v2226_v15 = vld [vmem:[#allocation15 + $0xec0] sm:$0xff]  ;;  %v4732_v14 = vpack.c.bf16 %v2232_v24, %v2228_v23 }
 0x512   : > { %v6346_v39 = vpop.f32.mrb[60].mxu0  ;;  %4431 = vmatprep.subr.bf16.mxu1 %v4430_v21  ;;  %4719 = vmatprep.subr.bf16.mxu0 %v4718_v22  ;;  %v4073_v41 = vpop.f32.mrb[7].mxu1  ;;  %v2230_v16 = vld [vmem:[#allocation15 + $0xee0] sm:$0xff]  ;;  %v4442_v21 = vpack.c.bf16 %v2231_v8, %v2227_v6  ;;  %v4730_v22 = vpack.c.bf16 %v2233_v10, %v2229_v1  ;;  %v1490_v37 = vmul.f32 %v6344_v32, %v6344_v32  ;;  %v2248_v8 = vld [vmem:[#allocation15 + $0xf70] sm:$0xff]  ;;  %v2251_v1 = vld [vmem:[#allocation15 + $0xf88] sm:$0xff] }
 0x513   : > { %v4118_v49 = vpop.f32.mrb[61].mxu0  ;;  %v2238_v41 = vld [vmem:[#allocation15 + $0xf20] sm:$0xff]  ;;  %v1526_v59 = vmul.f32 %v6346_v39, %v6346_v39 }
 0x514   : > { %4433 = vmatpush1.bf16.msra.mxu1 %v4432_v31  ;;  %1615 = vadd.xlane.f32.xlu1 %v1605_v42  ;;  %v2241_v31 = vld [vmem:[#allocation15 + $0xf38] sm:$0xff]  ;;  %v1734_v42 = vadd.f32 %v1733_v17, %v6225_v57  ;;  %v2243_v49 = vld [vmem:[#allocation15 + $0xf48] sm:$0xff] }
 0x515   : > { %4721 = vmatpush1.bf16.msra.mxu0 %v4720_v33  ;;  %1534 = vadd.xlane.f32.xlu0 %v1524_v35  ;;  %v6351_v56 = vpop.f32.mrb[8].mxu1  ;;  %v4444_v33 = vpack.c.bf16 %v2230_v16, %v2226_v15  ;;  %v4734_v45 = vpack.c.bf16 %v2241_v31, %v2237_v29  ;;  %v4450_v5 = vpack.c.bf16 %v2247_v51, %v2243_v49  ;;  %v2257_v15 = vld [vmem:[#allocation15 + $0xfb8] sm:$0xff]  ;;  %v2259_v29 = vld [vmem:[#allocation15 + $0xfc8] sm:$0xff]  ;;  %v2260_v49 = vld [vmem:[#allocation15 + $0xfd0] sm:$0xff] }
 0x516   : > { %v6355_v62 = vpop.f32.mrb[62].mxu0  ;;  %4435 = vmatprep.subr.bf16.mxu1 %v4434_v43  ;;  %4723 = vmatprep.subr.bf16.mxu0 %v4722_v36  ;;  %v4076_v63 = vpop.f32.mrb[9].mxu1  ;;  %v1562_v43 = vmul.f32 %v6344_v32, %v6207_v44  ;;  %v4446_v36 = vpack.c.bf16 %v2239_v28, %v2235_v25  ;;  %v4736_v32 = vpack.c.bf16 %v2240_v47, %v2236_v46  ;;  %v2256_v28 = vld [vmem:[#allocation15 + $0xfb0] sm:$0xff]  ;;  %v2267_v51 = vld [vmem:[#allocation15 + $0x1008] sm:$0xff] }
 0x517   : > { %v4121_v7 = vpop.f32.mrb[63].mxu0  ;;  %v2246_v63 = vld [vmem:[#allocation15 + $0xf60] sm:$0xff]  ;;  %v1527_v17 = vmul.f32 %v6355_v62, %v6355_v62 }
 0x518   : > { %4437 = vmatpush1.bf16.msra.mxu1 %v4436_v54  ;;  %1536 = vadd.xlane.f32.xlu1 %v1525_v55  ;;  %v2249_v54 = vld [vmem:[#allocation15 + $0xf78] sm:$0xff]  ;;  %v4448_v55 = vpack.c.bf16 %v2238_v41, %v2234_v38  ;;  %v2244_v7 = vld [vmem:[#allocation15 + $0xf50] sm:$0xff]  ;;  %v4452_v16 = vpack.c.bf16 %v2246_v63, %v2242_v60  ;;  %v2266_v63 = vld [vmem:[#allocation15 + $0x1000] sm:$0xff] }
 0x519   : > { %4725 = vmatpush1.bf16.msra.mxu0 %v4724_v34  ;;  %1500 = vadd.xlane.f32.xlu0 %v1489_v58  ;;  %v6357_v12 = vpop.f32.mrb[10].mxu1  ;;  %v1491_v34 = vmul.f32 %v6351_v56, %v6351_v56  ;;  %v4738_v6 = vpack.c.bf16 %v2249_v54, %v2245_v53  ;;  %v2265_v38 = vld [vmem:[#allocation15 + $0xff8] sm:$0xff]  ;;  %v2271_v53 = vld [vmem:[#allocation15 + $0x1028] sm:$0xff] }
 0x51a   : > { %v6360_v18 = vpop.f32.mrb[64].mxu0  ;;  %4439 = vmatprep.subr.bf16.mxu1 %v4438_v2  ;;  %4727 = vmatprep.subr.bf16.mxu0 %v4726_v3  ;;  %v4079_v30 = vpop.f32.mrb[11].mxu1  ;;  %v1735_v2 = vrot.slane %v1734_v42, 2  ;;  %v2269_v54 = vld [vmem:[#allocation15 + $0x1018] sm:$0xff] }
 0x51b   : > { %v4124_v27 = vpop.f32.mrb[65].mxu0 }
 0x51c   : > { %4441 = vmatpush1.bf16.msra.mxu1 %v4440_v11  ;;  %1572 = vadd.xlane.f32.xlu1 %v1561_v20  ;;  %v2255_v11 = vld [vmem:[#allocation15 + $0xfa8] sm:$0xff]  ;;  %v4740_v20 = vpack.c.bf16 %v2248_v8, %v2244_v7  ;;  %v1736_v23 = vadd.f32 %v1735_v2, %v1734_v42  ;;  %v2252_v27 = vld [vmem:[#allocation15 + $0xf90] sm:$0xff]  ;;  %v1608_v2 = vmul.f32 %v6355_v62, %v6213_v48 }
 0x51d   : > { %4729 = vmatpush1.bf16.msra.mxu0 %v4728_v13  ;;  %1617 = vadd.xlane.f32.xlu0 %v1606_v26  ;;  %v6366_v35 = vpop.f32.mrb[12].mxu1  ;;  %v2253_v13 = vld [vmem:[#allocation15 + $0xf98] sm:$0xff]  ;;  %v4454_v25 = vpack.c.bf16 %v2255_v11, %v2251_v1  ;;  %v2272_v7 = vld [vmem:[#allocation15 + $0x1030] sm:$0xff]  ;;  %v2275_v8 = vld [vmem:[#allocation15 + $0x1048] sm:$0xff] }
 0x51e   : > { %v6371_v40 = vpop.f32.mrb[66].mxu0  ;;  %4443 = vmatprep.subr.bf16.mxu1 %v4442_v21  ;;  %4731 = vmatprep.subr.bf16.mxu0 %v4730_v22  ;;  %v4082_v19 = vpop.f32.mrb[13].mxu1  ;;  %v2250_v21 = vld [vmem:[#allocation15 + $0xf80] sm:$0xff]  ;;  %v4742_v26 = vpack.c.bf16 %v2257_v15, %v2253_v13  ;;  %v1737_v46 = vrot.slane %v1736_v23, 1  ;;  %v2279_v1 = vld [vmem:[#allocation15 + $0x1068] sm:$0xff]  ;;  %v2277_v11 = vld [vmem:[#allocation15 + $0x1058] sm:$0xff] }
 0x51f   : > { %v4127_v50 = vpop.f32.mrb[67].mxu0  ;;  %v2254_v22 = vld [vmem:[#allocation15 + $0xfa0] sm:$0xff]  ;;  %v4744_v19 = vpack.c.bf16 %v2256_v28, %v2252_v27  ;;  %v2281_v13 = vld [vmem:[#allocation15 + $0x1078] sm:$0xff]  ;;  %v2276_v62 = vld [vmem:[#allocation15 + $0x1050] sm:$0xff]  ;;  %v1564_v27 = vmul.f32 %v6357_v12, %v6219_v52 }
 0x520   : > { %4445 = vmatpush1.bf16.msra.mxu1 %v4444_v33  ;;  %1574 = vadd.xlane.f32.xlu1 %v1562_v43  ;;  %v1607_v33 = vmul.f32 %v6346_v39, %v6207_v44  ;;  %v4456_v42 = vpack.c.bf16 %v2254_v22, %v2250_v21  ;;  %v1492_v43 = vmul.f32 %v6357_v12, %v6357_v12  ;;  %v2264_v50 = vld [vmem:[#allocation15 + $0xff0] sm:$0xff]  ;;  %v2291_v12 = vld [vmem:[#allocation15 + $0x10c8] sm:$0xff] }
 0x521   : > { %4733 = vmatpush1.bf16.msra.mxu0 %v4732_v14  ;;  %1502 = vadd.xlane.f32.xlu0 %v1490_v37  ;;  %v6377_v58 = vpop.f32.mrb[14].mxu1  ;;  %v2263_v14 = vld [vmem:[#allocation15 + $0xfe8] sm:$0xff]  ;;  %v2261_v37 = vld [vmem:[#allocation15 + $0xfd8] sm:$0xff]  ;;  %v1563_v44 = vmul.f32 %v6351_v56, %v6213_v48  ;;  %v1738_v60 = vadd.f32 %v1737_v46, %v1736_v23  ;;  %v2270_v56 = vld [vmem:[#allocation15 + $0x1020] sm:$0xff]  ;;  %v4466_v48 = vpack.c.bf16 %v2279_v1, %v2275_v8 }
 0x522   : > { %v6381_v3 = vpop.f32.mrb[68].mxu0  ;;  %4447 = vmatprep.subr.bf16.mxu1 %v4446_v36  ;;  %4735 = vmatprep.subr.bf16.mxu0 %v4734_v45  ;;  %v4085_v4 = vpop.f32.mrb[15].mxu1  ;;  %v2258_v36 = vld [vmem:[#allocation15 + $0xfc0] sm:$0xff]  ;;  %v4458_v39 = vpack.c.bf16 %v2263_v14, %v2259_v29  ;;  %v4746_v47 = vpack.c.bf16 %v2265_v38, %v2261_v37  ;;  %v2280_v21 = vld [vmem:[#allocation15 + $0x1070] sm:$0xff]  ;;  %v1609_v22 = vmul.f32 %v6360_v18, %v6219_v52  ;;  %v2285_v29 = vld [vmem:[#allocation15 + $0x1098] sm:$0xff] }
 0x523   : > { %v4130_v10 = vpop.f32.mrb[69].mxu0  ;;  %v2262_v45 = vld [vmem:[#allocation15 + $0xfe0] sm:$0xff]  ;;  %v4462_v4 = vpack.c.bf16 %v2271_v53, %v2267_v51  ;;  %v1739_v15 = vmul.f32 0.125, %v1738_v60  ;;  %v4754_v23 = vpack.c.bf16 %v2281_v13, %v2277_v11  ;;  %v1493_v14 = vmul.f32 %v6366_v35, %v6366_v35  ;;  %v2297_v46 = vld [vmem:[#allocation15 + $0x10f8] sm:$0xff]  ;;  %v2292_v53 = vld [vmem:[#allocation15 + $0x10d0] sm:$0xff] }
 0x524   : > { %4449 = vmatpush1.bf16.msra.mxu1 %v4448_v55  ;;  %1504 = vadd.xlane.f32.xlu1 %v1491_v34  ;;  %v2273_v55 = vld [vmem:[#allocation15 + $0x1038] sm:$0xff]  ;;  %v4460_v34 = vpack.c.bf16 %v2262_v45, %v2258_v36  ;;  %v4464_v10 = vpack.c.bf16 %v2270_v56, %v2266_v63  ;;  %v2282_v37 = vld [vmem:[#allocation15 + $0x1080] sm:$0xff]  ;;  %v1530_v8 = vmul.f32 %v6381_v3, %v6381_v3  ;;  %v2307_v13 = vld [vmem:[#allocation15 + $0x1148] sm:$0xff] }
 0x525   : > { %4737 = vmatpush1.bf16.msra.mxu0 %v4736_v32  ;;  %1538 = vadd.xlane.f32.xlu0 %v1526_v59  ;;  %v6385_v30 = vpop.f32.mrb[16].mxu1  ;;  %v4748_v32 = vpack.c.bf16 %v2264_v50, %v2260_v49  ;;  %v1528_v59 = vmul.f32 %v6360_v18, %v6360_v18  ;;  %v2286_v38 = vld [vmem:[#allocation15 + $0x10a0] sm:$0xff]  ;;  %v1529_v18 = vmul.f32 %v6371_v40, %v6371_v40  ;;  %v2293_v45 = vld [vmem:[#allocation15 + $0x10d8] sm:$0xff]  ;;  %v1747_v50 = vrot.slane %v6239_v9, 4 }
 0x526   : > { %v6387_v24 = vpop.f32.mrb[70].mxu0  ;;  %4451 = vmatprep.subr.bf16.mxu1 %v4450_v5  ;;  %4739 = vmatprep.subr.bf16.mxu0 %v4738_v6  ;;  %v4088_v31 = vpop.f32.mrb[17].mxu1  ;;  %v4750_v5 = vpack.c.bf16 %v2273_v55, %v2269_v54  ;;  %v2268_v6 = vld [vmem:[#allocation15 + $0x1010] sm:$0xff]  ;;  %v4472_v36 = vpack.c.bf16 %v2286_v38, %v2282_v37  ;;  %v2294_v49 = vld [vmem:[#allocation15 + $0x10e0] sm:$0xff]  ;;  %v4762_v55 = vpack.c.bf16 %v2297_v46, %v2293_v45  ;;  %v2301_v63 = vld [vmem:[#allocation15 + $0x1118] sm:$0xff] }
 0x527   : > { %v4133_v41 = vpop.f32.mrb[71].mxu0  ;;  %v2289_v31 = vld [vmem:[#allocation15 + $0x10b8] sm:$0xff]  ;;  %v2296_v54 = vld [vmem:[#allocation15 + $0x10f0] sm:$0xff]  ;;  %v2327_v46 = vld [vmem:[#allocation15 + $0x11e8] sm:$0xff] }
 0x528   : > { %4453 = vmatpush1.bf16.msra.mxu1 %v4452_v16  ;;  %1540 = vadd.xlane.f32.xlu1 %v1527_v17  ;;  %v4752_v16 = vpack.c.bf16 %v2272_v7, %v2268_v6  ;;  %v2274_v17 = vld [vmem:[#allocation15 + $0x1040] sm:$0xff]  ;;  %v4758_v52 = vpack.c.bf16 %v2289_v31, %v2285_v29  ;;  %v2305_v56 = vld [vmem:[#allocation15 + $0x1138] sm:$0xff]  ;;  %v1748_v7 = vadd.f32 %v1747_v50, %v6239_v9  ;;  %v2315_v29 = vld [vmem:[#allocation15 + $0x1188] sm:$0xff] }
 0x529   : > { %4741 = vmatpush1.bf16.msra.mxu0 %v4740_v20  ;;  %1619 = vadd.xlane.f32.xlu0 %v1607_v33  ;;  %v2278_v20 = vld [vmem:[#allocation15 + $0x1060] sm:$0xff]  ;;  %v4756_v33 = vpack.c.bf16 %v2280_v21, %v2276_v62  ;;  %v4766_v11 = vpack.c.bf16 %v2305_v56, %v2301_v63  ;;  %v1531_v62 = vmul.f32 %v6387_v24, %v6387_v24  ;;  %v2319_v31 = vld [vmem:[#allocation15 + $0x11a8] sm:$0xff]  ;;  %v2317_v37 = vld [vmem:[#allocation15 + $0x1198] sm:$0xff] }
 0x52a   : > { %4455 = vmatprep.subr.bf16.mxu1 %v4454_v25  ;;  %4743 = vmatprep.subr.bf16.mxu0 %v4742_v26  ;;  %v2283_v25 = vld [vmem:[#allocation15 + $0x1088] sm:$0xff]  ;;  %v4468_v28 = vpack.c.bf16 %v2278_v20, %v2274_v17  ;;  %v2302_v6 = vld [vmem:[#allocation15 + $0x1120] sm:$0xff]  ;;  %v2309_v17 = vld [vmem:[#allocation15 + $0x1158] sm:$0xff] }
 0x52b   : > { %v2287_v26 = vld [vmem:[#allocation15 + $0x10a8] sm:$0xff]  ;;  %v2313_v20 = vld [vmem:[#allocation15 + $0x1178] sm:$0xff]  ;;  %v2306_v21 = vld [vmem:[#allocation15 + $0x1140] sm:$0xff] }
 0x52c   : > { %4457 = vmatpush1.bf16.msra.mxu1 %v4456_v42  ;;  %1576 = vadd.xlane.f32.xlu1 %v1563_v44  ;;  %v4470_v41 = vpack.c.bf16 %v2287_v26, %v2283_v25  ;;  %v2284_v42 = vld [vmem:[#allocation15 + $0x1090] sm:$0xff]  ;;  %v2321_v38 = vld [vmem:[#allocation15 + $0x11b8] sm:$0xff] }
 0x52d   : > { %4745 = vmatpush1.bf16.msra.mxu0 %v4744_v19  ;;  %1506 = vadd.xlane.f32.xlu0 %v1492_v43  ;;  %v2288_v19 = vld [vmem:[#allocation15 + $0x10b0] sm:$0xff]  ;;  %v2295_v43 = vld [vmem:[#allocation15 + $0x10e8] sm:$0xff]  ;;  %v4774_v45 = vpack.c.bf16 %v2321_v38, %v2317_v37 }
 0x52e   : > { %4459 = vmatprep.subr.bf16.mxu1 %v4458_v39  ;;  %4747 = vmatprep.subr.bf16.mxu0 %v4746_v47  ;;  %v4760_v44 = vpack.c.bf16 %v2288_v19, %v2284_v42  ;;  %v1494_v39 = vmul.f32 %v6377_v58, %v6377_v58  ;;  %v2290_v47 = vld [vmem:[#allocation15 + $0x10c0] sm:$0xff]  ;;  %v4474_v51 = vpack.c.bf16 %v2295_v43, %v2291_v12  ;;  %v2308_v26 = vld [vmem:[#allocation15 + $0x1150] sm:$0xff] }
 0x52f   : > { %v4476_v60 = vpack.c.bf16 %v2294_v49, %v2290_v47  ;;  %v2318_v42 = vld [vmem:[#allocation15 + $0x11a0] sm:$0xff]  ;;  %v2316_v12 = vld [vmem:[#allocation15 + $0x1190] sm:$0xff]  ;;  %v2325_v47 = vld [vmem:[#allocation15 + $0x11d8] sm:$0xff] }
 0x530   : > { %4461 = vmatpush1.bf16.msra.mxu1 %v4460_v34  ;;  %1621 = vadd.xlane.f32.xlu1 %v1608_v2  ;;  %v2299_v34 = vld [vmem:[#allocation15 + $0x1108] sm:$0xff]  ;;  %v4764_v2 = vpack.c.bf16 %v2296_v54, %v2292_v53  ;;  %v2320_v43 = vld [vmem:[#allocation15 + $0x11b0] sm:$0xff]  ;;  %v2329_v49 = vld [vmem:[#allocation15 + $0x11f8] sm:$0xff] }
 0x531   : > { %4749 = vmatpush1.bf16.msra.mxu0 %v4748_v32  ;;  %1542 = vadd.xlane.f32.xlu0 %v1528_v59  ;;  %v2303_v32 = vld [vmem:[#allocation15 + $0x1128] sm:$0xff]  ;;  %v1565_v59 = vmul.f32 %v6366_v35, %v6225_v57  ;;  %v2300_v35 = vld [vmem:[#allocation15 + $0x1110] sm:$0xff]  ;;  %v4776_v50 = vpack.c.bf16 %v2320_v43, %v2316_v12  ;;  %v2326_v53 = vld [vmem:[#allocation15 + $0x11e0] sm:$0xff] }
 0x532   : > { %4463 = vmatprep.subr.bf16.mxu1 %v4462_v4  ;;  %4751 = vmatprep.subr.bf16.mxu0 %v4750_v5  ;;  %v1495_v4 = vmul.f32 %v6385_v30, %v6385_v30  ;;  %v2298_v5 = vld [vmem:[#allocation15 + $0x1100] sm:$0xff]  ;;  %v4478_v1 = vpack.c.bf16 %v2303_v32, %v2299_v34  ;;  %v1611_v34 = vmul.f32 %v6381_v3, %v6231_v61  ;;  %v3096_v43 = vld [vmem:[#allocation18 + $0xd0] sm:$0xff] }
 0x533   : > { %2630 = vmatmul.mubr.f32.vlgmr.msra.gmra.mrb[18].mxu1 %v1739_v15  ;;  %v4778_v32 = vpack.c.bf16 %v2329_v49, %v2325_v47  ;;  %v3070_v3 = vld [vmem:[#allocation18] sm:$0xff]  ;;  %v3103_v47 = vld [vmem:[#allocation18 + $0x108] sm:$0xff]  ;;  %v3105_v49 = vld [vmem:[#allocation18 + $0x118] sm:$0xff] }
 0x534   : > { %2985 = vmatmul.mubr.f32.vlgmr.msra.gmra.mrb[72].mxu0 %v1739_v15  ;;  %4465 = vmatpush1.bf16.msra.mxu1 %v4464_v10  ;;  %v2304_v10 = vld [vmem:[#allocation15 + $0x1130] sm:$0xff]  ;;  %v2311_v15 = vld [vmem:[#allocation15 + $0x1168] sm:$0xff] }
 0x535   : > { %4753 = vmatpush1.bf16.msra.mxu0 %v4752_v16  ;;  %1623 = vadd.xlane.f32.xlu1 %v1609_v22  ;;  %v4480_v16 = vpack.c.bf16 %v2302_v6, %v2298_v5  ;;  %v2310_v22 = vld [vmem:[#allocation15 + $0x1160] sm:$0xff]  ;;  %v4482_v25 = vpack.c.bf16 %v2311_v15, %v2307_v13  ;;  %v3072_v5 = vld [vmem:[#allocation18 + $0x10] sm:$0xff]  ;;  %v3075_v6 = vld [vmem:[#allocation18 + $0x28] sm:$0xff] }
 0x536   : > { %1578 = vadd.xlane.f32.xlu0 %v1564_v27  ;;  %4467 = vmatprep.subr.bf16.mxu1 %v4466_v48  ;;  %v4768_v48 = vpack.c.bf16 %v2304_v10, %v2300_v35  ;;  %v2312_v27 = vld [vmem:[#allocation15 + $0x1170] sm:$0xff]  ;;  %v3081_v10 = vld [vmem:[#allocation18 + $0x58] sm:$0xff]  ;;  %v3078_v15 = vld [vmem:[#allocation18 + $0x40] sm:$0xff] }
 0x537   : > { %4755 = vmatprep.subr.bf16.mxu0 %v4754_v23  ;;  %2700 = vmatprep.mubr.f32.mxu1 %v5635_v0  ;;  %v1749_v23 = vrot.slane %v1748_v7, 2  ;;  %v3079_v35 = vld [vmem:[#allocation18 + $0x48] sm:$0xff]  ;;  %v3090_v38 = vld [vmem:[#allocation18 + $0xa0] sm:$0xff] }
 0x538   : > { %4469 = vmatpush1.bf16.msra.mxu1 %v4468_v28  ;;  %3055 = vmatprep.mubr.f32.mxu0 %v5635_v0  ;;  %v4770_v28 = vpack.c.bf16 %v2313_v20, %v2309_v17  ;;  %v4790_v13 = vpack.c.bf16 %v3081_v10, %v3079_v35  ;;  %v3083_v17 = vld [vmem:[#allocation18 + $0x68] sm:$0xff]  ;;  %v3085_v20 = vld [vmem:[#allocation18 + $0x78] sm:$0xff]  ;;  %v3094_v12 = vld [vmem:[#allocation18 + $0xc0] sm:$0xff] }
 0x539   : > { %4757 = vmatpush1.bf16.msra.mxu0 %v4756_v33  ;;  %1508 = vadd.xlane.f32.xlu1 %v1493_v14  ;;  %v1566_v33 = vmul.f32 %v6377_v58, %v6231_v61  ;;  %v4484_v14 = vpack.c.bf16 %v2310_v22, %v2306_v21  ;;  %v1750_v19 = vadd.f32 %v1749_v23, %v1748_v7  ;;  %v2323_v58 = vld [vmem:[#allocation15 + $0x11c8] sm:$0xff]  ;;  %v3073_v61 = vld [vmem:[#allocation18 + $0x18] sm:$0xff]  ;;  %v3084_v22 = vld [vmem:[#allocation18 + $0x70] sm:$0xff] }
 0x53a   : > { %1544 = vadd.xlane.f32.xlu0 %v1529_v18  ;;  %4471 = vmatprep.subr.bf16.mxu1 %v4470_v41  ;;  %v4772_v18 = vpack.c.bf16 %v2312_v27, %v2308_v26  ;;  %v2314_v41 = vld [vmem:[#allocation15 + $0x1180] sm:$0xff]  ;;  %v3087_v23 = vld [vmem:[#allocation18 + $0x88] sm:$0xff] }
 0x53b   : > { %4759 = vmatprep.subr.bf16.mxu0 %v4758_v52  ;;  %v4486_v52 = vpack.c.bf16 %v2319_v31, %v2315_v29  ;;  %v1751_v54 = vrot.slane %v1750_v19, 1  ;;  %v3082_v21 = vld [vmem:[#allocation18 + $0x60] sm:$0xff]  ;;  %v3088_v29 = vld [vmem:[#allocation18 + $0x90] sm:$0xff]  ;;  %v3091_v31 = vld [vmem:[#allocation18 + $0xa8] sm:$0xff] }
 0x53c   : > { %4473 = vmatpush1.bf16.msra.mxu1 %v4472_v36  ;;  %v1610_v36 = vmul.f32 %v6371_v40, %v6225_v57  ;;  %v2324_v57 = vld [vmem:[#allocation15 + $0x11d0] sm:$0xff]  ;;  %v4796_v26 = vpack.c.bf16 %v3084_v22, %v3082_v21  ;;  %v3118_v10 = vld [vmem:[#allocation18 + $0x180] sm:$0xff]  ;;  %v2332_v21 = vlaneseq }
 0x53d   : > { %4761 = vmatpush1.bf16.msra.mxu0 %v4760_v44  ;;  %1510 = vadd.xlane.f32.xlu1 %v1494_v39  ;;  %v1567_v44 = vmul.f32 %v6385_v30, %v6239_v9  ;;  %v4488_v39 = vpack.c.bf16 %v2318_v42, %v2314_v41  ;;  %v2328_v40 = vld [vmem:[#allocation15 + $0x11f0] sm:$0xff]  ;;  %v1612_v30 = vmul.f32 %v6387_v24, %v6239_v9  ;;  %v3077_v9 = vld [vmem:[#allocation18 + $0x38] sm:$0xff] }
 0x53e   : > { %1580 = vadd.xlane.f32.xlu0 %v1565_v59  ;;  %4475 = vmatprep.subr.bf16.mxu1 %v4474_v51  ;;  %v2322_v51 = vld [vmem:[#allocation15 + $0x11c0] sm:$0xff]  ;;  %v1752_v63 = vadd.f32 %v1751_v54, %v1750_v19  ;;  %v4784_v24 = vpack.c.bf16 %v3072_v5, %v3070_v3  ;;  %v4786_v7 = vpack.c.bf16 %v3077_v9, %v3075_v6  ;;  %v3095_v41 = vld [vmem:[#allocation18 + $0xc8] sm:$0xff]  ;;  %v3104_v54 = vld [vmem:[#allocation18 + $0x110] sm:$0xff]  ;;  %v6432_v22 = vshrl.u32 %v2332_v21, 7 }
 0x53f   : > { %4763 = vmatprep.subr.bf16.mxu0 %v4762_v55  ;;  %v4490_v55 = vpack.c.bf16 %v2327_v46, %v2323_v58  ;;  %v4492_v59 = vpack.c.bf16 %v2326_v53, %v2322_v51  ;;  %v3097_v42 = vld [vmem:[#allocation18 + $0xd8] sm:$0xff]  ;;  %v4808_v58 = vpack.c.bf16 %v3096_v43, %v3094_v12  ;;  %v4814_v51 = vpack.c.bf16 %v3105_v49, %v3103_v47  ;;  %v3102_v53 = vld [vmem:[#allocation18 + $0x100] sm:$0xff]  ;;  %v3115_v3 = vld [vmem:[#allocation18 + $0x168] sm:$0xff] }
 0x540   : > { %4477 = vmatpush1.bf16.msra.mxu1 %v4476_v60  ;;  %v4780_v60 = vpack.c.bf16 %v2328_v40, %v2324_v57  ;;  %v1753_v56 = vmul.f32 0.125, %v1752_v63  ;;  %v3109_v57 = vld [vmem:[#allocation18 + $0x138] sm:$0xff]  ;;  %v4816_v40 = vpack.c.bf16 %v3104_v54, %v3102_v53  ;;  %v3114_v9 = vld [vmem:[#allocation18 + $0x160] sm:$0xff] }
 0x541   : > { %4765 = vmatpush1.bf16.msra.mxu0 %v4764_v2  ;;  %1512 = vadd.xlane.f32.xlu1 %v1495_v4  ;;  %v3071_v2 = vld [vmem:[#allocation18 + $0x8] sm:$0xff]  ;;  %v3137_v12 = vld [vmem:[#allocation18 + $0x218] sm:$0xff] }
 0x542   : > { %1546 = vadd.xlane.f32.xlu0 %v1530_v8  ;;  %4479 = vmatprep.subr.bf16.mxu1 %v4478_v1  ;;  %v4782_v4 = vpack.c.bf16 %v3073_v61, %v3071_v2  ;;  %v3074_v8 = vld [vmem:[#allocation18 + $0x20] sm:$0xff]  ;;  %v3076_v1 = vld [vmem:[#allocation18 + $0x30] sm:$0xff] }
 0x543   : > { %4767 = vmatprep.subr.bf16.mxu0 %v4766_v11  ;;  %v4788_v11 = vpack.c.bf16 %v3076_v1, %v3074_v8  ;;  %v3110_v2 = vld [vmem:[#allocation18 + $0x140] sm:$0xff]  ;;  %v3112_v61 = vld [vmem:[#allocation18 + $0x150] sm:$0xff]  ;;  %v3121_v8 = vld [vmem:[#allocation18 + $0x198] sm:$0xff] }
 0x544   : > { %4481 = vmatpush1.bf16.msra.mxu1 %v4480_v16  ;;  %v3080_v16 = vld [vmem:[#allocation18 + $0x50] sm:$0xff]  ;;  %v4824_v5 = vpack.c.bf16 %v3112_v61, %v3110_v2  ;;  %v3375_v47 = vld [vmem:[#allocation21 + $0x98] sm:$0xff]  ;;  %v3376_v54 = vld [vmem:[#allocation21 + $0xa0] sm:$0xff] }
 0x545   : > { %4769 = vmatpush1.bf16.msra.mxu0 %v4768_v48  ;;  %1548 = vadd.xlane.f32.xlu1 %v1531_v62  ;;  %v4792_v48 = vpack.c.bf16 %v3080_v16, %v3078_v15  ;;  %v4794_v62 = vpack.c.bf16 %v3085_v20, %v3083_v17  ;;  %v3125_v15 = vld [vmem:[#allocation18 + $0x1b8] sm:$0xff]  ;;  %v3122_v20 = vld [vmem:[#allocation18 + $0x1a0] sm:$0xff] }
 0x546   : > { %1582 = vadd.xlane.f32.xlu0 %v1566_v33  ;;  %4483 = vmatprep.subr.bf16.mxu1 %v4482_v25  ;;  %v3089_v25 = vld [vmem:[#allocation18 + $0x98] sm:$0xff]  ;;  %v3380_v61 = vld [vmem:[#allocation21 + $0xc0] sm:$0xff] }
 0x547   : > { %4771 = vmatprep.subr.bf16.mxu0 %v4770_v28  ;;  %v4798_v27 = vpack.c.bf16 %v3089_v25, %v3087_v23  ;;  %v3086_v28 = vld [vmem:[#allocation18 + $0x80] sm:$0xff]  ;;  %v3093_v33 = vld [vmem:[#allocation18 + $0xb8] sm:$0xff]  ;;  %v2342_v25 = vsub.s32 2, %v6432_v22 }
 0x548   : > { %4485 = vmatpush1.bf16.msra.mxu1 %v4484_v14  ;;  %v4800_v14 = vpack.c.bf16 %v3088_v29, %v3086_v28  ;;  %v4802_v37 = vpack.c.bf16 %v3093_v33, %v3091_v31  ;;  %v6434_v23 = vld [vmem:[#allocation16] sm:$0xf]  ;;  %v3126_v29 = vld [vmem:[#allocation18 + $0x1c0] sm:$0xff]  ;;  %v3128_v31 = vld [vmem:[#allocation18 + $0x1d0] sm:$0xff] }
 0x549   : > { %4773 = vmatpush1.bf16.msra.mxu0 %v4772_v18  ;;  %1625 = vadd.xlane.f32.xlu1 %v1610_v36  ;;  %v3092_v18 = vld [vmem:[#allocation18 + $0xb0] sm:$0xff]  ;;  %v3099_v36 = vld [vmem:[#allocation18 + $0xe8] sm:$0xff]  ;;  %v6438_v33 = vrot.slane %v6434_v23, %v2342_v25  ;;  %v3359_v53 = vld [vmem:[#allocation21 + $0x18] sm:$0xff] }
 0x54a   : > { %1584 = vadd.xlane.f32.xlu0 %v1567_v44  ;;  %4487 = vmatprep.subr.bf16.mxu1 %v4486_v52  ;;  %v4804_v19 = vpack.c.bf16 %v3092_v18, %v3090_v38  ;;  %v4806_v52 = vpack.c.bf16 %v3097_v42, %v3095_v41  ;;  %v3098_v44 = vld [vmem:[#allocation18 + $0xe0] sm:$0xff]  ;;  %v3133_v38 = vld [vmem:[#allocation18 + $0x1f8] sm:$0xff]  ;;  %v3132_v42 = vld [vmem:[#allocation18 + $0x1f0] sm:$0xff] }
 0x54b   : > { %4775 = vmatprep.subr.bf16.mxu0 %v4774_v45  ;;  %v3101_v45 = vld [vmem:[#allocation18 + $0xf8] sm:$0xff]  ;;  %v3130_v41 = vld [vmem:[#allocation18 + $0x1e0] sm:$0xff] }
 0x54c   : > { %4489 = vmatpush1.bf16.msra.mxu1 %v4488_v39  ;;  %v4810_v46 = vpack.c.bf16 %v3101_v45, %v3099_v36  ;;  %v3100_v39 = vld [vmem:[#allocation18 + $0xf0] sm:$0xff]  ;;  %v3372_v36 = vld [vmem:[#allocation21 + $0x80] sm:$0xff]  ;;  %v3363_v2 = vld [vmem:[#allocation21 + $0x38] sm:$0xff] }
 0x54d   : > { %4777 = vmatpush1.bf16.msra.mxu0 %v4776_v50  ;;  %1627 = vadd.xlane.f32.xlu1 %v1611_v34  ;;  %v4812_v50 = vpack.c.bf16 %v3100_v39, %v3098_v44  ;;  %v3373_v45 = vld [vmem:[#allocation21 + $0x88] sm:$0xff]  ;;  %v3374_v39 = vld [vmem:[#allocation21 + $0x90] sm:$0xff] }
 0x54e   : > { %1629 = vadd.xlane.f32.xlu0 %v1612_v30  ;;  %4491 = vmatprep.subr.bf16.mxu1 %v4490_v55  ;;  %v3107_v55 = vld [vmem:[#allocation18 + $0x128] sm:$0xff]  ;;  %v3108_v30 = vld [vmem:[#allocation18 + $0x130] sm:$0xff] }
 0x54f   : > { %4779 = vmatprep.subr.bf16.mxu0 %v4778_v32  ;;  %v4818_v34 = vpack.c.bf16 %v3109_v57, %v3107_v55  ;;  %v3106_v32 = vld [vmem:[#allocation18 + $0x120] sm:$0xff]  ;;  %v3357_v44 = vld [vmem:[#allocation21 + $0x8] sm:$0xff] }
 0x550   : > { %4493 = vmatpush1.bf16.msra.mxu1 %v4492_v59  ;;  %v3111_v59 = vld [vmem:[#allocation18 + $0x148] sm:$0xff]  ;;  %v4820_v63 = vpack.c.bf16 %v3108_v30, %v3106_v32  ;;  %v3378_v30 = vld [vmem:[#allocation21 + $0xb0] sm:$0xff] }
 0x551   : > { %4781 = vmatpush1.bf16.msra.mxu0 %v4780_v60  ;;  %4783 = vmatprep.subr.bf16.mxu1 %v4782_v4  ;;  %v3113_v60 = vld [vmem:[#allocation18 + $0x158] sm:$0xff]  ;;  %v3377_v55 = vld [vmem:[#allocation21 + $0xa8] sm:$0xff] }
 0x552   : > { %v3117_v4 = vld [vmem:[#allocation18 + $0x178] sm:$0xff]  ;;  %v3361_v32 = vld [vmem:[#allocation21 + $0x28] sm:$0xff] }
 0x553   : > { %2701 = vmatmul.mubr.f32.vlgmr.msra.gmra.mrb[18].mxu1 %v1753_v56  ;;  %v4826_v6 = vpack.c.bf16 %v3117_v4, %v3115_v3  ;;  %v3381_v3 = vld [vmem:[#allocation21 + $0xc8] sm:$0xff] }
 0x554   : > { %3056 = vmatmul.mubr.f32.vlgmr.msra.gmra.mrb[72].mxu0 %v1753_v56  ;;  %4785 = vmatpush1.bf16.msra.mxu1 %v4784_v24  ;;  %v4822_v56 = vpack.c.bf16 %v3113_v60, %v3111_v59  ;;  %v3116_v24 = vld [vmem:[#allocation18 + $0x170] sm:$0xff]  ;;  %v3379_v59 = vld [vmem:[#allocation21 + $0xb8] sm:$0xff] }
 0x555   : > { %4787 = vmatprep.subr.bf16.mxu1 %v4786_v7  ;;  %v3119_v7 = vld [vmem:[#allocation18 + $0x188] sm:$0xff]  ;;  %v4828_v1 = vpack.c.bf16 %v3116_v24, %v3114_v9  ;;  %v3382_v24 = vld [vmem:[#allocation21 + $0xd0] sm:$0xff] }
 0x556   : > { %v4830_v35 = vpack.c.bf16 %v3121_v8, %v3119_v7  ;;  %v3365_v9 = vld [vmem:[#allocation21 + $0x48] sm:$0xff]  ;;  %v3383_v7 = vld [vmem:[#allocation21 + $0xd8] sm:$0xff] }
 0x558   : > { %4789 = vmatpush1.bf16.msra.mxu1 %v4788_v11  ;;  %v3120_v11 = vld [vmem:[#allocation18 + $0x190] sm:$0xff] }
 0x559   : > { %4791 = vmatprep.subr.bf16.mxu1 %v4790_v13  ;;  %v3123_v13 = vld [vmem:[#allocation18 + $0x1a8] sm:$0xff]  ;;  %v4832_v16 = vpack.c.bf16 %v3120_v11, %v3118_v10  ;;  %v3367_v10 = vld [vmem:[#allocation21 + $0x58] sm:$0xff] }
 0x55a   : > { %v4834_v17 = vpack.c.bf16 %v3125_v15, %v3123_v13  ;;  %v6441_v13 = vsub.s32 0, %v6432_v22  ;;  %v2338_v15 = vsub.s32 1, %v6432_v22 }
 0x55c   : > { %4793 = vmatpush1.bf16.msra.mxu1 %v4792_v48  ;;  %v3124_v48 = vld [vmem:[#allocation18 + $0x1b0] sm:$0xff] }
 0x55d   : > { %4795 = vmatprep.subr.bf16.mxu1 %v4794_v62  ;;  %v4836_v62 = vpack.c.bf16 %v3124_v48, %v3122_v20  ;;  %v2339_v20 = vrot.slane %v6434_v23, %v2338_v15 }
 0x560   : > { %4797 = vmatpush1.bf16.msra.mxu1 %v4796_v26  ;;  %v3127_v26 = vld [vmem:[#allocation18 + $0x1c8] sm:$0xff] }
 0x561   : > { %4799 = vmatprep.subr.bf16.mxu1 %v4798_v27  ;;  %v3129_v27 = vld [vmem:[#allocation18 + $0x1d8] sm:$0xff] }
 0x562   : > { %v4838_v28 = vpack.c.bf16 %v3129_v27, %v3127_v26 }
 0x564   : > { %4801 = vmatpush1.bf16.msra.mxu1 %v4800_v14  ;;  %v4840_v14 = vpack.c.bf16 %v3128_v31, %v3126_v29 }
 0x565   : > { %4803 = vmatprep.subr.bf16.mxu1 %v4802_v37  ;;  %v3131_v37 = vld [vmem:[#allocation18 + $0x1e8] sm:$0xff] }
 0x566   : > { %v4842_v18 = vpack.c.bf16 %v3133_v38, %v3131_v37  ;;  %v3134_v38 = vld [vmem:[#allocation18 + $0x200] sm:$0xff] }
 0x568   : > { %4805 = vmatpush1.bf16.msra.mxu1 %v4804_v19  ;;  %v4844_v19 = vpack.c.bf16 %v3132_v42, %v3130_v41  ;;  %v3139_v42 = vld [vmem:[#allocation18 + $0x228] sm:$0xff] }
 0x569   : > { %4807 = vmatprep.subr.bf16.mxu1 %v4806_v52  ;;  %v3135_v52 = vld [vmem:[#allocation18 + $0x208] sm:$0xff] }
 0x56a   : > { %v4846_v43 = vpack.c.bf16 %v3137_v12, %v3135_v52 }
 0x56c   : > { %4809 = vmatpush1.bf16.msra.mxu1 %v4808_v58  ;;  %v3356_v58 = vld [vmem:[#allocation21] sm:$0xff] }
 0x56d   : > { %4811 = vmatprep.subr.bf16.mxu1 %v4810_v46  ;;  %v4910_v46 = vpack.c.bf16 %v3373_v45, %v3372_v36  ;;  %v4912_v49 = vpack.c.bf16 %v3357_v44, %v3356_v58  ;;  %v3138_v45 = vld [vmem:[#allocation18 + $0x220] sm:$0xff]  ;;  %v3140_v58 = vld [vmem:[#allocation18 + $0x230] sm:$0xff]  ;;  %v3145_v44 = vld [vmem:[#allocation18 + $0x258] sm:$0xff] }
 0x56f   : > { %4911 = vmatprep.subr.bf16.mxu0 %v4910_v46 }
 0x570   : > { %4813 = vmatpush1.bf16.msra.mxu1 %v4812_v50  ;;  %v4914_v50 = vpack.c.bf16 %v3375_v47, %v3374_v39  ;;  %4913 = vmatpush3.bf16.msra.mxu0 %v4912_v49  ;;  %v4852_v39 = vpack.c.bf16 %v3140_v58, %v3138_v45  ;;  %v3142_v49 = vld [vmem:[#allocation18 + $0x240] sm:$0xff]  ;;  %v3181_v45 = vld [vmem:[#allocation18 + $0x378] sm:$0xff] }
 0x571   : > { %4815 = vmatprep.subr.bf16.mxu1 %v4814_v51  ;;  %v3358_v51 = vld [vmem:[#allocation21 + $0x10] sm:$0xff] }
 0x572   : > { %v4916_v57 = vpack.c.bf16 %v3359_v53, %v3358_v51  ;;  %4915 = vmatprep.subr.bf16.mxu0 %v4914_v50  ;;  %v3144_v50 = vld [vmem:[#allocation18 + $0x250] sm:$0xff]  ;;  %v3147_v51 = vld [vmem:[#allocation18 + $0x268] sm:$0xff]  ;;  %v3149_v53 = vld [vmem:[#allocation18 + $0x278] sm:$0xff] }
 0x574   : > { %4817 = vmatpush1.bf16.msra.mxu1 %v4816_v40  ;;  %v4918_v40 = vpack.c.bf16 %v3377_v55, %v3376_v54  ;;  %4917 = vmatpush3.bf16.msra.mxu0 %v4916_v57  ;;  %v4856_v54 = vpack.c.bf16 %v3144_v50, %v3142_v49  ;;  %v4858_v55 = vpack.c.bf16 %v3149_v53, %v3147_v51  ;;  %v3146_v57 = vld [vmem:[#allocation18 + $0x260] sm:$0xff]  ;;  %v3184_v53 = vld [vmem:[#allocation18 + $0x390] sm:$0xff] }
 0x575   : > { %4819 = vmatprep.subr.bf16.mxu1 %v4818_v34  ;;  %v3360_v34 = vld [vmem:[#allocation21 + $0x20] sm:$0xff] }
 0x576   : > { %v4920_v60 = vpack.c.bf16 %v3361_v32, %v3360_v34  ;;  %4919 = vmatprep.subr.bf16.mxu0 %v4918_v40  ;;  %v3148_v40 = vld [vmem:[#allocation18 + $0x270] sm:$0xff]  ;;  %v3151_v34 = vld [vmem:[#allocation18 + $0x288] sm:$0xff]  ;;  %v3153_v32 = vld [vmem:[#allocation18 + $0x298] sm:$0xff] }
 0x577   : > { %v3182_v51 = vld [vmem:[#allocation18 + $0x380] sm:$0xff] }
 0x578   : > { %4821 = vmatpush1.bf16.msra.mxu1 %v4820_v63  ;;  %v4922_v63 = vpack.c.bf16 %v3379_v59, %v3378_v30  ;;  %4921 = vmatpush3.bf16.msra.mxu0 %v4920_v60  ;;  %v4860_v30 = vpack.c.bf16 %v3148_v40, %v3146_v57  ;;  %v4862_v59 = vpack.c.bf16 %v3153_v32, %v3151_v34  ;;  %v3150_v60 = vld [vmem:[#allocation18 + $0x280] sm:$0xff]  ;;  %v3188_v32 = vld [vmem:[#allocation18 + $0x3b0] sm:$0xff] }
 0x579   : > { %4823 = vmatprep.subr.bf16.mxu1 %v4822_v56  ;;  %v3362_v56 = vld [vmem:[#allocation21 + $0x30] sm:$0xff]  ;;  %v4896_v57 = vpack.c.bf16 %v3184_v53, %v3182_v51  ;;  %v3186_v34 = vld [vmem:[#allocation18 + $0x3a0] sm:$0xff] }
 0x57a   : > { %v4924_v4 = vpack.c.bf16 %v3363_v2, %v3362_v56  ;;  %4923 = vmatprep.subr.bf16.mxu0 %v4922_v63  ;;  %v3152_v63 = vld [vmem:[#allocation18 + $0x290] sm:$0xff]  ;;  %v3155_v56 = vld [vmem:[#allocation18 + $0x2a8] sm:$0xff]  ;;  %v3157_v2 = vld [vmem:[#allocation18 + $0x2b8] sm:$0xff] }
 0x57c   : > { %4825 = vmatpush1.bf16.msra.mxu1 %v4824_v5  ;;  %v4926_v5 = vpack.c.bf16 %v3381_v3, %v3380_v61  ;;  %4925 = vmatpush3.bf16.msra.mxu0 %v4924_v4  ;;  %v4864_v61 = vpack.c.bf16 %v3152_v63, %v3150_v60  ;;  %v4866_v3 = vpack.c.bf16 %v3157_v2, %v3155_v56  ;;  %v3154_v4 = vld [vmem:[#allocation18 + $0x2a0] sm:$0xff]  ;;  %v3192_v2 = vld [vmem:[#allocation18 + $0x3d0] sm:$0xff] }
 0x57d   : > { %4827 = vmatprep.subr.bf16.mxu1 %v4826_v6  ;;  %v3364_v6 = vld [vmem:[#allocation21 + $0x40] sm:$0xff]  ;;  %v4900_v60 = vpack.c.bf16 %v3188_v32, %v3186_v34 }
 0x57e   : > { %v4928_v8 = vpack.c.bf16 %v3365_v9, %v3364_v6  ;;  %4927 = vmatprep.subr.bf16.mxu0 %v4926_v5  ;;  %v3156_v5 = vld [vmem:[#allocation18 + $0x2b0] sm:$0xff]  ;;  %v3159_v6 = vld [vmem:[#allocation18 + $0x2c8] sm:$0xff]  ;;  %v3161_v9 = vld [vmem:[#allocation18 + $0x2d8] sm:$0xff] }
 0x57f   : > { %v3190_v56 = vld [vmem:[#allocation18 + $0x3c0] sm:$0xff] }
 0x580   : > { %4829 = vmatpush1.bf16.msra.mxu1 %v4828_v1  ;;  %v4930_v1 = vpack.c.bf16 %v3383_v7, %v3382_v24  ;;  %4929 = vmatpush3.bf16.msra.mxu0 %v4928_v8  ;;  %v4868_v24 = vpack.c.bf16 %v3156_v5, %v3154_v4  ;;  %v4870_v7 = vpack.c.bf16 %v3161_v9, %v3159_v6  ;;  %v3158_v8 = vld [vmem:[#allocation18 + $0x2c0] sm:$0xff]  ;;  %v3196_v9 = vld [vmem:[#allocation18 + $0x3f0] sm:$0xff] }
 0x581   : > { %4831 = vmatprep.subr.bf16.mxu1 %v4830_v35  ;;  %v3366_v35 = vld [vmem:[#allocation21 + $0x50] sm:$0xff]  ;;  %v4904_v4 = vpack.c.bf16 %v3192_v2, %v3190_v56  ;;  %v3194_v6 = vld [vmem:[#allocation18 + $0x3e0] sm:$0xff] }
 0x582   : > { %v4932_v11 = vpack.c.bf16 %v3367_v10, %v3366_v35  ;;  %4931 = vmatprep.subr.bf16.mxu0 %v4930_v1  ;;  %v3160_v1 = vld [vmem:[#allocation18 + $0x2d0] sm:$0xff]  ;;  %v3163_v35 = vld [vmem:[#allocation18 + $0x2e8] sm:$0xff]  ;;  %v3165_v10 = vld [vmem:[#allocation18 + $0x2f8] sm:$0xff] }
 0x584   : > { %4833 = vmatpush1.bf16.msra.mxu1 %v4832_v16  ;;  %4933 = vmatpush3.bf16.msra.mxu0 %v4932_v11  ;;  %v2346_v16 = vsub.s32 3, %v6432_v22  ;;  %v4872_v11 = vpack.c.bf16 %v3160_v1, %v3158_v8  ;;  %v3384_v1 = vld [vmem:[#allocation21 + $0xe0] sm:$0xff] }
 0x585   : > { %4835 = vmatprep.subr.bf16.mxu1 %v4834_v17  ;;  %v2335_v17 = vrot.slane %v6434_v23, %v6441_v13 }
 0x586   : > { %v2347_v48 = vrot.slane %v6434_v23, %v2346_v16  ;;  %v4874_v16 = vpack.c.bf16 %v3165_v10, %v3163_v35  ;;  %v3385_v35 = vld [vmem:[#allocation21 + $0xe8] sm:$0xff] }
 0x587   : > { %v4934_v10 = vpack.c.bf16 %v3385_v35, %v3384_v1 }
 0x588   : > { %4837 = vmatpush1.bf16.msra.mxu1 %v4836_v62 }
 0x589   : > { %4839 = vmatprep.subr.bf16.mxu1 %v4838_v28  ;;  %4935 = vmatprep.subr.bf16.mxu0 %v4934_v10 }
 0x58c   : > { %4841 = vmatpush1.bf16.msra.mxu1 %v4840_v14 }
 0x58d   : > { %4843 = vmatprep.subr.bf16.mxu1 %v4842_v18  ;;  %v3136_v18 = vld [vmem:[#allocation18 + $0x210] sm:$0xff] }
 0x590   : > { %4845 = vmatpush1.bf16.msra.mxu1 %v4844_v19  ;;  %v3141_v19 = vld [vmem:[#allocation18 + $0x238] sm:$0xff] }
 0x591   : > { %4847 = vmatprep.subr.bf16.mxu1 %v4846_v43  ;;  %v4848_v43 = vpack.c.bf16 %v3136_v18, %v3134_v38  ;;  %v4850_v36 = vpack.c.bf16 %v3141_v19, %v3139_v42  ;;  %v3170_v18 = vld [vmem:[#allocation18 + $0x320] sm:$0xff]  ;;  %v3175_v42 = vld [vmem:[#allocation18 + $0x348] sm:$0xff]  ;;  %v3177_v19 = vld [vmem:[#allocation18 + $0x358] sm:$0xff] }
 0x626   : > { %v2702_v62 = vpop.f32.mrb[18].mxu1 }
 0x627   : > { %v4942_v25 = vadd.f32 %v2702_v62, %v2335_v17  ;;  %v3057_v26 = vpop.f32.mrb[72].mxu0  ;;  %v2704_v27 = vpop.f32.mrb[19].mxu1  ;;  %v3162_v17 = vld [vmem:[#allocation18 + $0x2e0] sm:$0xff]  ;;  %v3169_v62 = vld [vmem:[#allocation18 + $0x318] sm:$0xff] }
 0x628   : > { %v6452_v28 = vadd.f32 %v3057_v26, %v6438_v33  ;;  %v4943_v29 = vadd.f32 %v2704_v27, %v2339_v20  ;;  %v3059_v31 = vpop.f32.mrb[73].mxu0  ;;  %v3143_v33 = vld [vmem:[#allocation18 + $0x248] sm:$0xff]  ;;  %v3164_v20 = vld [vmem:[#allocation18 + $0x2f0] sm:$0xff]  ;;  %v3166_v27 = vld [vmem:[#allocation18 + $0x300] sm:$0xff] }
 0x629   : > { %v3062_v14 = vmul.f32 0.1, %v4942_v25  ;;  %v4945_v37 = vadd.f32 %v3059_v31, %v2347_v48  ;;  %v4854_v47 = vpack.c.bf16 %v3145_v44, %v3143_v33  ;;  %v3167_v48 = vld [vmem:[#allocation18 + $0x308] sm:$0xff]  ;;  %v3178_v33 = vld [vmem:[#allocation18 + $0x360] sm:$0xff]  ;;  %v3180_v44 = vld [vmem:[#allocation18 + $0x370] sm:$0xff] }
 0x62a   : > { %v3063_v41 = vmul.f32 0.1, %v4943_v29  ;;  %v4878_v26 = vpack.c.bf16 %v3169_v62, %v3167_v48  ;;  %v3171_v31 = vld [vmem:[#allocation18 + $0x328] sm:$0xff]  ;;  %v4892_v49 = vpack.c.bf16 %v3180_v44, %v3178_v33  ;;  %v3387_v48 = vld [vmem:[#allocation21 + $0xf8] sm:$0xff] }
 0x62b   : > { %v3065_v52 = vmul.f32 0.1, %v4945_v37  ;;  %v3066_v23 = vmax.f32 %v4942_v25, %v3062_v14  ;;  %v4876_v25 = vpack.c.bf16 %v3164_v20, %v3162_v17  ;;  %v3173_v14 = vld [vmem:[#allocation18 + $0x338] sm:$0xff] }
 0x62c   : > { %v3067_v12 = vmax.f32 %v4943_v29, %v3063_v41  ;;  %v3168_v29 = vld [vmem:[#allocation18 + $0x310] sm:$0xff]  ;;  %v4882_v38 = vpack.c.bf16 %v3173_v14, %v3171_v31 }
 0x62d   : > { %v3069_v46 = vmax.f32 %v4945_v37, %v3065_v52  ;;  %v4880_v37 = vpack.c.bf16 %v3168_v29, %v3166_v27  ;;  %v3172_v41 = vld [vmem:[#allocation18 + $0x330] sm:$0xff]  ;;  %v3198_v29 = vld [vmem:[#allocation19] sm:$0x3] }
 0x62e   : > { %3274 = vmatprep.mubr.f32.mxu1 %v3067_v12  ;;  %v4884_v52 = vpack.c.bf16 %v3172_v41, %v3170_v18  ;;  %v4886_v12 = vpack.c.bf16 %v3177_v19, %v3175_v42  ;;  %v3386_v20 = vld [vmem:[#allocation21 + $0xf0] sm:$0xff]  ;;  %v3207_v31 = vrot.slane %v3198_v29, %v2338_v15 }
 0x62f   : > { %3275 = vmatmul.mubr.f32.vlgmr.msra.gmra.mrb[20].mxu1 %v3066_v23  ;;  %v3176_v23 = vld [vmem:[#allocation18 + $0x350] sm:$0xff]  ;;  %v4938_v62 = vpack.c.bf16 %v3387_v48, %v3386_v20 }
 0x630   : > { %4849 = vmatpush1.bf16.msra.mxu1 %v4848_v43  ;;  %3345 = vmatprep.mubr.f32.mxu1 %v3069_v46  ;;  %v3174_v43 = vld [vmem:[#allocation18 + $0x340] sm:$0xff] }
 0x631   : > { %4851 = vmatprep.subr.bf16.mxu1 %v4850_v36  ;;  %v3179_v36 = vld [vmem:[#allocation18 + $0x368] sm:$0xff]  ;;  %v4888_v58 = vpack.c.bf16 %v3176_v23, %v3174_v43  ;;  %v1154_v43 = vpop.xlane.xlu1 %1153 }
 0x632   : > { %v4890_v46 = vpack.c.bf16 %v3181_v45, %v3179_v36 }
 0x634   : > { %4853 = vmatpush1.bf16.msra.mxu1 %v4852_v39  ;;  %v3183_v39 = vld [vmem:[#allocation18 + $0x388] sm:$0xff] }
 0x635   : > { %4855 = vmatprep.subr.bf16.mxu1 %v4854_v47  ;;  %v3185_v47 = vld [vmem:[#allocation18 + $0x398] sm:$0xff]  ;;  %v1156_v36 = vpop.xlane.xlu1 %1155 }
 0x636   : > { %v4894_v50 = vpack.c.bf16 %v3185_v47, %v3183_v39 }
 0x638   : > { %4857 = vmatpush1.bf16.msra.mxu1 %v4856_v54  ;;  %v3187_v54 = vld [vmem:[#allocation18 + $0x3a8] sm:$0xff] }
 0x639   : > { %4859 = vmatprep.subr.bf16.mxu1 %v4858_v55  ;;  %v3189_v55 = vld [vmem:[#allocation18 + $0x3b8] sm:$0xff] }
 0x63a   : > { %v4898_v40 = vpack.c.bf16 %v3189_v55, %v3187_v54 }
 0x63c   : > { %4861 = vmatpush1.bf16.msra.mxu1 %v4860_v30  ;;  %v3191_v30 = vld [vmem:[#allocation18 + $0x3c8] sm:$0xff] }
 0x63d   : > { %4863 = vmatprep.subr.bf16.mxu1 %v4862_v59  ;;  %v3193_v59 = vld [vmem:[#allocation18 + $0x3d8] sm:$0xff] }
 0x63e   : > { %v4902_v63 = vpack.c.bf16 %v3193_v59, %v3191_v30 }
 0x640   : > { %4865 = vmatpush1.bf16.msra.mxu1 %v4864_v61  ;;  %v3195_v61 = vld [vmem:[#allocation18 + $0x3e8] sm:$0xff] }
 0x641   : > { %4867 = vmatprep.subr.bf16.mxu1 %v4866_v3  ;;  %v3197_v3 = vld [vmem:[#allocation18 + $0x3f8] sm:$0xff] }
 0x642   : > { %v4906_v5 = vpack.c.bf16 %v3197_v3, %v3195_v61 }
 0x644   : > { %4869 = vmatpush1.bf16.msra.mxu1 %v4868_v24  ;;  %v4908_v24 = vpack.c.bf16 %v3196_v9, %v3194_v6 }
 0x645   : > { %4871 = vmatprep.subr.bf16.mxu1 %v4870_v7  ;;  %v3064_v7 = vmul.f32 0.1, %v6452_v28 }
 0x647   : > { %v3068_v8 = vmax.f32 %v6452_v28, %v3064_v7  ;;  %v3203_v28 = vrot.slane %v3198_v29, %v6441_v13 }
 0x648   : > { %4873 = vmatpush1.bf16.msra.mxu1 %v4872_v11  ;;  %v3368_v11 = vld [vmem:[#allocation21 + $0x60] sm:$0xff] }
 0x649   : > { %4875 = vmatprep.subr.bf16.mxu1 %v4874_v16  ;;  %v3369_v16 = vld [vmem:[#allocation21 + $0x68] sm:$0xff] }
 0x64a   : > { %v4936_v17 = vpack.c.bf16 %v3369_v16, %v3368_v11 }
 0x64c   : > { %4877 = vmatpush1.bf16.msra.mxu1 %v4876_v25  ;;  %4937 = vmatpush3.bf16.msra.mxu0 %v4936_v17  ;;  %v3370_v25 = vld [vmem:[#allocation21 + $0x70] sm:$0xff] }
 0x64d   : > { %4879 = vmatprep.subr.bf16.mxu1 %v4878_v26  ;;  %v3371_v26 = vld [vmem:[#allocation21 + $0x78] sm:$0xff]  ;;  %4939 = vmatprep.subr.bf16.mxu0 %v4938_v62 }
 0x64e   : > { %v4940_v27 = vpack.c.bf16 %v3371_v26, %v3370_v25 }
 0x650   : > { %4881 = vmatpush1.bf16.msra.mxu1 %v4880_v37  ;;  %4941 = vmatpush3.bf16.msra.mxu0 %v4940_v27 }
 0x651   : > { %4883 = vmatprep.subr.bf16.mxu1 %v4882_v38 }
 0x654   : > { %4885 = vmatpush1.bf16.msra.mxu1 %v4884_v52 }
 0x655   : > { %4887 = vmatprep.subr.bf16.mxu1 %v4886_v12  ;;  %v1150_v12 = vpop.xlane.xlu0 %1149 }
 0x656   : > { %5127 = vrsqrt.f32 %v1150_v12 }
 0x658   : > { %4889 = vmatpush1.bf16.msra.mxu1 %v4888_v58  ;;  %v1158_v58 = vpop.xlane.xlu1 %1157 }
 0x659   : > { %4891 = vmatprep.subr.bf16.mxu1 %v4890_v46  ;;  %v1152_v23 = vpop.xlane.xlu0 %1151 }
 0x65a   : > { %5129 = vrsqrt.f32 %v1152_v23 }
 0x65b   : > { %5131 = vrsqrt.f32 %v1154_v43 }
 0x65c   : > { %4893 = vmatpush1.bf16.msra.mxu1 %v4892_v49  ;;  %v1162_v33 = vpop.xlane.xlu1 %1161  ;;  %5133 = vrsqrt.f32 %v1156_v36 }
 0x65d   : > { %4895 = vmatprep.subr.bf16.mxu1 %v4894_v50  ;;  %v1160_v45 = vpop.xlane.xlu0 %1159  ;;  %5135 = vrsqrt.f32 %v1158_v58 }
 0x65e   : > { %5137 = vrsqrt.f32 %v1160_v45 }
 0x65f   : > { %5139 = vrsqrt.f32 %v1162_v33 }
 0x660   : > { %4897 = vmatpush1.bf16.msra.mxu1 %v4896_v57  ;;  %v1497_v15 = vpop.xlane.xlu1 %1496  ;;  %v5128_v7 = vpop.eup %5127 }
 0x661   : > { %4899 = vmatprep.subr.bf16.mxu1 %v4898_v40  ;;  %v1164_v46 = vpop.xlane.xlu0 %1163 }
 0x664   : > { %4901 = vmatpush1.bf16.msra.mxu1 %v4900_v60  ;;  %v1533_v39 = vpop.xlane.xlu1 %1532  ;;  %v5130_v1 = vpop.eup %5129 }
 0x665   : > { %4903 = vmatprep.subr.bf16.mxu1 %v4902_v63  ;;  %v6459_v22 = vpop.xlane.xlu0 %1165  ;;  %v5132_v35 = vpop.eup %5131 }
 0x666   : > { %v5134_v11 = vpop.eup %5133 }
 0x667   : > { %v5136_v16 = vpop.eup %5135 }
 0x668   : > { %4905 = vmatpush1.bf16.msra.mxu1 %v4904_v4  ;;  %v1571_v49 = vpop.xlane.xlu1 %1570  ;;  %v5138_v17 = vpop.eup %5137 }
 0x669   : > { %4907 = vmatprep.subr.bf16.mxu1 %v4906_v5  ;;  %v6461_v44 = vpop.xlane.xlu0 %1568  ;;  %v6481_v20 = vpop.eup %5139  ;;  %v1587_v29 = vmul.f32 %v5130_v1, %v1571_v49 }
 0x66c   : > { %4909 = vmatpush1.bf16.msra.mxu1 %v4908_v24  ;;  %v1616_v51 = vpop.xlane.xlu1 %1615 }
 0x66d   : > { %v6463_v47 = vpop.xlane.xlu0 %1613 }
 0x66e   : > { %v1631_v43 = vmul.f32 %v5128_v7, %v6463_v47 }
 0x66f   : > { %3346 = vmatmul.mubr.f32.vlgmr.msra.gmra.mrb[20].mxu1 %v3068_v8 }
 0x670   : > { %v1537_v54 = vpop.xlane.xlu1 %1536 }
 0x671   : > { %v1499_v50 = vpop.xlane.xlu0 %1498 }
 0x672   : > { %5141 = vrsqrt.f32 %v1499_v50 }
 0x674   : > { %v1573_v57 = vpop.xlane.xlu1 %1572 }
 0x675   : > { %v1535_v53 = vpop.xlane.xlu0 %1534 }
 0x678   : > { %v6467_v34 = vpop.xlane.xlu1 %1574 }
 0x679   : > { %v1501_v55 = vpop.xlane.xlu0 %1500  ;;  %v1589_v45 = vmul.f32 %v5134_v11, %v6467_v34 }
 0x67a   : > { %5143 = vrsqrt.f32 %v1501_v55 }
 0x67b   : > { %5145 = vrsqrt.f32 %v1497_v15 }
 0x67c   : > { %v1505_v30 = vpop.xlane.xlu1 %1504  ;;  %5147 = vrsqrt.f32 %v1535_v53  ;;  %v5142_v62 = vpop.eup %5141 }
 0x67d   : > { %v6465_v40 = vpop.xlane.xlu0 %1617  ;;  %5149 = vrsqrt.f32 %v1533_v39 }
 0x67e   : > { %5151 = vrsqrt.f32 %v1537_v54  ;;  %v1633_v39 = vmul.f32 %v5132_v35, %v6465_v40 }
 0x680   : > { %v1541_v60 = vpop.xlane.xlu1 %1540 }
 0x681   : > { %v1503_v32 = vpop.xlane.xlu0 %1502 }
 0x682   : > { %5153 = vrsqrt.f32 %v1503_v32 }
 0x683   : > { %5155 = vrsqrt.f32 %v1505_v30 }
 0x684   : > { %v6471_v56 = vpop.xlane.xlu1 %1576  ;;  %v5144_v25 = vpop.eup %5143 }
 0x685   : > { %v1539_v59 = vpop.xlane.xlu0 %1538  ;;  %v5146_v27 = vpop.eup %5145  ;;  %v1590_v58 = vmul.f32 %v5136_v16, %v6471_v56 }
 0x686   : > { %5157 = vrsqrt.f32 %v1539_v59 }
 0x687   : > { %5159 = vrsqrt.f32 %v1164_v46 }
 0x688   : > { %v6473_v61 = vpop.xlane.xlu1 %1621  ;;  %5161 = vrsqrt.f32 %v1541_v60 }
 0x689   : > { %v6469_v63 = vpop.xlane.xlu0 %1619  ;;  %v1635_v47 = vmul.f32 %v5136_v16, %v6473_v61 }
 0x68c   : > { %v6475_v4 = vpop.xlane.xlu1 %1623 }
 0x68d   : > { %v1507_v2 = vpop.xlane.xlu0 %1506  ;;  %v1636_v61 = vmul.f32 %v5138_v17, %v6475_v4 }
 0x68e   : > { %5163 = vrsqrt.f32 %v1507_v2 }
 0x690   : > { %v1509_v6 = vpop.xlane.xlu1 %1508 }
 0x691   : > { %v1543_v3 = vpop.xlane.xlu0 %1542 }
 0x692   : > { %5165 = vrsqrt.f32 %v1543_v3 }
 0x693   : > { %5167 = vrsqrt.f32 %v1509_v6 }
 0x694   : > { %v1511_v24 = vpop.xlane.xlu1 %1510 }
 0x695   : > { %v6477_v5 = vpop.xlane.xlu0 %1578 }
 0x698   : > { %v1513_v10 = vpop.xlane.xlu1 %1512 }
 0x699   : > { %v1545_v9 = vpop.xlane.xlu0 %1544 }
 0x69a   : > { %5169 = vrsqrt.f32 %v1545_v9 }
 0x69b   : > { %5171 = vrsqrt.f32 %v1511_v24 }
 0x69c   : > { %v1549_v26 = vpop.xlane.xlu1 %1548  ;;  %5173 = vrsqrt.f32 %v6459_v22  ;;  %v1634_v22 = vmul.f32 %v5134_v11, %v6469_v63 }
 0x69d   : > { %v6479_v8 = vpop.xlane.xlu0 %1580 }
 0x6a0   : > { %v1626_v46 = vpop.xlane.xlu1 %1625 }
 0x6a1   : > { %v1547_v48 = vpop.xlane.xlu0 %1546 }
 0x6a2   : > { %5175 = vrsqrt.f32 %v1547_v48 }
 0x6a3   : > { %5177 = vrsqrt.f32 %v1513_v10 }
 0x6a4   : > { %v1628_v9 = vpop.xlane.xlu1 %1627 }
 0x742   : > { %v3347_v14 = vpop.f32.mrb[20].mxu1 }
 0x743   : > { %v4946_v37 = vadd.f32 %v3347_v14, %v3203_v28  ;;  %v3349_v38 = vpop.f32.mrb[21].mxu1  ;;  %v1588_v28 = vmul.f32 %v5132_v35, %v1573_v57  ;;  %v1586_v14 = vmul.f32 %v5128_v7, %v6461_v44  ;;  %v1591_v57 = vmul.f32 %v5138_v17, %v6477_v5 }
 0x744   : > { %v4947_v18 = vadd.f32 %v3349_v38, %v3207_v31  ;;  %v5148_v31 = vpop.eup %5147  ;;  %v1596_v38 = vmul.f32 %v5142_v62, %v1587_v29  ;;  %5179 = vrsqrt.f32 %v1549_v26  ;;  %v1592_v5 = vmul.f32 %v6481_v20, %v6479_v8 }
 0x745   : > { %v3352_v41 = vmul.f32 0.1, %v4946_v37  ;;  %v1595_v12 = vmul.f32 %v5146_v27, %v1586_v14  ;;  %v1637_v35 = vmul.f32 %v6481_v20, %v1626_v46 }
 0x746   : > { %v3353_v42 = vmul.f32 0.1, %v4947_v18  ;;  %v1650_v44 = vsub.f32 0.1, %v1596_v38 }
 0x747   : > { %v3354_v52 = vmax.f32 %v4946_v37, %v3352_v41  ;;  %v5150_v37 = vpop.eup %5149  ;;  %v1597_v41 = vmul.f32 %v5144_v25, %v1588_v28  ;;  %v1649_v54 = vsub.f32 0.1, %v1595_v12 }
 0x748   : > { %v3355_v19 = vmax.f32 %v4947_v18, %v3353_v42  ;;  %v1632_v18 = vmul.f32 %v5130_v1, %v1616_v51  ;;  %v5152_v42 = vpop.eup %5151  ;;  %v1640_v15 = vmul.f32 %v5150_v37, %v1631_v43 }
 0x749   : > { %v1651_v49 = vsub.f32 0.1, %v1597_v41  ;;  %v1642_v32 = vmul.f32 %v5152_v42, %v1633_v39 }
 0x74a   : > { %3453 = vmatprep.mubr.f32.mxu0 %v3355_v19  ;;  %v1583_v19 = vpop.xlane.xlu0 %1582  ;;  %v1641_v23 = vmul.f32 %v5148_v31, %v1632_v18  ;;  %v1658_v56 = vadd.f32 %v1649_v54, %v1640_v15 }
 0x74b   : > { %3454 = vmatmul.mubr.f32.vlgmr.msra.gmra.mrb[74].mxu0 %v3354_v52  ;;  %v5154_v52 = vpop.eup %5153  ;;  %v1660_v3 = vadd.f32 %v1651_v49, %v1642_v32 }
 0x74c   : > { %v5156_v36 = vpop.eup %5155  ;;  %v1598_v51 = vmul.f32 %v5154_v52, %v1589_v45  ;;  %v1659_v55 = vadd.f32 %v1650_v44, %v1641_v23  ;;  %v1667_v28 = vmax.f32 %v1658_v56, 0.0  ;;  %v3460_v56 = vand.u32 127, %v2332_v21 }
 0x74d   : > { %v5158_v33 = vpop.eup %5157  ;;  %v1599_v59 = vmul.f32 %v5156_v36, %v1590_v58  ;;  %v1669_v4 = vmax.f32 %v1660_v3, 0.0 }
 0x74e   : > { %v5160_v50 = vpop.eup %5159  ;;  %v1643_v30 = vmul.f32 %v5158_v33, %v1634_v22  ;;  %v1585_v60 = vpop.xlane.xlu0 %1584  ;;  %v1652_v6 = vsub.f32 0.1, %v1598_v51  ;;  %v1668_v11 = vmax.f32 %v1659_v55, 0.0  ;;  %vm3461_vm3 = vcmp.eq.s32.totalorder %v3460_v56, 7 }
 0x74f   : > { %v5162_v53 = vpop.eup %5161  ;;  %v1593_v1 = vmul.f32 %v5160_v50, %v1583_v19  ;;  %v1653_v48 = vsub.f32 0.1, %v1599_v59  ;;  %v1638_v27 = vmul.f32 %v5160_v50, %v1628_v9  ;;  %v3725_v9 = vsel %vm3461_vm3, 1.0, %v5635_v0 }
 0x750   : > { %v5164_v34 = vpop.eup %5163  ;;  %v1644_v63 = vmul.f32 %v5162_v53, %v1635_v47  ;;  %v1661_v16 = vadd.f32 %v1652_v6, %v1643_v30  ;;  %v1676_v41 = vadd.f32 %v1668_v11, %v1667_v28 }
 0x751   : > { %v5166_v40 = vpop.eup %5165  ;;  %v1600_v7 = vmul.f32 %v5164_v34, %v1591_v57 }
 0x752   : > { %v5168_v2 = vpop.eup %5167  ;;  %v1645_v25 = vmul.f32 %v5166_v40, %v1636_v61  ;;  %v1662_v17 = vadd.f32 %v1653_v48, %v1644_v63  ;;  %v1630_v31 = vpop.xlane.xlu0 %1629  ;;  %v1670_v20 = vmax.f32 %v1661_v16, 0.0  ;;  %v1677_v23 = vadd.f32 %v1676_v41, %v1669_v4  ;;  %v3388_v63 = vld [vmem:[#allocation22] sm:$0x1] }
 0x753   : > { %v5170_v24 = vpop.eup %5169  ;;  %v1601_v26 = vmul.f32 %v5168_v2, %v1592_v5  ;;  %v1654_v14 = vsub.f32 0.1, %v1600_v7 }
 0x754   : > { %v5172_v10 = vpop.eup %5171  ;;  %v1646_v8 = vmul.f32 %v5170_v24, %v1637_v35  ;;  %v1671_v36 = vmax.f32 %v1662_v17, 0.0  ;;  %v1678_v33 = vadd.f32 %v1677_v23, %v1670_v20 }
 0x755   : > { %v5174_v62 = vpop.eup %5173  ;;  %v1602_v37 = vmul.f32 %v5172_v10, %v1593_v1  ;;  %v1663_v42 = vadd.f32 %v1654_v14, %v1645_v25  ;;  %v1655_v19 = vsub.f32 0.1, %v1601_v26 }
 0x756   : > { %v5176_v29 = vpop.eup %5175  ;;  %v1594_v38 = vmul.f32 %v5174_v62, %v1585_v60  ;;  %v1639_v52 = vmul.f32 %v5174_v62, %v1630_v31  ;;  %v1679_v49 = vadd.f32 %v1678_v33, %v1671_v36 }
 0x757   : > { %v5178_v18 = vpop.eup %5177  ;;  %v1647_v12 = vmul.f32 %v5176_v29, %v1638_v27  ;;  %v1656_v45 = vsub.f32 0.1, %v1602_v37  ;;  %v1664_v46 = vadd.f32 %v1655_v19, %v1646_v8  ;;  %v1672_v15 = vmax.f32 %v1663_v42, 0.0 }
 0x758   : > { %v5180_v43 = vpop.eup %5179  ;;  %v1603_v58 = vmul.f32 %v5178_v18, %v1594_v38 }
 0x759   : > { %v1648_v44 = vmul.f32 %v5180_v43, %v1639_v52  ;;  %v1665_v39 = vadd.f32 %v1656_v45, %v1647_v12  ;;  %v1673_v51 = vmax.f32 %v1664_v46, 0.0  ;;  %v1680_v22 = vadd.f32 %v1679_v49, %v1672_v15 }
 0x75a   : > { %v1657_v50 = vsub.f32 0.1, %v1603_v58 }
 0x75b   : > { %v1674_v53 = vmax.f32 %v1665_v39, 0.0  ;;  %v1681_v54 = vadd.f32 %v1680_v22, %v1673_v51 }
 0x75c   : > { %v1666_v47 = vadd.f32 %v1657_v50, %v1648_v44 }
 0x75d   : > { %v1682_v57 = vadd.f32 %v1681_v54, %v1674_v53 }
 0x75e   : > { %v1675_v55 = vmax.f32 %v1666_v47, 0.0 }
 0x760   : > { %v1683_v34 = vadd.f32 %v1682_v57, %v1675_v55 }
 0x762   : > { %v1684_v32 = vrot.slane %v1683_v34, 4 }
 0x764   : > { %v1685_v30 = vadd.f32 %v1684_v32, %v1683_v34 }
 0x766   : > { %v1686_v59 = vrot.slane %v1685_v30, 2 }
 0x768   : > { %v1687_v60 = vadd.f32 %v1686_v59, %v1685_v30 }
 0x76a   : > { %v1688_v40 = vrot.slane %v1687_v60, 1 }
 0x76c   : > { %v1689_v2 = vadd.f32 %v1688_v40, %v1687_v60 }
 0x76e   : > { %v1690_v6 = vmul.f32 0.013888889, %v1689_v2 }
 0x770   : > { %v3464_v5 = vmul.f32 %v3725_v9, %v1690_v6 }
 0x81e   : > { %v3894_v3 = vpop.f32.mrb[74].mxu0 }
 0x81f   : > { %v3895_v61 = vpop.f32.mrb[75].mxu0 }
 0x820   : > { %v3896_v24 = vadd.f32 %v3895_v61, %v3894_v3 }
 0x822   : > { %v3456_v7 = vadd.f32 %v3896_v24, %v3388_v63 }
 0x824   : > { %v3465_v1 = vadd.f32 %v3464_v5, %v3456_v7 }
 0x826   : > { %v3469_v35 = vrot.slane %v3465_v1, %v6441_v13 }
 0x828   : > { %3470 = vst [vmem:[%s682_s26] sm:$0xff] %v3469_v35 }
 0x829 PF: > { %s6564_s0 = sld [smem:[#allocation32_spill]] }
 0x82f   : > { %s33_s18 = sadd.s32 1, %s6564_s0  }
 0x830   : > { %p30_p0 = scmp.ge.s32.totalorder %s33_s18, 4  }
 0x832   :  { %32 = sbr.rel (!%p30_p0) target bundleno = 14 (0xe), region = 167 }
 0x839   :  { %3490 = vsyncpa [#allocation3], 1 }
 0x83a   :  { %3492 = vsyncpa [#allocation3 + $0x1], 1 }
 0x83b   :  { %3493 = vsyncpa [#allocation5], 1 }
 0x83c   :  { %3494 = vsyncpa [#allocation8], 1 }
 0x83d   :  { %3495 = vsyncpa [#allocation11], 1 }
 0x83e   :  { %3496 = vsyncpa [#allocation14], 1 }
 0x83f   :  { %3497 = vsyncpa [#allocation17], 1 }
 0x840   :  { %3498 = vsyncpa [#allocation20], 1 }
 0x841   :  { %3499 = vsyncpa [#allocation23], 1 }

</bundles_post_ra>
